<compile_context>
chip_gen: v5e
topology: v5e:2x2
jax: 0.10.0
libtpu: 0.0.40
codegen_flags: <defaults>
</compile_context>

<pallas_src>
import functools

import jax
import jax.numpy as jnp
import numpy as np
from jax import lax
from jax.experimental import pallas as pl
from jax.experimental.pallas import tpu as pltpu

EPS = 1e-5

# Scoped-VMEM limit for both pallas_calls. 48 MiB fits inside every generation's
# physical VMEM (64 MiB v7x, 128 MiB v5e/v6e) while being well above the default
# scoped limits (16/32 MiB) that would throttle larger blocks.
# TODO(synk): derive per-generation (<=~56 MiB v7x, ~100 MiB v5e/v6e) once the
#             spatial-row tiling for realistic WRN widths is added.
_VMEM_LIMIT_BYTES = 48 * 1024 * 1024


def _round_up(x, m):
    return ((x + m - 1) // m) * m


def _fold_bn(gamma, beta, mean, var):
    inv = gamma / jnp.sqrt(var + EPS)
    return inv, beta - mean * inv


# ------------- capability probe: single-buffering of constant operands -------


_CONST_SPEC_KW = None


def _probe_single_buffering():
    """Check whether pl.Buffered(1) in a pallas_call BlockSpec compiles, runs and
    produces correct data on this jax build; return the spec kwargs to use."""
    try:
        spec_kw = {"pipeline_mode": pl.Buffered(1)}

        def _k(x_ref, o_ref):
            o_ref[...] = x_ref[...]

        y = pl.pallas_call(
            _k,
            out_shape=jax.ShapeDtypeStruct((16, 128), jnp.float32),
            grid=(2,),
            in_specs=[pl.BlockSpec((8, 128), lambda i: (0, 0), **spec_kw)],
            out_specs=pl.BlockSpec((8, 128), lambda i: (i, 0)),
        )(jnp.ones((8, 128), jnp.float32))
        y = jax.block_until_ready(y)
        if not np.allclose(np.asarray(y), 1.0):
            return {}
        return spec_kw
    except Exception:  # pragma: no cover - older builds without pipeline_mode
        return {}


def _const_spec_kwargs():
    """BlockSpec kwargs for constant-index operands (weights / folded BN scales):
    single-buffer them when supported, else default double buffering."""
    global _CONST_SPEC_KW
    if _CONST_SPEC_KW is None:
        _CONST_SPEC_KW = _probe_single_buffering()
    return _CONST_SPEC_KW


# ----------------------------- in-kernel helpers ----------------------------


def _zero_border(pad_ref):
    """Zero only the 1-px halo border of the pad scratch (interior is always
    fully overwritten each grid step, so no full-scratch zeroing is needed)."""
    hp, wp, c = pad_ref.shape
    dt = pad_ref.dtype
    row = jnp.zeros((1, wp, c), dt)
    col = jnp.zeros((hp, 1, c), dt)
    pad_ref[0:1, :, :] = row
    pad_ref[hp - 1:hp, :, :] = row
    pad_ref[:, 0:1, :] = col
    pad_ref[:, wp - 1:wp, :] = col


def _conv3x3_taps(xp, w_ref, stride, ho, wo):
    """3x3 conv as 9 tap matmuls accumulated in f32 (no materialised im2col).

    xp:    (Hp, Wp, C) bf16 spatially padded input (value, already loaded).
    w_ref: Ref of shape (9, C, Cout_padded) bf16 (tap-major folded weights).
    Returns (ho*wo, Cout_padded) f32.
    """
    c = xp.shape[-1]
    acc = None
    for ky in range(3):
        for kx in range(3):
            if stride == 1:
                tap = xp[ky:ky + ho, kx:kx + wo, :]
            else:
                tap = xp[ky:ky + stride * (ho - 1) + 1:stride,
                         kx:kx + stride * (wo - 1) + 1:stride, :]
            part = jnp.dot(tap.reshape(ho * wo, c), w_ref[3 * ky + kx],
                           preferred_element_type=jnp.float32)
            acc = part if acc is None else acc + part
    return acc


# ------------------------------- Pallas kernels ------------------------------


def _conv1_bn_fused_kernel(x_ref, s1_ref, t1_ref, w1_ref, s2_ref, t2_ref,
                           *rest, stride, emit_x1s):
    # out1 = relu(bn2(conv1_3x3_stride(relu(bn1(x)))))  -- stored bf16, lane-padded N
    # (emit_x1s mode additionally stores the strided relu(bn1(x)) for the shortcut)
    if emit_x1s:
        o_ref, x1s_ref, pad_ref = rest
    else:
        o_ref, pad_ref = rest
        x1s_ref = None

    _, h, w, cin = x_ref.shape
    _, ho, wo, cp = o_ref.shape

    s1 = s1_ref[...].reshape(1, 1, cin)
    t1 = t1_ref[...].reshape(1, 1, cin)
    x1 = jnp.maximum(x_ref[0] * s1 + t1, 0.0)                  # relu(bn1(x)), f32 vregs

    if emit_x1s:
        x1s = x1 if stride == 1 else x1[::stride, ::stride, :]
        x1s_ref[0] = x1s.astype(x1s_ref.dtype)

    _zero_border(pad_ref)                                       # 1-px halo stays zero
    pad_ref[1:h + 1, 1:w + 1, :] = x1.astype(pad_ref.dtype)     # bf16 halo scratch

    acc = _conv3x3_taps(pad_ref[...], w1_ref, stride, ho, wo)   # (ho*wo, cp) f32
    out = jnp.maximum(acc * s2_ref[...] + t2_ref[...], 0.0)     # relu(bn2(.))
    # dropout: identity (eval mode / drop_rate == 0)
    o_ref[0] = out.reshape(ho, wo, cp).astype(o_ref.dtype)


def _conv2_residual_kernel(out1_ref, x_ref, w2_ref, o_ref, pad_ref):
    # equalInOut path: y = conv2_3x3_1(out1) + x
    _, h, w, c = x_ref.shape
    _, ho, wo, cp = o_ref.shape
    ck = pad_ref.shape[-1]                                      # un-padded K = out_planes

    _zero_border(pad_ref)
    o1 = out1_ref[0]
    if ck < cp:                                                 # drop lane padding for K
        o1 = o1[:, :, :ck]
    pad_ref[1:ho + 1, 1:wo + 1, :] = o1

    acc = _conv3x3_taps(pad_ref[...], w2_ref, 1, ho, wo)        # (ho*wo, cp) f32

    resid = x_ref[0]                                            # (ho, wo, c) f32 identity
    if cp == c:
        o_ref[0] = (acc + resid.reshape(ho * wo, c)).reshape(ho, wo, cp).astype(o_ref.dtype)
    else:
        # lane-padded output: store the conv result, then slice-add the residual
        # into the real lanes only (padded lanes keep the exact-zero conv output).
        out = acc.reshape(ho, wo, cp).astype(o_ref.dtype)
        o_ref[0] = out
        o_ref[0, :, :, :c] = out[:, :, :c] + resid


def _conv2_shortcut_kernel(out1_ref, x1s_ref, wsc_ref, w2_ref, o_ref, pad_ref):
    # not-equalInOut path: y = conv2_3x3_1(out1) + conv_sc_1x1_stride(relu(bn1(x)))
    # (x1s = strided relu(bn1(x)) was produced by kernel 1; no recomputation here)
    _, ho, wo, cp = o_ref.shape
    cin = x1s_ref.shape[-1]
    ck = pad_ref.shape[-1]                                      # un-padded K = out_planes

    _zero_border(pad_ref)
    o1 = out1_ref[0]
    if ck < cp:
        o1 = o1[:, :, :ck]
    pad_ref[1:ho + 1, 1:wo + 1, :] = o1

    acc = _conv3x3_taps(pad_ref[...], w2_ref, 1, ho, wo)        # conv2(out1)

    sc = jnp.dot(x1s_ref[0].reshape(ho * wo, cin), wsc_ref[...],
                 preferred_element_type=jnp.float32)            # 1x1 shortcut conv
    o_ref[0] = (acc + sc).reshape(ho, wo, cp).astype(o_ref.dtype)


# ------------------------------ Module forward -------------------------------


def basic_block_wrn_forward(x_nchw, params, *, in_planes, out_planes, stride,
                            lane_pad=128):
    """Pallas implementation of BasicBlockWRN.forward (eval mode)."""
    equal_in_out = in_planes == out_planes
    if equal_in_out:
        # The PyTorch residual add requires matching spatial dims in this case.
        assert stride == 1, "equalInOut BasicBlockWRN requires stride == 1"

    x = jnp.transpose(x_nchw, (0, 2, 3, 1)).astype(jnp.float32)        # -> NHWC
    n, h, w, cin = x.shape
    assert cin == in_planes
    cp = _round_up(out_planes, lane_pad)                               # lane-dense N
    ho = (h - 1) // stride + 1
    wo = (w - 1) // stride + 1

    # ---- one-time parameter folding / padding (tiny, weight-sized XLA ops) ----
    s1, t1 = _fold_bn(*params["bn1"])                                  # (cin,)
    s2, t2 = _fold_bn(*params["bn2"])                                  # (out_planes,)
    s1 = s1.reshape(1, cin).astype(jnp.float32)
    t1 = t1.reshape(1, cin).astype(jnp.float32)
    s2p = jnp.zeros((1, cp), jnp.float32).at[0, :out_planes].set(s2)
    t2p = jnp.zeros((1, cp), jnp.float32).at[0, :out_planes].set(t2)

    # conv weights HWIO -> (tap, K, N): N lane-padded to cp, K left un-padded.
    w1f = jnp.zeros((3, 3, cin, cp), jnp.float32).at[..., :out_planes].set(params["w1"])
    w1f = w1f.reshape(9, cin, cp).astype(jnp.bfloat16)
    w2f = jnp.zeros((3, 3, out_planes, cp), jnp.float32)
    w2f = w2f.at[..., :out_planes].set(params["w2"])
    w2f = w2f.reshape(9, out_planes, cp).astype(jnp.bfloat16)

    const_kw = _const_spec_kwargs()                                    # single-buffer consts
    cparams = pltpu.CompilerParams(dimension_semantics=("parallel",),
                                   vmem_limit_bytes=_VMEM_LIMIT_BYTES)

    # ---- kernel 1: bn1+relu -> conv1(3x3, stride) -> bn2+relu  (stored bf16) ----
    k1_in_specs = [
        pl.BlockSpec((1, h, w, cin), lambda b: (b, 0, 0, 0)),
        pl.BlockSpec((1, cin), lambda b: (0, 0), **const_kw),
        pl.BlockSpec((1, cin), lambda b: (0, 0), **const_kw),
        pl.BlockSpec((9, cin, cp), lambda b: (0, 0, 0), **const_kw),
        pl.BlockSpec((1, cp), lambda b: (0, 0), **const_kw),
        pl.BlockSpec((1, cp), lambda b: (0, 0), **const_kw),
    ]
    out1_spec = pl.BlockSpec((1, ho, wo, cp), lambda b: (b, 0, 0, 0))
    out1_shape = jax.ShapeDtypeStruct((n, ho, wo, cp), jnp.bfloat16)
    k1_scratch = [pltpu.VMEM((h + 2, w + 2, cin), jnp.bfloat16)]       # bf16 halo scratch

    if equal_in_out:
        out1 = pl.pallas_call(
            functools.partial(_conv1_bn_fused_kernel, stride=stride, emit_x1s=False),
            out_shape=out1_shape,
            grid=(n,),
            in_specs=k1_in_specs,
            out_specs=out1_spec,
            scratch_shapes=k1_scratch,
            compiler_params=cparams,
        )(x, s1, t1, w1f, s2p, t2p)
        x1s = None
    else:
        out1, x1s = pl.pallas_call(
            functools.partial(_conv1_bn_fused_kernel, stride=stride, emit_x1s=True),
            out_shape=(out1_shape,
                       jax.ShapeDtypeStruct((n, ho, wo, cin), jnp.bfloat16)),
            grid=(n,),
            in_specs=k1_in_specs,
            out_specs=(out1_spec,
                       pl.BlockSpec((1, ho, wo, cin), lambda b: (b, 0, 0, 0))),
            scratch_shapes=k1_scratch,
            compiler_params=cparams,
        )(x, s1, t1, w1f, s2p, t2p)

    # ---- kernel 2: conv2(3x3, stride 1) + fused residual ----
    k2_scratch = [pltpu.VMEM((ho + 2, wo + 2, out_planes), jnp.bfloat16)]

    if equal_in_out:
        y = pl.pallas_call(
            _conv2_residual_kernel,
            out_shape=jax.ShapeDtypeStruct((n, ho, wo, cp), jnp.float32),
            grid=(n,),
            in_specs=[
                pl.BlockSpec((1, ho, wo, cp), lambda b: (b, 0, 0, 0)),
                pl.BlockSpec((1, h, w, cin), lambda b: (b, 0, 0, 0)),
                pl.BlockSpec((9, out_planes, cp), lambda b: (0, 0, 0), **const_kw),
            ],
            out_specs=pl.BlockSpec((1, ho, wo, cp), lambda b: (b, 0, 0, 0)),
            scratch_shapes=k2_scratch,
            compiler_params=cparams,
        )(out1, x, w2f)
    else:
        w_scp = jnp.zeros((cin, cp), jnp.float32).at[:, :out_planes].set(params["w_sc"])
        w_scp = w_scp.astype(jnp.bfloat16)
        y = pl.pallas_call(
            _conv2_shortcut_kernel,
            out_shape=jax.ShapeDtypeStruct((n, ho, wo, cp), jnp.float32),
            grid=(n,),
            in_specs=[
                pl.BlockSpec((1, ho, wo, cp), lambda b: (b, 0, 0, 0)),
                pl.BlockSpec((1, ho, wo, cin), lambda b: (b, 0, 0, 0)),
                pl.BlockSpec((cin, cp), lambda b: (0, 0), **const_kw),
                pl.BlockSpec((9, out_planes, cp), lambda b: (0, 0, 0), **const_kw),
            ],
            out_specs=pl.BlockSpec((1, ho, wo, cp), lambda b: (b, 0, 0, 0)),
            scratch_shapes=k2_scratch,
            compiler_params=cparams,
        )(out1, x1s, w_scp, w2f)

    # Standalone block must return NCHW to match the PyTorch module; when chaining
    # WRN blocks, keep padded NHWC between blocks instead of this slice+transpose.
    y = y[..., :out_planes]
    return jnp.transpose(y, (0, 3, 1, 2))


# ------------------- Reference (jax.lax, same operand precision) -------------


def reference_forward(x_nchw, params, *, in_planes, out_planes, stride):
    dn = ("NHWC", "HWIO", "NHWC")
    equal_in_out = in_planes == out_planes
    bf16 = jnp.bfloat16
    x = jnp.transpose(x_nchw, (0, 2, 3, 1)).astype(jnp.float32)

    def bnr(v, p):
        g, b, m, var = p
        s = g / jnp.sqrt(var + EPS)
        return jnp.maximum(v * s + (b - m * s), 0.0)

    x1 = bnr(x, params["bn1"])
    c1 = lax.conv_general_dilated(x1.astype(bf16), params["w1"].astype(bf16),
                                  (stride, stride), ((1, 1), (1, 1)),
                                  dimension_numbers=dn,
                                  preferred_element_type=jnp.float32)
    o = bnr(c1, params["bn2"]).astype(bf16)
    c2 = lax.conv_general_dilated(o, params["w2"].astype(bf16), (1, 1),
                                  ((1, 1), (1, 1)), dimension_numbers=dn,
                                  preferred_element_type=jnp.float32)
    if equal_in_out:
        y = x + c2
    else:
        x1s = x1[:, ::stride, ::stride, :]
        n, ho, wo, cin = x1s.shape
        sc = jnp.dot(x1s.astype(bf16).reshape(-1, cin), params["w_sc"].astype(bf16),
                     preferred_element_type=jnp.float32).reshape(n, ho, wo, out_planes)
        y = sc + c2
    return jnp.transpose(y, (0, 3, 1, 2))


# ------------------------------ Param init -----------------------------------


def init_params(key, in_planes, out_planes):
    ks = jax.random.split(key, 12)

    def bn_params(k0, k1, k2, k3, c):
        return (1.0 + 0.1 * jax.random.normal(k0, (c,), jnp.float32),
                0.1 * jax.random.normal(k1, (c,), jnp.float32),
                0.1 * jax.random.normal(k2, (c,), jnp.float32),
                1.0 + 0.2 * jax.random.uniform(k3, (c,), jnp.float32))

    params = {
        "bn1": bn_params(ks[0], ks[1], ks[2], ks[3], in_planes),
        "w1": 0.1 * jax.random.normal(ks[4], (3, 3, in_planes, out_planes), jnp.float32),
        "bn2": bn_params(ks[5], ks[6], ks[7], ks[8], out_planes),
        "w2": 0.1 * jax.random.normal(ks[9], (3, 3, out_planes, out_planes), jnp.float32),
    }
    if in_planes != out_planes:
        params["w_sc"] = 0.1 * jax.random.normal(ks[10], (in_planes, out_planes),
                                                 jnp.float32)
    return params


# ------------------------------------ main ------------------------------------

if __name__ == "__main__":
    key = jax.random.PRNGKey(0)
    kx1, kx2, kp1, kp2 = jax.random.split(key, 4)

    # Case 1: not equalInOut (in_planes=4 -> out_planes=8, stride=1): exercises the
    # fused bn1/relu prologue, both tap-accumulated 3x3 convs, the kernel-1 x1s
    # side output and the fused 1x1 shortcut.
    in_p, out_p, stride = 4, 8, 1
    x = jax.random.normal(kx1, (2, in_p, 16, 16), jnp.float32)          # NCHW
    params = init_params(kp1, in_p, out_p)
    y = basic_block_wrn_forward(x, params, in_planes=in_p, out_planes=out_p,
                                stride=stride)
    y = jax.block_until_ready(y)
    y_ref = reference_forward(x, params, in_planes=in_p, out_planes=out_p,
                              stride=stride)
    np.testing.assert_allclose(np.asarray(y), np.asarray(y_ref),
                               rtol=5e-3, atol=5e-3)

    # Case 2: equalInOut (in_planes=out_planes=8): identity residual slice-added
    # into the lane-padded conv2 output.
    in_p2, out_p2, stride2 = 8, 8, 1
    x2 = jax.random.normal(kx2, (2, in_p2, 16, 16), jnp.float32)
    params2 = init_params(kp2, in_p2, out_p2)
    y2 = basic_block_wrn_forward(x2, params2, in_planes=in_p2, out_planes=out_p2,
                                 stride=stride2)
    y2 = jax.block_until_ready(y2)
    y2_ref = reference_forward(x2, params2, in_planes=in_p2, out_planes=out_p2,
                               stride=stride2)
    np.testing.assert_allclose(np.asarray(y2), np.asarray(y2_ref),
                               rtol=5e-3, atol=5e-3)

    print("KERNEL_OK")
</pallas_src>

<mosaic_0001>
module attributes {stable_mosaic.version = 11 : i64} {
  func.func @_k(%arg0: i32, %arg1: memref<8x128xf32, #tpu.memory_space<vmem>>, %arg2: memref<8x128xf32, #tpu.memory_space<vmem>>) attributes {dimension_semantics = [#tpu.dimension_semantics<arbitrary>], iteration_bounds = array<i64: 2>, scalar_prefetch = 0 : i64, scratch_operands = 0 : i64, tpu.core_type = #tpu.core_type<tc>, window_params = [{pipeline_mode = #tpu.pipeline_mode<synchronous>, transform_indices = @transform_0, window_bounds = array<i64: 8, 128>}, {transform_indices = @transform_1, window_bounds = array<i64: 8, 128>}]} {
    %c0 = arith.constant 0 : index
    %c0_0 = arith.constant 0 : index
    %0 = vector.load %arg1[%c0, %c0_0] : memref<8x128xf32, #tpu.memory_space<vmem>>, vector<8x128xf32>
    %c0_1 = arith.constant 0 : index
    %c0_2 = arith.constant 0 : index
    %1 = vector.load %arg2[%c0_1, %c0_2] : memref<8x128xf32, #tpu.memory_space<vmem>>, vector<8x128xf32>
    tpu.vector_store %arg2[%c0_1, %c0_2], %0 {strides = array<i32>} : memref<8x128xf32, #tpu.memory_space<vmem>>, vector<8x128xf32>,
    return
  }
  func.func @transform_0(%arg0: i32) -> (i32, i32) {
    %c0_i32 = arith.constant 0 : i32
    %c0_i32_0 = arith.constant 0 : i32
    %c0_i32_1 = arith.constant 0 : i32
    return %c0_i32, %c0_i32_0 : i32, i32
  }
  func.func @transform_1(%arg0: i32) -> (i32, i32) {
    %c0_i32 = arith.constant 0 : i32
    %c0_i32_0 = arith.constant 0 : i32
    return %arg0, %c0_i32 : i32, i32
  }
}

module attributes {stable_mosaic.version = 11 : i64} {
  func.func @_conv1_bn_fused_kernel(%arg0: i32, %arg1: memref<1x16x16x4xf32, #tpu.memory_space<vmem>>, %arg2: memref<1x4xf32, #tpu.memory_space<vmem>>, %arg3: memref<1x4xf32, #tpu.memory_space<vmem>>, %arg4: memref<9x4x128xbf16, #tpu.memory_space<vmem>>, %arg5: memref<1x128xf32, #tpu.memory_space<vmem>>, %arg6: memref<1x128xf32, #tpu.memory_space<vmem>>, %arg7: memref<1x16x16x128xbf16, #tpu.memory_space<vmem>>, %arg8: memref<1x16x16x4xbf16, #tpu.memory_space<vmem>>, %arg9: memref<18x18x4xbf16, #tpu.memory_space<vmem>>) attributes {dimension_semantics = [#tpu.dimension_semantics<parallel>], iteration_bounds = array<i64: 2>, scalar_prefetch = 0 : i64, scratch_operands = 1 : i64, tpu.core_type = #tpu.core_type<tc>, window_params = [{transform_indices = @transform_0, window_bounds = array<i64: 1, 16, 16, 4>}, {pipeline_mode = #tpu.pipeline_mode<synchronous>, transform_indices = @transform_1, window_bounds = array<i64: 1, 4>}, {pipeline_mode = #tpu.pipeline_mode<synchronous>, transform_indices = @transform_2, window_bounds = array<i64: 1, 4>}, {pipeline_mode = #tpu.pipeline_mode<synchronous>, transform_indices = @transform_3, window_bounds = array<i64: 9, 4, 128>}, {pipeline_mode = #tpu.pipeline_mode<synchronous>, transform_indices = @transform_4, window_bounds = array<i64: 1, 128>}, {pipeline_mode = #tpu.pipeline_mode<synchronous>, transform_indices = @transform_5, window_bounds = array<i64: 1, 128>}, {transform_indices = @transform_6, window_bounds = array<i64: 1, 16, 16, 128>}, {transform_indices = @transform_7, window_bounds = array<i64: 1, 16, 16, 4>}]} {
    %c0 = arith.constant 0 : index
    %c0_0 = arith.constant 0 : index
    %0 = vector.load %arg2[%c0, %c0_0] : memref<1x4xf32, #tpu.memory_space<vmem>>, vector<1x4xf32>
    %1 = vector.shape_cast %0 : vector<1x4xf32> to vector<1x1x4xf32>
    %c0_1 = arith.constant 0 : index
    %c0_2 = arith.constant 0 : index
    %2 = vector.load %arg3[%c0_1, %c0_2] : memref<1x4xf32, #tpu.memory_space<vmem>>, vector<1x4xf32>
    %3 = vector.shape_cast %2 : vector<1x4xf32> to vector<1x1x4xf32>
    %c0_3 = arith.constant 0 : index
    %c0_4 = arith.constant 0 : index
    %c0_5 = arith.constant 0 : index
    %c0_6 = arith.constant 0 : index
    %4 = vector.load %arg1[%c0_3, %c0_4, %c0_5, %c0_6] : memref<1x16x16x4xf32, #tpu.memory_space<vmem>>, vector<1x16x16x4xf32>
    %5 = vector.shape_cast %4 : vector<1x16x16x4xf32> to vector<16x16x4xf32>
    %6 = vector.broadcast %1 : vector<1x1x4xf32> to vector<16x16x4xf32>
    %7 = arith.mulf %5, %6 : vector<16x16x4xf32>
    %8 = vector.broadcast %3 : vector<1x1x4xf32> to vector<16x16x4xf32>
    %9 = arith.addf %7, %8 : vector<16x16x4xf32>
    %cst = arith.constant 0.000000e+00 : f32
    %10 = vector.broadcast %cst : f32 to vector<16x16x4xf32>
    %11 = arith.maximumf %9, %10 : vector<16x16x4xf32>
    %12 = arith.truncf %11 : vector<16x16x4xf32> to vector<16x16x4xbf16>
    %c0_7 = arith.constant 0 : index
    %c0_8 = arith.constant 0 : index
    %c0_9 = arith.constant 0 : index
    %c0_10 = arith.constant 0 : index
    %13 = vector.load %arg8[%c0_7, %c0_8, %c0_9, %c0_10] : memref<1x16x16x4xbf16, #tpu.memory_space<vmem>>, vector<1x16x16x4xbf16>
    %14 = vector.shape_cast %13 : vector<1x16x16x4xbf16> to vector<16x16x4xbf16>
    %15 = vector.shape_cast %12 : vector<16x16x4xbf16> to vector<1x16x16x4xbf16>
    tpu.vector_store %arg8[%c0_7, %c0_8, %c0_9, %c0_10], %15 {strides = array<i32>} : memref<1x16x16x4xbf16, #tpu.memory_space<vmem>>, vector<1x16x16x4xbf16>,
    %cst_11 = arith.constant 0.000000e+00 : bf16
    %16 = vector.broadcast %cst_11 : bf16 to vector<1x18x4xbf16>
    %cst_12 = arith.constant 0.000000e+00 : bf16
    %17 = vector.broadcast %cst_12 : bf16 to vector<18x1x4xbf16>
    %c0_13 = arith.constant 0 : index
    %c0_14 = arith.constant 0 : index
    %c0_15 = arith.constant 0 : index
    %18 = vector.load %arg9[%c0_13, %c0_14, %c0_15] : memref<18x18x4xbf16, #tpu.memory_space<vmem>>, vector<1x18x4xbf16>
    tpu.vector_store %arg9[%c0_13, %c0_14, %c0_15], %16 {strides = array<i32>} : memref<18x18x4xbf16, #tpu.memory_space<vmem>>, vector<1x18x4xbf16>,
    %c17 = arith.constant 17 : index
    %c0_16 = arith.constant 0 : index
    %c0_17 = arith.constant 0 : index
    %19 = vector.load %arg9[%c17, %c0_16, %c0_17] : memref<18x18x4xbf16, #tpu.memory_space<vmem>>, vector<1x18x4xbf16>
    tpu.vector_store %arg9[%c17, %c0_16, %c0_17], %16 {strides = array<i32>} : memref<18x18x4xbf16, #tpu.memory_space<vmem>>, vector<1x18x4xbf16>,
    %c0_18 = arith.constant 0 : index
    %c0_19 = arith.constant 0 : index
    %c0_20 = arith.constant 0 : index
    %20 = vector.load %arg9[%c0_18, %c0_19, %c0_20] : memref<18x18x4xbf16, #tpu.memory_space<vmem>>, vector<18x1x4xbf16>
    tpu.vector_store %arg9[%c0_18, %c0_19, %c0_20], %17 {strides = array<i32>} : memref<18x18x4xbf16, #tpu.memory_space<vmem>>, vector<18x1x4xbf16>,
    %c0_21 = arith.constant 0 : index
    %c17_22 = arith.constant 17 : index
    %c0_23 = arith.constant 0 : index
    %21 = vector.load %arg9[%c0_21, %c17_22, %c0_23] : memref<18x18x4xbf16, #tpu.memory_space<vmem>>, vector<18x1x4xbf16>
    tpu.vector_store %arg9[%c0_21, %c17_22, %c0_23], %17 {strides = array<i32>} : memref<18x18x4xbf16, #tpu.memory_space<vmem>>, vector<18x1x4xbf16>,
    %22 = arith.truncf %11 : vector<16x16x4xf32> to vector<16x16x4xbf16>
    %c1 = arith.constant 1 : index
    %c1_24 = arith.constant 1 : index
    %c0_25 = arith.constant 0 : index
    %23 = vector.load %arg9[%c1, %c1_24, %c0_25] : memref<18x18x4xbf16, #tpu.memory_space<vmem>>, vector<16x16x4xbf16>
    tpu.vector_store %arg9[%c1, %c1_24, %c0_25], %22 {strides = array<i32>} : memref<18x18x4xbf16, #tpu.memory_space<vmem>>, vector<16x16x4xbf16>,
    %c0_26 = arith.constant 0 : index
    %c0_27 = arith.constant 0 : index
    %c0_28 = arith.constant 0 : index
    %24 = vector.load %arg9[%c0_26, %c0_27, %c0_28] : memref<18x18x4xbf16, #tpu.memory_space<vmem>>, vector<18x18x4xbf16>
    %25 = vector.extract_strided_slice %24 {offsets = [0, 0, 0], sizes = [16, 16, 4], strides = [1, 1, 1]} : vector<18x18x4xbf16> to vector<16x16x4xbf16>
    %26 = vector.shape_cast %25 : vector<16x16x4xbf16> to vector<256x4xbf16>
    %c0_29 = arith.constant 0 : index
    %c0_30 = arith.constant 0 : index
    %c0_31 = arith.constant 0 : index
    %27 = vector.load %arg4[%c0_29, %c0_30, %c0_31] : memref<9x4x128xbf16, #tpu.memory_space<vmem>>, vector<1x4x128xbf16>
    %28 = vector.shape_cast %27 : vector<1x4x128xbf16> to vector<4x128xbf16>
    %cst_32 = arith.constant dense<0.000000e+00> : vector<256x128xf32>
    %29 = tpu.matmul %26, %28, %cst_32 {dimension_numbers = #tpu.dot_dimension_numbers<[1], [0], [0], [1], [0, 0, 1, 1], [], []>} : vector<256x4xbf16>, vector<4x128xbf16>, vector<256x128xf32> -> vector<256x128xf32>
    %30 = vector.extract_strided_slice %24 {offsets = [0, 1, 0], sizes = [16, 16, 4], strides = [1, 1, 1]} : vector<18x18x4xbf16> to vector<16x16x4xbf16>
    %31 = vector.shape_cast %30 : vector<16x16x4xbf16> to vector<256x4xbf16>
    %c1_33 = arith.constant 1 : index
    %c0_34 = arith.constant 0 : index
    %c0_35 = arith.constant 0 : index
    %32 = vector.load %arg4[%c1_33, %c0_34, %c0_35] : memref<9x4x128xbf16, #tpu.memory_space<vmem>>, vector<1x4x128xbf16>
    %33 = vector.shape_cast %32 : vector<1x4x128xbf16> to vector<4x128xbf16>
    %cst_36 = arith.constant dense<0.000000e+00> : vector<256x128xf32>
    %34 = tpu.matmul %31, %33, %cst_36 {dimension_numbers = #tpu.dot_dimension_numbers<[1], [0], [0], [1], [0, 0, 1, 1], [], []>} : vector<256x4xbf16>, vector<4x128xbf16>, vector<256x128xf32> -> vector<256x128xf32>
    %35 = arith.addf %29, %34 : vector<256x128xf32>
    %36 = vector.extract_strided_slice %24 {offsets = [0, 2, 0], sizes = [16, 16, 4], strides = [1, 1, 1]} : vector<18x18x4xbf16> to vector<16x16x4xbf16>
    %37 = vector.shape_cast %36 : vector<16x16x4xbf16> to vector<256x4xbf16>
    %c2 = arith.constant 2 : index
    %c0_37 = arith.constant 0 : index
    %c0_38 = arith.constant 0 : index
    %38 = vector.load %arg4[%c2, %c0_37, %c0_38] : memref<9x4x128xbf16, #tpu.memory_space<vmem>>, vector<1x4x128xbf16>
    %39 = vector.shape_cast %38 : vector<1x4x128xbf16> to vector<4x128xbf16>
    %cst_39 = arith.constant dense<0.000000e+00> : vector<256x128xf32>
    %40 = tpu.matmul %37, %39, %cst_39 {dimension_numbers = #tpu.dot_dimension_numbers<[1], [0], [0], [1], [0, 0, 1, 1], [], []>} : vector<256x4xbf16>, vector<4x128xbf16>, vector<256x128xf32> -> vector<256x128xf32>
    %41 = arith.addf %35, %40 : vector<256x128xf32>
    %42 = vector.extract_strided_slice %24 {offsets = [1, 0, 0], sizes = [16, 16, 4], strides = [1, 1, 1]} : vector<18x18x4xbf16> to vector<16x16x4xbf16>
    %43 = vector.shape_cast %42 : vector<16x16x4xbf16> to vector<256x4xbf16>
    %c3 = arith.constant 3 : index
    %c0_40 = arith.constant 0 : index
    %c0_41 = arith.constant 0 : index
    %44 = vector.load %arg4[%c3, %c0_40, %c0_41] : memref<9x4x128xbf16, #tpu.memory_space<vmem>>, vector<1x4x128xbf16>
    %45 = vector.shape_cast %44 : vector<1x4x128xbf16> to vector<4x128xbf16>
    %cst_42 = arith.constant dense<0.000000e+00> : vector<256x128xf32>
    %46 = tpu.matmul %43, %45, %cst_42 {dimension_numbers = #tpu.dot_dimension_numbers<[1], [0], [0], [1], [0, 0, 1, 1], [], []>} : vector<256x4xbf16>, vector<4x128xbf16>, vector<256x128xf32> -> vector<256x128xf32>
    %47 = arith.addf %41, %46 : vector<256x128xf32>
    %48 = vector.extract_strided_slice %24 {offsets = [1, 1, 0], sizes = [16, 16, 4], strides = [1, 1, 1]} : vector<18x18x4xbf16> to vector<16x16x4xbf16>
    %49 = vector.shape_cast %48 : vector<16x16x4xbf16> to vector<256x4xbf16>
    %c4 = arith.constant 4 : index
    %c0_43 = arith.constant 0 : index
    %c0_44 = arith.constant 0 : index
    %50 = vector.load %arg4[%c4, %c0_43, %c0_44] : memref<9x4x128xbf16, #tpu.memory_space<vmem>>, vector<1x4x128xbf16>
    %51 = vector.shape_cast %50 : vector<1x4x128xbf16> to vector<4x128xbf16>
    %cst_45 = arith.constant dense<0.000000e+00> : vector<256x128xf32>
    %52 = tpu.matmul %49, %51, %cst_45 {dimension_numbers = #tpu.dot_dimension_numbers<[1], [0], [0], [1], [0, 0, 1, 1], [], []>} : vector<256x4xbf16>, vector<4x128xbf16>, vector<256x128xf32> -> vector<256x128xf32>
    %53 = arith.addf %47, %52 : vector<256x128xf32>
    %54 = vector.extract_strided_slice %24 {offsets = [1, 2, 0], sizes = [16, 16, 4], strides = [1, 1, 1]} : vector<18x18x4xbf16> to vector<16x16x4xbf16>
    %55 = vector.shape_cast %54 : vector<16x16x4xbf16> to vector<256x4xbf16>
    %c5 = arith.constant 5 : index
    %c0_46 = arith.constant 0 : index
    %c0_47 = arith.constant 0 : index
    %56 = vector.load %arg4[%c5, %c0_46, %c0_47] : memref<9x4x128xbf16, #tpu.memory_space<vmem>>, vector<1x4x128xbf16>
    %57 = vector.shape_cast %56 : vector<1x4x128xbf16> to vector<4x128xbf16>
    %cst_48 = arith.constant dense<0.000000e+00> : vector<256x128xf32>
    %58 = tpu.matmul %55, %57, %cst_48 {dimension_numbers = #tpu.dot_dimension_numbers<[1], [0], [0], [1], [0, 0, 1, 1], [], []>} : vector<256x4xbf16>, vector<4x128xbf16>, vector<256x128xf32> -> vector<256x128xf32>
    %59 = arith.addf %53, %58 : vector<256x128xf32>
    %60 = vector.extract_strided_slice %24 {offsets = [2, 0, 0], sizes = [16, 16, 4], strides = [1, 1, 1]} : vector<18x18x4xbf16> to vector<16x16x4xbf16>
    %61 = vector.shape_cast %60 : vector<16x16x4xbf16> to vector<256x4xbf16>
    %c6 = arith.constant 6 : index
    %c0_49 = arith.constant 0 : index
    %c0_50 = arith.constant 0 : index
    %62 = vector.load %arg4[%c6, %c0_49, %c0_50] : memref<9x4x128xbf16, #tpu.memory_space<vmem>>, vector<1x4x128xbf16>
    %63 = vector.shape_cast %62 : vector<1x4x128xbf16> to vector<4x128xbf16>
    %cst_51 = arith.constant dense<0.000000e+00> : vector<256x128xf32>
    %64 = tpu.matmul %61, %63, %cst_51 {dimension_numbers = #tpu.dot_dimension_numbers<[1], [0], [0], [1], [0, 0, 1, 1], [], []>} : vector<256x4xbf16>, vector<4x128xbf16>, vector<256x128xf32> -> vector<256x128xf32>
    %65 = arith.addf %59, %64 : vector<256x128xf32>
    %66 = vector.extract_strided_slice %24 {offsets = [2, 1, 0], sizes = [16, 16, 4], strides = [1, 1, 1]} : vector<18x18x4xbf16> to vector<16x16x4xbf16>
    %67 = vector.shape_cast %66 : vector<16x16x4xbf16> to vector<256x4xbf16>
    %c7 = arith.constant 7 : index
    %c0_52 = arith.constant 0 : index
    %c0_53 = arith.constant 0 : index
    %68 = vector.load %arg4[%c7, %c0_52, %c0_53] : memref<9x4x128xbf16, #tpu.memory_space<vmem>>, vector<1x4x128xbf16>
    %69 = vector.shape_cast %68 : vector<1x4x128xbf16> to vector<4x128xbf16>
    %cst_54 = arith.constant dense<0.000000e+00> : vector<256x128xf32>
    %70 = tpu.matmul %67, %69, %cst_54 {dimension_numbers = #tpu.dot_dimension_numbers<[1], [0], [0], [1], [0, 0, 1, 1], [], []>} : vector<256x4xbf16>, vector<4x128xbf16>, vector<256x128xf32> -> vector<256x128xf32>
    %71 = arith.addf %65, %70 : vector<256x128xf32>
    %72 = vector.extract_strided_slice %24 {offsets = [2, 2, 0], sizes = [16, 16, 4], strides = [1, 1, 1]} : vector<18x18x4xbf16> to vector<16x16x4xbf16>
    %73 = vector.shape_cast %72 : vector<16x16x4xbf16> to vector<256x4xbf16>
    %c8 = arith.constant 8 : index
    %c0_55 = arith.constant 0 : index
    %c0_56 = arith.constant 0 : index
    %74 = vector.load %arg4[%c8, %c0_55, %c0_56] : memref<9x4x128xbf16, #tpu.memory_space<vmem>>, vector<1x4x128xbf16>
    %75 = vector.shape_cast %74 : vector<1x4x128xbf16> to vector<4x128xbf16>
    %cst_57 = arith.constant dense<0.000000e+00> : vector<256x128xf32>
    %76 = tpu.matmul %73, %75, %cst_57 {dimension_numbers = #tpu.dot_dimension_numbers<[1], [0], [0], [1], [0, 0, 1, 1], [], []>} : vector<256x4xbf16>, vector<4x128xbf16>, vector<256x128xf32> -> vector<256x128xf32>
    %77 = arith.addf %71, %76 : vector<256x128xf32>
    %c0_58 = arith.constant 0 : index
    %c0_59 = arith.constant 0 : index
    %78 = vector.load %arg5[%c0_58, %c0_59] : memref<1x128xf32, #tpu.memory_space<vmem>>, vector<1x128xf32>
    %79 = vector.broadcast %78 : vector<1x128xf32> to vector<256x128xf32>
    %80 = arith.mulf %77, %79 : vector<256x128xf32>
    %c0_60 = arith.constant 0 : index
    %c0_61 = arith.constant 0 : index
    %81 = vector.load %arg6[%c0_60, %c0_61] : memref<1x128xf32, #tpu.memory_space<vmem>>, vector<1x128xf32>
    %82 = vector.broadcast %81 : vector<1x128xf32> to vector<256x128xf32>
    %83 = arith.addf %80, %82 : vector<256x128xf32>
    %cst_62 = arith.constant 0.000000e+00 : f32
    %84 = vector.broadcast %cst_62 : f32 to vector<256x128xf32>
    %85 = arith.maximumf %83, %84 : vector<256x128xf32>
    %86 = vector.shape_cast %85 : vector<256x128xf32> to vector<16x16x128xf32>
    %87 = arith.truncf %86 : vector<16x16x128xf32> to vector<16x16x128xbf16>
    %c0_63 = arith.constant 0 : index
    %c0_64 = arith.constant 0 : index
    %c0_65 = arith.constant 0 : index
    %c0_66 = arith.constant 0 : index
    %88 = vector.load %arg7[%c0_63, %c0_64, %c0_65, %c0_66] : memref<1x16x16x128xbf16, #tpu.memory_space<vmem>>, vector<1x16x16x128xbf16>
    %89 = vector.shape_cast %88 : vector<1x16x16x128xbf16> to vector<16x16x128xbf16>
    %90 = vector.shape_cast %87 : vector<16x16x128xbf16> to vector<1x16x16x128xbf16>
    tpu.vector_store %arg7[%c0_63, %c0_64, %c0_65, %c0_66], %90 {strides = array<i32>} : memref<1x16x16x128xbf16, #tpu.memory_space<vmem>>, vector<1x16x16x128xbf16>,
    return
  }
  func.func @transform_0(%arg0: i32) -> (i32, i32, i32, i32) {
    %c0_i32 = arith.constant 0 : i32
    %c0_i32_0 = arith.constant 0 : i32
    %c0_i32_1 = arith.constant 0 : i32
    %c0_i32_2 = arith.constant 0 : i32
    return %arg0, %c0_i32, %c0_i32_0, %c0_i32_1 : i32, i32, i32, i32
  }
  func.func @transform_1(%arg0: i32) -> (i32, i32) {
    %c0_i32 = arith.constant 0 : i32
    %c0_i32_0 = arith.constant 0 : i32
    %c0_i32_1 = arith.constant 0 : i32
    return %c0_i32, %c0_i32_0 : i32, i32
  }
  func.func @transform_2(%arg0: i32) -> (i32, i32) {
    %c0_i32 = arith.constant 0 : i32
    %c0_i32_0 = arith.constant 0 : i32
    %c0_i32_1 = arith.constant 0 : i32
    return %c0_i32, %c0_i32_0 : i32, i32
  }
  func.func @transform_3(%arg0: i32) -> (i32, i32, i32) {
    %c0_i32 = arith.constant 0 : i32
    %c0_i32_0 = arith.constant 0 : i32
    %c0_i32_1 = arith.constant 0 : i32
    %c0_i32_2 = arith.constant 0 : i32
    return %c0_i32, %c0_i32_0, %c0_i32_1 : i32, i32, i32
  }
  func.func @transform_4(%arg0: i32) -> (i32, i32) {
    %c0_i32 = arith.constant 0 : i32
    %c0_i32_0 = arith.constant 0 : i32
    %c0_i32_1 = arith.constant 0 : i32
    return %c0_i32, %c0_i32_0 : i32, i32
  }
  func.func @transform_5(%arg0: i32) -> (i32, i32) {
    %c0_i32 = arith.constant 0 : i32
    %c0_i32_0 = arith.constant 0 : i32
    %c0_i32_1 = arith.constant 0 : i32
    return %c0_i32, %c0_i32_0 : i32, i32
  }
  func.func @transform_6(%arg0: i32) -> (i32, i32, i32, i32) {
    %c0_i32 = arith.constant 0 : i32
    %c0_i32_0 = arith.constant 0 : i32
    %c0_i32_1 = arith.constant 0 : i32
    %c0_i32_2 = arith.constant 0 : i32
    return %arg0, %c0_i32, %c0_i32_0, %c0_i32_1 : i32, i32, i32, i32
  }
  func.func @transform_7(%arg0: i32) -> (i32, i32, i32, i32) {
    %c0_i32 = arith.constant 0 : i32
    %c0_i32_0 = arith.constant 0 : i32
    %c0_i32_1 = arith.constant 0 : i32
    %c0_i32_2 = arith.constant 0 : i32
    return %arg0, %c0_i32, %c0_i32_0, %c0_i32_1 : i32, i32, i32, i32
  }
}

</mosaic_0001>

<bundles_post_ra>
// kernel: tpu_custom_call.1
= control target key start
LH: loop header
LB: loop body
LE: loop exit
PB: predicated region body
PF: predicated region fallthrough
CT: control target
= control target key end

     0   :  { %6 = vsyncpa [#allocation3], 0  ;;  %s440_s0 = inlined_call_operand.hbm [shape: f32[8,128], index: 0, kind: input, shape index: {}]   ;;  %s441_s1 = inlined_call_operand.hbm [shape: f32[16,128], index: 1, kind: output, shape index: {}]  }
   0x1   :  { %7 = vsyncpa [#allocation4], 0 }
   0x2   :  { %9 = vsyncpa [#allocation4 + $0x1], 0  ;;  %s356_s6 = smov 0   ;;  %s358_s7 = smov 0  }
   0x3   :  { %s360_s8 = smov 0   ;;  %s362_s9 = smov 0  }
   0x4 LB: > { %s377_s10 = sadd.s32 4294967295, %s343_s9   ;;  %s187_s11 = sadd.s32 4294967294, %s343_s9   ;;  %s343_s9 = sphi %s362_s9, %s447_s9   ;;  %s339_s8 = sphi %s360_s8, %s446_s8   ;;  %s335_s7 = sphi %s358_s7, %s445_s7   ;;  %s331_s6 = sphi %s356_s6, %s444_s6  }
   0x5   : > { %s381_s12 = sadd.s32 1, %s343_s9   ;;  %s43_s13 = sadd.s32 1, %s339_s8 }
   0x6   : > { %s40_s14 = ssub.s32 %s343_s9, %s381_s12  ;;  %p53_p0 = scmp.ne.s32.totalorder %s339_s8, %s335_s7 }
   0x7   : > { %p41_p1 = scmp.eq.s32.totalorder %s40_s14, 0  ;;  %p54_p2 = scmp.eq.s32.totalorder %s377_s10, 1 }
   0x8   : > { %p59_p3 = scmp.ne.s32.totalorder %s335_s7, %s331_s6  ;;  %p60_p4 = scmp.eq.s32.totalorder %s187_s11, 1 }
   0x9   : > { %s392_s15 = scalar_select %p41_p1, %s339_s8, %s43_s13  }
   0xa   : > { %p394_p5 = por %p54_p2, %p53_p0  ;;  %p398_p6 = por %p60_p4, %p59_p3 }
   0xb   : > { %p188_p7 = scmp.ge.s32.totalorder %s343_s9, 1  ;;  %p67_p8 = scmp.lt.s32.totalorder %s343_s9, 3 }
   0xc   : > { %p211_p9 = scmp.eq.s32.totalorder %s377_s10, 0  ;;  %s79_s20 = sshll.u32 %s440_s0, 4  ;;  %s80_s20 = int_to_ptr.hbm [resolvable:$true] %s79_s20 }
   0xd   : > { %p68_p10 = pnand %p188_p7, %p67_p8  ;;  %s345_s21 = smov [#allocation2]  }
   0xe   : > { %s81_s22 = sshll.u32 %s345_s21, 4  ;;  %s82_s22 = int_to_ptr.vmem [resolvable:$true] %s81_s22 }
   0xf   : > { %p203_p11 = pneg %p68_p10  ;;  %94 = sbr.rel (%p68_p10) target bundleno = 37 (0x25), region = 24 }
  0x11   : > { %p204_p12 = pnand %p211_p9, %p203_p11 }
  0x13   : > { %206 = dma.hbm_to_vmem [thread:$0]  (!%p204_p12), %s80_s20, 128, %s82_s22, [#allocation3]  }
  0x14   : > { %322 = dma.done.wait (%p211_p9), [#allocation3], 128  }
  0x15   : > { %324 = vsyncadd (%p211_p9), [#allocation3], 4294967168  ;;  %s107_s23 = sand.u32 1, %s335_s7   ;;  %s194_s24 = sshll.u32 %s377_s10, 3  ;;  %v110_v0 = vld [vmem:[#allocation2] sm:$0xff] }
  0x16   : > { %s192_s25 = sshll.u32 %s107_s23, 3  ;;  %s123_s28 = scalar_lea.hbm %s441_s1, %s194_s24 }
  0x17   : > { %s109_s29 = scalar_lea.vmem [#allocation5], %s192_s25  ;;  %s127_s2 = sshll.u32 %s123_s28, 4  ;;  %s128_s2 = int_to_ptr.hbm [resolvable:$true] %s127_s2 }
  0x18   : > { %s125_s30 = sshll.u32 %s109_s29, 4  ;;  %111 = vst [vmem:[%s109_s29] sm:$0xff] %v110_v0  ;;  %s113_s3 = scalar_lea.sflag [#allocation4], %s107_s23  ;;  %s126_s30 = int_to_ptr.vmem [resolvable:$true] %s125_s30 }
  0x19   : > { %s291_s4 = sshra.s32 %s128_s2, 4  ;;  %s297_s13 = scalar_lea.hbm %s441_s1, 16  ;;  %s292_s4 = int_to_ptr.hbm [resolvable:$true] %s291_s4 }
  0x1a   : > { %s293_s5 = scalar_lea.hbm %s292_s4, 8  ;;  %p298_p2 = scmp.lt.s32.totalorder %s292_s4, %s441_s1 }
  0x1b   : > { %p294_p13 = scmp.ne.s32.totalorder %s292_s4, %s293_s5  ;;  %p299_p3 = scmp.lt.s32.totalorder %s297_s13, %s293_s5 }
  0x1d   : > { %p295_p0 = pnand %p294_p13, %p394_p5  ;;  %p300_p4 = por %p299_p3, %p298_p2 }
  0x1f   : > { %p296_p1 = pneg %p295_p0 }
  0x21   : > { %p301_p7 = pnand %p300_p4, %p296_p1 }
  0x23   : > { %304 = shalt.err (!%p301_p7)
}
  0x24   : > { %201 = dma.vmem_to_hbm [thread:$0]  (%p394_p5), %s126_s30, 128, %s128_s2, %s113_s3  }
  0x25 PF: > { %p213_p8 = scmp.ge.s32.totalorder %s343_s9, 2  ;;  %s139_s19 = sand.u32 1, %s331_s6  }
  0x26   : > { %s140_s20 = scalar_lea.sflag [#allocation4], %s139_s19 }
  0x27   : > { %p208_p9 = pnand %p213_p8, %p398_p6 }
  0x29   : > { %p209_p10 = pneg %p208_p9 }
  0x2b   : > { %326 = dma.done.wait (%p209_p10), %s140_s20, 128  }
  0x2c   : > { %328 = vsyncadd (%p209_p10), %s140_s20, 4294967168  ;;  %p12_p11 = scmp.ge.s32.totalorder %s381_s12, 4   ;;  %s444_s6 = smov %s335_s7 }
  0x2d   : > { %s445_s7 = smov %s339_s8  ;;  %s446_s8 = smov %s392_s15 }
  0x2e   : > { %s447_s9 = smov %s381_s12  ;;  %14 = sbr.rel (!%p12_p11) target bundleno = 4 (0x4), region = 61 }
  0x33   :  { %146 = vsyncpa [#allocation3], 1 }
  0x34   :  { %148 = vsyncpa [#allocation3 + $0x1], 1 }
  0x35   :  { %149 = vsyncpa [#allocation4], 1 }
  0x36   :  { %151 = vsyncpa [#allocation4 + $0x1], 1 }

// kernel: tpu_custom_call.1
= control target key start
LH: loop header
LB: loop body
LE: loop exit
PB: predicated region body
PF: predicated region fallthrough
CT: control target
= control target key end

     0   :  { %13 = vsyncpa [#allocation4], 0  ;;  %s5494_s0 = inlined_call_operand.vmem [shape: f32[2,16,16,4], index: 0, kind: input, shape index: {}]   ;;  %s5495_s1 = inlined_call_operand.vmem [shape: f32[1,4], index: 1, kind: input, shape index: {}]   ;;  %s5496_s2 = inlined_call_operand.vmem [shape: f32[1,4], index: 2, kind: input, shape index: {}]   ;;  %s5497_s3 = inlined_call_operand.vmem [shape: bf16[9,4,128], index: 3, kind: input, shape index: {}]   ;;  %s5498_s4 = inlined_call_operand.vmem [shape: f32[1,128], index: 4, kind: input, shape index: {}]   ;;  %s5499_s5 = inlined_call_operand.vmem [shape: f32[1,128], index: 5, kind: input, shape index: {}]   ;;  %s5500_s6 = inlined_call_operand.hbm [shape: bf16[2,16,16,128], index: 6, kind: output, shape index: {0}]   ;;  %s5501_s7 = inlined_call_operand.vmem [shape: bf16[2,16,16,4], index: 7, kind: output, shape index: {1}]  }
   0x1   :  { %15 = vsyncpa [#allocation4 + $0x1], 0  ;;  %s3956_s24 = smov 0   ;;  %s3958_s25 = smov 0  }
   0x2   :  { %s3960_s26 = smov 0   ;;  %s3962_s27 = smov 0  }
   0x3 LB: > { %s3977_s28 = sadd.s32 4294967295, %s3911_s27   ;;  %s3396_s29 = sadd.s32 4294967294, %s3911_s27   ;;  %s3911_s27 = sphi %s3962_s27, %s5641_s27   ;;  %s3907_s26 = sphi %s3960_s26, %s5640_s26   ;;  %s3903_s25 = sphi %s3958_s25, %s5639_s25   ;;  %s3899_s24 = sphi %s3956_s24, %s5638_s24  }
   0x4   : > { %s3981_s30 = sadd.s32 1, %s3911_s27   ;;  %s159_s8 = sadd.s32 1, %s3907_s26 }
   0x5   : > { %s156_s9 = ssub.s32 %s3911_s27, %s3981_s30  ;;  %p169_p0 = scmp.ne.s32.totalorder %s3907_s26, %s3903_s25 }
   0x6   : > { %p157_p1 = scmp.eq.s32.totalorder %s156_s9, 0  ;;  %p170_p2 = scmp.eq.s32.totalorder %s3977_s28, 1 }
   0x7   : > { %p175_p3 = scmp.ne.s32.totalorder %s3903_s25, %s3899_s24  ;;  %p176_p4 = scmp.eq.s32.totalorder %s3396_s29, 1 }
   0x8   : > { %s3992_s10 = scalar_select %p157_p1, %s3907_s26, %s159_s8  }
   0x9   : > { %p3994_p5 = por %p170_p2, %p169_p0  ;;  %p3998_p6 = por %p176_p4, %p175_p3 }
   0xa   : > { %p3399_p7 = scmp.ge.s32.totalorder %s3911_s27, 1  ;;  %p243_p8 = scmp.lt.s32.totalorder %s3911_s27, 3 }
   0xc   : > { %p244_p9 = pnand %p3399_p7, %p243_p8 }
   0xe   : > { %247 = sbr.rel (%p244_p9) target bundleno = 869 (0x365), region = 44 }
  0x13   : > { %v3405_v0 = vld [vmem:[%s5497_s3 + $0x2] sm:$0x3]  ;;  %vm1591_vm0 = vcmask 1041408   ;;  %p280_p10 = scmp.lt.s32.totalorder %s3977_s28, 1  ;;  %v4015_v2 = vld [vmem:[%s5495_s1] ss:$0 sm:$0xff] }
  0x14   : > { %v1593_v1 = vsel %vm1591_vm0, %v3405_v0, 0  ;;  %vm494_vm1 = vcmask 24576   ;;  %vm501_vm2 = vsmask.f32 256  ;;  %v515_v4 = vld [vmem:[#allocation2 + $0x30] sm:$0x1] }
  0x15   : > { %3768 = vmatpush.bf16.msra.mxu1 %v1593_v1  ;;  %3769 = vmatpush.bf16.msra.mxu2 %v1593_v1  ;;  %s4010_s15 = scalar_select %p280_p10, %s3977_s28, 1  ;;  %vm4019_vm3 = vmand %vm494_vm1, %vm501_vm2  ;;  %vm557_vm4 = vsmask.f32 7938  ;;  %v571_v5 = vld [vmem:[#allocation2 + $0x38] sm:$0x1]  ;;  %vm459_vm5 = vcmask 27648  }
  0x16   : > { %3770 = vmatpush.bf16.msra.mxu3 %v1593_v1  ;;  %1602 = vmatpush.bf16.msra.mxu0 %v1593_v1  ;;  %v516_v6 = vsel %vm4019_vm3, 0, %v515_v4  ;;  %vm4028_vm6 = vmand %vm494_vm1, %vm557_vm4  ;;  %v5538_v7 = vmov 0  ;;  %v4040_v8 = vld [vmem:[%s5496_s2] ss:$0 sm:$0xff]  ;;  %v3913_v16 = vmov 0   ;;  %vm1542_vm12 = vcmask 31744  }
  0x17   : > { %s3652_s18 = sshll.u32 %s4010_s15, 8  ;;  %v5539_v7 = vsel %vm4028_vm6, 4294967295, %v5538_v7  ;;  %517 = vst [vmem:[#allocation2 + $0x30] sm:$0x1] %v516_v6  ;;  %v572_v9 = vsel %vm4028_vm6, 0, %v571_v5  ;;  %s3653_s29 = sshll.u32 %s4010_s15, 7  ;;  %vm4098_vm9 = vmand %vm459_vm5, %vm557_vm4 }
  0x18   : > { %5540 = vst [vmem:[#allocation6_spill] sm:$0xff] %v5539_v7  ;;  %s4035_s21 = scalar_lea.vmem %s5494_s0, %s3652_s18  ;;  %v527_v19 = vld [vmem:[#allocation2 + $0x60] sm:$0x1]  ;;  %v583_v20 = vld [vmem:[#allocation2 + $0x68] sm:$0x1]  ;;  %s4072_s13 = scalar_lea.vmem %s5501_s7, %s3653_s29  ;;  %vm1920_vm14 = vcmask 1042432  }
  0x19   : > { %v299_v10 = vld [vmem:[%s4035_s21 + $0x30] sm:$0xff]  ;;  %v300_v11 = vld [vmem:[%s4035_s21 + $0x38] sm:$0xff]  ;;  %573 = vst [vmem:[#allocation2 + $0x38] sm:$0x1] %v572_v9  ;;  %v528_v24 = vsel %vm4019_vm3, 0, %v527_v19  ;;  %v584_v25 = vsel %vm4028_vm6, 0, %v583_v20 }
  0x1a   : > { %v334_v12 = vmul.f32 %v4015_v2, %v299_v10  ;;  %v335_v13 = vmul.f32 %v4015_v2, %v300_v11  ;;  %v307_v14 = vld [vmem:[%s4035_s21 + $0x70] sm:$0xff]  ;;  %v308_v15 = vld [vmem:[%s4035_s21 + $0x78] sm:$0xff]  ;;  %492 = vst.msk [vmem:[#allocation2] sm:$0xf] %vm459_vm5, %v3913_v16  ;;  %v301_v35 = vld [vmem:[%s4035_s21 + $0x40] sm:$0xff]  ;;  %vm1921_vm15 = vcmask 1046532  }
  0x1b   : > { %v342_v17 = vmul.f32 %v4015_v2, %v307_v14  ;;  %v343_v18 = vmul.f32 %v4015_v2, %v308_v15  ;;  %v315_v21 = vld [vmem:[%s4035_s21 + $0xb0] sm:$0xff]  ;;  %529 = vst [vmem:[#allocation2 + $0x60] sm:$0x1] %v528_v24  ;;  %v316_v29 = vld [vmem:[%s4035_s21 + $0xb8] sm:$0xff]  ;;  %vm613_vm7 = vsmask.f32 4368  ;;  %v336_v47 = vmul.f32 %v4015_v2, %v301_v35 }
  0x1c   : > { %v369_v22 = vadd.f32 %v4040_v8, %v334_v12  ;;  %v370_v23 = vadd.f32 %v4040_v8, %v335_v13  ;;  %v539_v26 = vld [vmem:[#allocation2 + $0x90] sm:$0x1]  ;;  %v350_v30 = vmul.f32 %v4015_v2, %v315_v21  ;;  %v595_v31 = vld [vmem:[#allocation2 + $0x98] sm:$0x1]  ;;  %585 = vst [vmem:[#allocation2 + $0x68] sm:$0x1] %v584_v25  ;;  %v351_v41 = vmul.f32 %v4015_v2, %v316_v29  ;;  %vm4088_vm8 = vmor %vm501_vm2, %vm613_vm7 }
  0x1d   : > { %v377_v27 = vadd.f32 %v4040_v8, %v342_v17  ;;  %v378_v28 = vadd.f32 %v4040_v8, %v343_v18  ;;  %v540_v34 = vsel %vm4019_vm3, 0, %v539_v26  ;;  %v596_v42 = vsel %vm4028_vm6, 0, %v595_v31  ;;  %493 = vst.msk [vmem:[#allocation2 + $0x4] sm:$0xf] %vm459_vm5, %v3913_v16  ;;  %v302_v46 = vld [vmem:[%s4035_s21 + $0x48] sm:$0xff]  ;;  %v309_v63 = vld [vmem:[%s4035_s21 + $0x80] sm:$0xff] }
  0x1e   : > { %v401_v32 = vmax.f32 %v369_v22, 0.0  ;;  %v402_v33 = vmax.f32 %v370_v23, 0.0  ;;  %v385_v38 = vadd.f32 %v4040_v8, %v350_v30  ;;  %541 = vst [vmem:[#allocation2 + $0x90] sm:$0x1] %v540_v34  ;;  %v959_v52 = vld [vmem:[#allocation2 + $0x30] sm:$0xf]  ;;  %v386_v61 = vadd.f32 %v4040_v8, %v351_v41 }
  0x1f   : > { %v409_v36 = vmax.f32 %v377_v27, 0.0  ;;  %v410_v37 = vmax.f32 %v378_v28, 0.0  ;;  %597 = vst [vmem:[#allocation2 + $0x98] sm:$0x1] %v596_v42  ;;  %v337_v6 = vmul.f32 %v4015_v2, %v302_v46  ;;  %v4108_v9 = vadd.f32 %v4040_v8, %v336_v47  ;;  %v310_v26 = vld [vmem:[%s4035_s21 + $0x88] sm:$0xff]  ;;  %s270_s16 = sand.u32 1, %s3903_s25  }
  0x20   : > { %v433_v39 = vpack.c.bf16 %v401_v32, %v401_v32  ;;  %v434_v40 = vpack.c.bf16 %v402_v33, %v402_v33  ;;  %v417_v45 = vmax.f32 %v385_v38, 0.0  ;;  %v963_v60 = vld [vmem:[#allocation2 + $0x38] sm:$0x1]  ;;  %495 = vst.msk [vmem:[#allocation2 + $0x8] sm:$0x1] %vm494_vm1, %v3913_v16  ;;  %v418_v25 = vmax.f32 %v386_v61, 0.0 }
  0x21   : > { %v441_v43 = vpack.c.bf16 %v409_v36, %v409_v36  ;;  %v442_v44 = vpack.c.bf16 %v410_v37, %v410_v37  ;;  %v4104_v5 = vld [vmem:[#allocation2] sm:$0x1]  ;;  %497 = vst.msk [vmem:[#allocation2 + $0xcc] sm:$0xf] %vm459_vm5, %v3913_v16  ;;  %v344_v30 = vmul.f32 %v4015_v2, %v309_v63  ;;  %vm1105_vm10 = vsmask.f32 3328 }
  0x22   : > { %466 = vst.msk [vmem:[%s4072_s13 + $0x18] sm:$0xf] %vm459_vm5, %v433_v39  ;;  %v667_v48 = vshrl.u32 %v433_v39, 16  ;;  %v670_v49 = vshll.u32 %v433_v39, 16  ;;  %v675_v50 = vshrl.u32 %v434_v40, 16  ;;  %v678_v51 = vshll.u32 %v434_v40, 16 }
  0x23   : > { %467 = vst.msk [vmem:[%s4072_s13 + $0x1c] sm:$0xf] %vm459_vm5, %v434_v40  ;;  %v735_v53 = vshrl.u32 %v441_v43, 16  ;;  %v738_v54 = vshll.u32 %v441_v43, 16  ;;  %v743_v55 = vshrl.u32 %v442_v44, 16  ;;  %v746_v56 = vshll.u32 %v442_v44, 16 }
  0x24   : > { %v669_v58 = vrot.slane %v667_v48, 7  ;;  %v677_v59 = vrot.slane %v675_v50, 7  ;;  %474 = vst.msk [vmem:[%s4072_s13 + $0x38] sm:$0xf] %vm459_vm5, %v441_v43  ;;  %v449_v62 = vpack.c.bf16 %v417_v45, %v417_v45  ;;  %v987_v14 = vld [vmem:[#allocation2 + $0x60] sm:$0xf]  ;;  %v450_v31 = vpack.c.bf16 %v418_v25, %v418_v25 }
  0x25   : > { %475 = vst.msk [vmem:[%s4072_s13 + $0x3c] sm:$0xf] %vm459_vm5, %v442_v44  ;;  %v737_v1 = vrot.slane %v735_v53, 7  ;;  %v745_v4 = vrot.slane %v743_v55, 7  ;;  %v1051_v20 = vld [vmem:[#allocation2 + $0x4] sm:$0xf]  ;;  %v345_v40 = vmul.f32 %v4015_v2, %v310_v26  ;;  %v4149_v55 = vadd.f32 %v4040_v8, %v337_v6 }
  0x26   : > { %v672_v10 = vor.u32 %v670_v49, %v669_v58  ;;  %v673_v11 = vrot.slane %v669_v58, 4  ;;  %v680_v12 = vor.u32 %v678_v51, %v677_v59  ;;  %v682_v13 = vrot.slane %v677_v59, 4  ;;  %482 = vst.msk [vmem:[%s4072_s13 + $0x58] sm:$0xf] %vm459_vm5, %v449_v62  ;;  %v991_v24 = vld [vmem:[#allocation2 + $0x68] sm:$0x1] }
  0x27   : > { %v740_v15 = vor.u32 %v738_v54, %v737_v1  ;;  %v741_v17 = vrot.slane %v737_v1, 4  ;;  %v748_v18 = vor.u32 %v746_v56, %v745_v4  ;;  %v750_v19 = vrot.slane %v745_v4, 4  ;;  %v1015_v33 = vld [vmem:[#allocation2 + $0x90] sm:$0xf]  ;;  %v3518_v38 = vld [vmem:[%s5497_s3 + $0x4] sm:$0x3] }
  0x28   : > { %v681_v21 = vsel %vm4088_vm8, %v673_v11, %v680_v12  ;;  %v960_v22 = vsel %vm4098_vm9, %v672_v10, %v959_v52  ;;  %v964_v23 = vsel %vm4019_vm3, %v682_v13, %v963_v60  ;;  %v803_v29 = vshrl.u32 %v449_v62, 16  ;;  %v317_v45 = vld [vmem:[%s4035_s21 + $0xc0] sm:$0xff]  ;;  %v318_v46 = vld [vmem:[%s4035_s21 + $0xc8] sm:$0xff]  ;;  %v1019_v52 = vld [vmem:[#allocation2 + $0x98] sm:$0x1]  ;;  %s3400_s17 = sshll.u32 %s270_s16, 7 }
  0x29   : > { %961 = vst [vmem:[#allocation2 + $0x30] sm:$0xf] %v960_v22  ;;  %v749_v27 = vsel %vm4088_vm8, %v741_v17, %v748_v18  ;;  %v988_v28 = vsel %vm4098_vm9, %v740_v15, %v987_v14  ;;  %v806_v32 = vshll.u32 %v449_v62, 16  ;;  %v504_v34 = vsel %vm4019_vm3, 0, %v4104_v5  ;;  %v3535_v50 = vld [vmem:[%s5497_s3 + $0x6] sm:$0x3] }
  0x2a   : > { %962 = vst.msk [vmem:[#allocation2 + $0x34] sm:$0xf] %vm459_vm5, %v681_v21  ;;  %v1118_v35 = vshll.u32 %v1051_v20, 16  ;;  %vm1106_vm11 = vsmask.f32 7440  ;;  %v992_v36 = vsel %vm4019_vm3, %v750_v19, %v991_v24  ;;  %v805_v37 = vrot.slane %v803_v29, 7 }
  0x2b   : > { %965 = vst [vmem:[#allocation2 + $0x38] sm:$0x1] %v964_v23  ;;  %v1122_v39 = vshrl.u32 %v1051_v20, 16  ;;  %v811_v41 = vshrl.u32 %v450_v31, 16  ;;  %v814_v42 = vshll.u32 %v450_v31, 16  ;;  %v2134_v43 = vsel %vm1591_vm0, %v3518_v38, 0  ;;  %vm4181_vm13 = vmor %vm1105_vm10, %vm1106_vm11 }
  0x2c   : > { %989 = vst [vmem:[#allocation2 + $0x60] sm:$0xf] %v988_v28  ;;  %v4139_v44 = vrot.slane %v1118_v35, 5  ;;  %v808_v47 = vor.u32 %v806_v32, %v805_v37  ;;  %v809_v48 = vrot.slane %v805_v37, 4  ;;  %2143 = vmatpush.bf16.msrb.mxu2 %v2134_v43  ;;  %v559_v53 = vld [vmem:[#allocation2 + $0x8] sm:$0x1]  ;;  %v4162_v61 = vadd.f32 %v4040_v8, %v344_v30 }
  0x2d   : > { %990 = vst.msk [vmem:[#allocation2 + $0x64] sm:$0xf] %vm459_vm5, %v749_v27  ;;  %v1124_v49 = vrot.slane %v1122_v39, 4  ;;  %v813_v51 = vrot.slane %v811_v41, 7  ;;  %v2268_v54 = vsel %vm1591_vm0, %v3535_v50, 0  ;;  %v560_v58 = vsel %vm4028_vm6, 0, %v559_v53 }
  0x2e   : > { %993 = vst [vmem:[#allocation2 + $0x68] sm:$0x1] %v992_v36  ;;  %v1016_v56 = vsel %vm4098_vm9, %v808_v47, %v1015_v33  ;;  %2277 = vmatpush.bf16.msrb.mxu3 %v2268_v54  ;;  %v1104_v59 = vld [vmem:[%s5497_s3] sm:$0x3]  ;;  %v403_v60 = vmax.f32 %v4108_v9, 0.0  ;;  %v4166_v5 = vadd.f32 %v4040_v8, %v345_v40  ;;  %v4169_v12 = vmul.f32 %v4015_v2, %v317_v45  ;;  %s5277_s18 = scalar_lea.vmem [#allocation3], %s3400_s17 }
  0x2f   : > { %483 = vst.msk [vmem:[%s4072_s13 + $0x5c] sm:$0xf] %vm459_vm5, %v450_v31  ;;  %v816_v63 = vor.u32 %v814_v42, %v813_v51  ;;  %v818_v1 = vrot.slane %v813_v51, 4  ;;  %v1813_v4 = vsel %vm1591_vm0, %v1104_v59, 0  ;;  %v4172_v9 = vmul.f32 %v4015_v2, %v318_v46  ;;  %s3672_s19 = sshll.u32 %s3977_s28, 7  ;;  %s3303_s29 = sshll.u32 %s5277_s18, 4  ;;  %s3304_s29 = int_to_ptr.vmem [resolvable:$true] %s3303_s29 }
  0x30   : > { %v1062_v62 = vld [vmem:[#allocation2 + $0x30] sm:$0xf]  ;;  %1017 = vst [vmem:[#allocation2 + $0x90] sm:$0xf] %v1016_v56  ;;  %1822 = vmatpush.bf16.msrb.mxu1 %v1813_v4  ;;  %v1125_v18 = vor.u32 %v1124_v49, %v4139_v44  ;;  %v4186_v49 = vpack.c.bf16 %v403_v60, %v403_v60  ;;  %s3302_s23 = scalar_lea.hbm %s5500_s6, %s3672_s19  ;;  %s3286_s28 = scalar_lea.sflag [#allocation4], %s270_s16 }
  0x31   : > { %v1063_v6 = vld [vmem:[#allocation2 + $0x34] sm:$0xf]  ;;  %v1205_v10 = vshrl.u32 %v1062_v62, 16  ;;  %v1208_v11 = vshll.u32 %v1062_v62, 16  ;;  %505 = vst [vmem:[#allocation2] sm:$0x1] %v504_v34  ;;  %v817_v17 = vsel %vm4088_vm8, %v809_v48, %v816_v63  ;;  %v1020_v23 = vsel %vm4019_vm3, %v818_v1, %v1019_v52 }
  0x32   : > { %v1064_v13 = vld [vmem:[#allocation2 + $0x38] sm:$0x1]  ;;  %v1214_v14 = vshll.u32 %v1063_v6, 16  ;;  %v1218_v15 = vshrl.u32 %v1063_v6, 16  ;;  %561 = vst [vmem:[#allocation2 + $0x8] sm:$0x1] %v560_v58 }
  0x33   : > { %v1207_v19 = vrot.slane %v1205_v10, 4  ;;  %v1210_v20 = vrot.slane %v1208_v11, 5  ;;  %v1224_v21 = vshll.u32 %v1064_v13, 16  ;;  %v1074_v22 = vld [vmem:[#allocation2 + $0x60] sm:$0xf]  ;;  %v1126_v42 = vrot.slane %v1125_v18, 4 }
  0x34   : > { %v1216_v24 = vrot.slane %v1214_v14, 5  ;;  %v1220_v25 = vrot.slane %v1218_v15, 4  ;;  %v1075_v26 = vld [vmem:[#allocation2 + $0x64] sm:$0xf]  ;;  %v1301_v27 = vshrl.u32 %v1074_v22, 16  ;;  %v1304_v28 = vshll.u32 %v1074_v22, 16 }
  0x35   : > { %v1211_v29 = vor.u32 %v1210_v20, %v1207_v19  ;;  %v1226_v30 = vrot.slane %v1224_v21, 5  ;;  %v1076_v31 = vld [vmem:[#allocation2 + $0x68] sm:$0x1]  ;;  %v1310_v32 = vshll.u32 %v1075_v26, 16  ;;  %v1314_v33 = vshrl.u32 %v1075_v26, 16  ;;  %s3305_s8 = sshll.u32 %s3302_s23, 4  ;;  %s3306_s8 = int_to_ptr.hbm [resolvable:$true] %s3305_s8 }
  0x36   : > { %v1221_v35 = vor.u32 %v1220_v25, %v1216_v24  ;;  %v1303_v36 = vrot.slane %v1301_v27, 4  ;;  %v1306_v37 = vrot.slane %v1304_v28, 5  ;;  %v1320_v38 = vshll.u32 %v1076_v31, 16  ;;  %1018 = vst.msk [vmem:[#allocation2 + $0x94] sm:$0xf] %vm459_vm5, %v817_v17  ;;  %s3863_s9 = sshra.s32 %s3306_s8, 4  ;;  %s3864_s9 = int_to_ptr.hbm [resolvable:$true] %s3863_s9 }
  0x37   : > { %v1212_v39 = vrot.slane %v1211_v29, 4  ;;  %v1312_v40 = vrot.slane %v1310_v32, 5  ;;  %v1316_v41 = vrot.slane %v1314_v33, 4  ;;  %1021 = vst [vmem:[#allocation2 + $0x98] sm:$0x1] %v1020_v23  ;;  %v4212_v28 = vadd.f32 %v4040_v8, %v4169_v12  ;;  %s3869_s15 = scalar_lea.hbm %s5500_s6, 256  ;;  %p3870_p0 = scmp.lt.s32.totalorder %s3864_s9, %s5500_s6 }
  0x38   : > { %v1222_v43 = vrot.slane %v1221_v35, 4  ;;  %v1307_v45 = vor.u32 %v1306_v37, %v1303_v36  ;;  %v1322_v46 = vrot.slane %v1320_v38, 5  ;;  %v1086_v47 = vld [vmem:[#allocation2 + $0x90] sm:$0xf]  ;;  %v1050_v48 = vld [vmem:[#allocation2] sm:$0xf] }
  0x39   : > { %v1217_v50 = vsel %vm4181_vm13, %v1212_v39, %v1216_v24  ;;  %v1317_v51 = vor.u32 %v1316_v41, %v1312_v40  ;;  %v1397_v52 = vshrl.u32 %v1086_v47, 16  ;;  %v1400_v53 = vshll.u32 %v1086_v47, 16  ;;  %v1052_v54 = vld [vmem:[#allocation2 + $0x8] sm:$0x1]  ;;  %498 = vst.msk [vmem:[#allocation2 + $0xd0] sm:$0xf] %vm459_vm5, %v3913_v16 }
  0x3a   : > { %v1227_v56 = vsel %vm4181_vm13, %v1222_v43, %v1226_v30  ;;  %v1502_v58 = vunpack.c.l.b16 %v1217_v50  ;;  %v1308_v59 = vrot.slane %v1307_v45, 4  ;;  %v1109_v62 = vshrl.u32 %v1050_v48, 16  ;;  %499 = vst.msk [vmem:[#allocation2 + $0xd4] sm:$0x1] %vm494_vm1, %v3913_v16  ;;  %v3556_v19 = vld [vmem:[%s5497_s3 + $0x8] sm:$0x3]  ;;  %vm4682_vm1 = vmor %vm1920_vm14, %vm1921_vm15 }
  0x3b   : > { %v1503_v60 = vunpack.c.l.b16 %v1227_v56  ;;  %v1318_v63 = vrot.slane %v1317_v51, 4  ;;  %v1399_v1 = vrot.slane %v1397_v52, 4  ;;  %v1402_v4 = vrot.slane %v1400_v53, 5  ;;  %468 = vst.msk [vmem:[%s4072_s13 + $0x20] sm:$0xf] %vm459_vm5, %v4186_v49 }
  0x3c   : > { %v1313_v6 = vsel %vm4181_vm13, %v1308_v59, %v1312_v40  ;;  %v1111_v10 = vrot.slane %v1109_v62, 4  ;;  %v1112_v11 = vshll.u32 %v1050_v48, 16  ;;  %v1128_v13 = vshll.u32 %v1052_v54, 16  ;;  %v518_v33 = vld [vmem:[#allocation2 + $0x3c] sm:$0x1] }
  0x3d   : > { %v4201_v14 = vpack.c.b16 %v1503_v60, %v1502_v58  ;;  %v1323_v15 = vsel %vm4181_vm13, %v1318_v63, %v1322_v46  ;;  %v1510_v17 = vunpack.c.l.b16 %v1313_v6  ;;  %v1087_v16 = vld [vmem:[#allocation2 + $0x94] sm:$0xf]  ;;  %v1403_v18 = vor.u32 %v1402_v4, %v1399_v1  ;;  %v574_v35 = vld [vmem:[#allocation2 + $0x44] sm:$0x1]  ;;  %v530_v39 = vld [vmem:[#allocation2 + $0x6c] sm:$0x1] }
  0x3e   : > { %v1511_v20 = vunpack.c.l.b16 %v1323_v15  ;;  %v1088_v21 = vld [vmem:[#allocation2 + $0x98] sm:$0x1]  ;;  %v1406_v22 = vshll.u32 %v1087_v16, 16  ;;  %v1410_v23 = vshrl.u32 %v1087_v16, 16  ;;  %v1114_v24 = vrot.slane %v1112_v11, 5 }
  0x3f   : > { %5547 = vst [vmem:[#allocation7_spill] sm:$0xff] %v4201_v14  ;;  %3410 = vmatmul.msk.bf16.vlgmr.msra.gmra.mxu1 %vm1542_vm12, %v4201_v14  ;;  %v1404_v25 = vrot.slane %v1403_v18, 4  ;;  %v1416_v26 = vshll.u32 %v1088_v21, 16  ;;  %v1130_v27 = vrot.slane %v1128_v13, 5  ;;  %v2424_v38 = vsel %vm1591_vm0, %v3556_v19, 0  ;;  %v293_v13 = vld [vmem:[%s4035_s21] sm:$0xff] }
  0x40   : > { %v4214_v29 = vpack.c.b16 %v1511_v20, %v1510_v17  ;;  %v1408_v30 = vrot.slane %v1406_v22, 5  ;;  %v1412_v31 = vrot.slane %v1410_v23, 4  ;;  %v1115_v32 = vor.u32 %v1114_v24, %v1111_v10  ;;  %2433 = vmatpush.bf16.msrb.mxu0 %v2424_v38  ;;  %v4245_v11 = vld [vmem:[#allocation2 + $0x9c] sm:$0x1] }
  0x41   : > { %v1418_v36 = vrot.slane %v1416_v26, 5  ;;  %v1131_v37 = vsel %vm4181_vm13, %v1126_v42, %v1130_v27  ;;  %v388_v40 = vadd.f32 %v4040_v8, %v4172_v9  ;;  %v404_v47 = vmax.f32 %v4149_v55, 0.0  ;;  %v586_v9 = vld [vmem:[#allocation2 + $0x74] sm:$0x1]  ;;  %v294_v27 = vld [vmem:[%s4035_s21 + $0x8] sm:$0xff] }
  0x42   : > { %5548 = vst [vmem:[#allocation8_spill] sm:$0xff] %v4214_v29  ;;  %3414 = vmatmul.msk.bf16.vlgmr.msra.gmra.mxu2 %vm1542_vm12, %v4214_v29  ;;  %v1409_v12 = vsel %vm4181_vm13, %v1404_v25, %v1408_v30  ;;  %v1413_v41 = vor.u32 %v1412_v31, %v1408_v30  ;;  %v1116_v43 = vrot.slane %v1115_v32, 4  ;;  %v1495_v45 = vunpack.c.l.b16 %v1131_v37 }
  0x43   : > { %v1518_v46 = vunpack.c.l.b16 %v1409_v12  ;;  %v519_v42 = vsel %vm4019_vm3, 0, %v518_v33  ;;  %v575_v48 = vsel %vm4028_vm6, 0, %v574_v35  ;;  %v684_v52 = vshrl.u32 %v4186_v49, 16  ;;  %v4272_v12 = vld [vmem:[#allocation2 + $0xc] sm:$0x1] }
  0x44   : > { %v1414_v50 = vrot.slane %v1413_v41, 4  ;;  %v1121_v51 = vsel %vm4181_vm13, %v1116_v43, %v4139_v44  ;;  %520 = vst [vmem:[#allocation2 + $0x3c] sm:$0x1] %v519_v42  ;;  %v687_v53 = vshll.u32 %v4186_v49, 16  ;;  %v436_v55 = vpack.c.bf16 %v404_v47, %v404_v47  ;;  %v4274_v41 = vld [vmem:[#allocation2 + $0x14] sm:$0x1] }
  0x45   : > { %v1494_v54 = vunpack.c.l.b16 %v1121_v51  ;;  %576 = vst [vmem:[#allocation2 + $0x44] sm:$0x1] %v575_v48  ;;  %v411_v56 = vmax.f32 %v4162_v61, 0.0  ;;  %v412_v58 = vmax.f32 %v4166_v5, 0.0  ;;  %v686_v62 = vrot.slane %v684_v52, 7  ;;  %v303_v42 = vld [vmem:[%s4035_s21 + $0x50] sm:$0xff] }
  0x46   : > { %v1419_v59 = vsel %vm4181_vm13, %v1414_v50, %v1418_v36  ;;  %v531_v44 = vsel %vm4019_vm3, 0, %v530_v39  ;;  %v587_v60 = vsel %vm4028_vm6, 0, %v586_v9  ;;  %469 = vst.msk [vmem:[%s4072_s13 + $0x24] sm:$0xf] %vm459_vm5, %v436_v55  ;;  %v692_v1 = vshrl.u32 %v436_v55, 16  ;;  %v304_v48 = vld [vmem:[%s4035_s21 + $0x58] sm:$0xff] }
  0x47   : > { %v1519_v63 = vunpack.c.l.b16 %v1419_v59  ;;  %v1526_v49 = vpack.c.b16 %v1495_v45, %v1494_v54  ;;  %v695_v61 = vshll.u32 %v436_v55, 16  ;;  %v689_v4 = vor.u32 %v687_v53, %v686_v62  ;;  %532 = vst [vmem:[#allocation2 + $0x6c] sm:$0x1] %v531_v44  ;;  %v598_v36 = vld [vmem:[#allocation2 + $0xa4] sm:$0x1] }
  0x48   : > { %v690_v5 = vrot.slane %v686_v62, 4  ;;  %v443_v6 = vpack.c.bf16 %v411_v56, %v411_v56  ;;  %v444_v10 = vpack.c.bf16 %v412_v58, %v412_v58  ;;  %v694_v17 = vrot.slane %v692_v1, 7  ;;  %588 = vst [vmem:[#allocation2 + $0x74] sm:$0x1] %v587_v60  ;;  %v4279_v9 = vld [vmem:[#allocation2 + $0x48] sm:$0x1] }
  0x49   : > { %v4248_v15 = vpack.c.b16 %v1519_v63, %v1518_v46  ;;  %3406 = vmatmul.msk.bf16.vlgmr.msra.gmra.mxu0 %vm1542_vm12, %v1526_v49  ;;  %v419_v16 = vmax.f32 %v4212_v28, 0.0  ;;  %v420_v18 = vmax.f32 %v388_v40, 0.0  ;;  %v328_v28 = vmul.f32 %v4015_v2, %v293_v13  ;;  %v4296_v1 = vld [vmem:[#allocation2 + $0x50] sm:$0x1] }
  0x4a   : > { %476 = vst.msk [vmem:[%s4072_s13 + $0x40] sm:$0xf] %vm459_vm5, %v443_v6  ;;  %v752_v19 = vshrl.u32 %v443_v6, 16  ;;  %v755_v20 = vshll.u32 %v443_v6, 16  ;;  %v760_v21 = vshrl.u32 %v444_v10, 16  ;;  %v763_v22 = vshll.u32 %v444_v10, 16 }
  0x4b   : > { %5549 = vst [vmem:[#allocation9_spill] sm:$0xff] %v4248_v15  ;;  %3418 = vmatmul.msk.bf16.vlgmr.msra.gmra.mxu3 %vm1542_vm12, %v4248_v15  ;;  %v697_v23 = vor.u32 %v695_v61, %v694_v17  ;;  %v699_v24 = vrot.slane %v694_v17, 4  ;;  %v966_v25 = vld [vmem:[#allocation2 + $0x3c] sm:$0xf]  ;;  %v4258_v26 = vpack.c.bf16 %v419_v16, %v419_v16  ;;  %v452_v35 = vpack.c.bf16 %v420_v18, %v420_v18 }
  0x4c   : > { %477 = vst.msk [vmem:[%s4072_s13 + $0x44] sm:$0xf] %vm459_vm5, %v444_v10  ;;  %v967_v30 = vsel %vm4098_vm9, %v689_v4, %v966_v25  ;;  %v970_v31 = vld [vmem:[#allocation2 + $0x44] sm:$0x1]  ;;  %v754_v32 = vrot.slane %v752_v19, 7  ;;  %v762_v33 = vrot.slane %v760_v21, 7  ;;  %v329_v53 = vmul.f32 %v4015_v2, %v294_v27 }
  0x4d   : > { %v698_v37 = vsel %vm4088_vm8, %v690_v5, %v697_v23  ;;  %968 = vst [vmem:[#allocation2 + $0x3c] sm:$0xf] %v967_v30  ;;  %v971_v38 = vsel %vm4019_vm3, %v699_v24, %v970_v31  ;;  %v543_v39 = vsel %vm4019_vm3, 0, %v4245_v11  ;;  %v820_v40 = vshrl.u32 %v4258_v26, 16 }
  0x4e   : > { %969 = vst.msk [vmem:[#allocation2 + $0x40] sm:$0xf] %vm459_vm5, %v698_v37  ;;  %v757_v43 = vor.u32 %v755_v20, %v754_v32  ;;  %v758_v45 = vrot.slane %v754_v32, 4  ;;  %v765_v46 = vor.u32 %v763_v22, %v762_v33  ;;  %v767_v47 = vrot.slane %v762_v33, 4  ;;  %v994_v50 = vld [vmem:[#allocation2 + $0x6c] sm:$0xf] }
  0x4f   : > { %972 = vst [vmem:[#allocation2 + $0x44] sm:$0x1] %v971_v38  ;;  %v599_v51 = vsel %vm4028_vm6, 0, %v598_v36  ;;  %v822_v52 = vrot.slane %v820_v40, 7  ;;  %v363_v54 = vadd.f32 %v4040_v8, %v328_v28  ;;  %v998_v58 = vld [vmem:[#allocation2 + $0x74] sm:$0x1]  ;;  %v364_v49 = vadd.f32 %v4040_v8, %v329_v53 }
  0x50   : > { %v766_v55 = vsel %vm4088_vm8, %v758_v45, %v765_v46  ;;  %v995_v56 = vsel %vm4098_vm9, %v757_v43, %v994_v50  ;;  %484 = vst.msk [vmem:[%s4072_s13 + $0x60] sm:$0xf] %vm459_vm5, %v4258_v26  ;;  %v828_v59 = vshrl.u32 %v452_v35, 16  ;;  %v831_v62 = vshll.u32 %v452_v35, 16 }
  0x51   : > { %996 = vst [vmem:[#allocation2 + $0x6c] sm:$0xf] %v995_v56  ;;  %v999_v44 = vsel %vm4019_vm3, %v767_v47, %v998_v58  ;;  %v823_v60 = vshll.u32 %v4258_v26, 16  ;;  %v826_v63 = vrot.slane %v822_v52, 4  ;;  %v395_v4 = vmax.f32 %v363_v54, 0.0  ;;  %v311_v26 = vld [vmem:[%s4035_s21 + $0x90] sm:$0xff] }
  0x52   : > { %997 = vst.msk [vmem:[#allocation2 + $0x70] sm:$0xf] %vm459_vm5, %v766_v55  ;;  %v4299_v61 = vrot.slane %v828_v59, 7  ;;  %v507_v5 = vsel %vm4019_vm3, 0, %v4272_v12  ;;  %v563_v6 = vsel %vm4028_vm6, 0, %v4274_v41  ;;  %v396_v10 = vmax.f32 %v364_v49, 0.0 }
  0x53   : > { %1000 = vst [vmem:[#allocation2 + $0x74] sm:$0x1] %v999_v44  ;;  %v338_v11 = vmul.f32 %v4015_v2, %v303_v42  ;;  %v339_v13 = vmul.f32 %v4015_v2, %v304_v48  ;;  %v522_v17 = vsel %vm4019_vm3, 0, %v4279_v9  ;;  %v4316_v20 = vpack.c.bf16 %v395_v4, %v395_v4  ;;  %v312_v48 = vld [vmem:[%s4035_s21 + $0x98] sm:$0xff] }
  0x54   : > { %v1065_v16 = vld [vmem:[#allocation2 + $0x3c] sm:$0xf]  ;;  %485 = vst.msk [vmem:[%s4072_s13 + $0x64] sm:$0xf] %vm459_vm5, %v452_v35  ;;  %v833_v18 = vor.u32 %v831_v62, %v4299_v61  ;;  %v835_v19 = vrot.slane %v4299_v61, 4  ;;  %v578_v21 = vsel %vm4028_vm6, 0, %v4296_v1  ;;  %v825_v25 = vor.u32 %v823_v60, %v822_v52 }
  0x55   : > { %v1066_v22 = vld [vmem:[#allocation2 + $0x40] sm:$0xf]  ;;  %v1229_v23 = vshrl.u32 %v1065_v16, 16  ;;  %v1232_v24 = vshll.u32 %v1065_v16, 16  ;;  %544 = vst [vmem:[#allocation2 + $0x9c] sm:$0x1] %v543_v39  ;;  %v4324_v32 = vpack.c.bf16 %v396_v10, %v396_v10  ;;  %v4332_v12 = vadd.f32 %v4040_v8, %v338_v11 }
  0x56   : > { %v1067_v27 = vld [vmem:[#allocation2 + $0x44] sm:$0x1]  ;;  %v1238_v28 = vshll.u32 %v1066_v22, 16  ;;  %v1242_v30 = vshrl.u32 %v1066_v22, 16  ;;  %600 = vst [vmem:[#allocation2 + $0xa4] sm:$0x1] %v599_v51  ;;  %v834_v31 = vsel %vm4088_vm8, %v826_v63, %v833_v18  ;;  %v4335_v41 = vadd.f32 %v4040_v8, %v339_v13 }
  0x57   : > { %v1231_v33 = vrot.slane %v1229_v23, 4  ;;  %v1234_v35 = vrot.slane %v1232_v24, 5  ;;  %v1248_v36 = vshll.u32 %v1067_v27, 16  ;;  %1025 = vst.msk [vmem:[#allocation2 + $0xa0] sm:$0xf] %vm459_vm5, %v834_v31  ;;  %v616_v37 = vshrl.u32 %v4316_v20, 16 }
  0x58   : > { %v1240_v38 = vrot.slane %v1238_v28, 5  ;;  %v1244_v39 = vrot.slane %v1242_v30, 4  ;;  %v1077_v40 = vld [vmem:[#allocation2 + $0x6c] sm:$0xf]  ;;  %460 = vst.msk [vmem:[%s4072_s13] sm:$0xf] %vm459_vm5, %v4316_v20  ;;  %v346_v54 = vmul.f32 %v4015_v2, %v311_v26  ;;  %v347_v49 = vmul.f32 %v4015_v2, %v312_v48 }
  0x59   : > { %v1235_v43 = vor.u32 %v1234_v35, %v1231_v33  ;;  %v1250_v45 = vrot.slane %v1248_v36, 5  ;;  %v1078_v46 = vld [vmem:[#allocation2 + $0x70] sm:$0xf]  ;;  %v1325_v47 = vshrl.u32 %v1077_v40, 16  ;;  %v1328_v42 = vshll.u32 %v1077_v40, 16 }
  0x5a   : > { %v1245_v50 = vor.u32 %v1244_v39, %v1240_v38  ;;  %v1079_v51 = vld [vmem:[#allocation2 + $0x74] sm:$0x1]  ;;  %v1334_v52 = vshll.u32 %v1078_v46, 16  ;;  %v1338_v53 = vshrl.u32 %v1078_v46, 16  ;;  %461 = vst.msk [vmem:[%s4072_s13 + $0x4] sm:$0xf] %vm459_vm5, %v4324_v32 }
  0x5b   : > { %v1236_v55 = vrot.slane %v1235_v43, 4  ;;  %v1327_v56 = vrot.slane %v1325_v47, 4  ;;  %v1330_v58 = vrot.slane %v1328_v42, 5  ;;  %v1344_v59 = vshll.u32 %v1079_v51, 16  ;;  %508 = vst [vmem:[#allocation2 + $0xc] sm:$0x1] %v507_v5 }
  0x5c   : > { %v1246_v62 = vrot.slane %v1245_v50, 4  ;;  %v1336_v44 = vrot.slane %v1334_v52, 5  ;;  %v1340_v60 = vrot.slane %v1338_v53, 4  ;;  %v1022_v63 = vld [vmem:[#allocation2 + $0x9c] sm:$0xf]  ;;  %v618_v31 = vrot.slane %v616_v37, 7 }
  0x5d   : > { %v1241_v61 = vsel %vm4181_vm13, %v1236_v55, %v1240_v38  ;;  %v1331_v4 = vor.u32 %v1330_v58, %v1327_v56  ;;  %v1346_v10 = vrot.slane %v1344_v59, 5  ;;  %v1023_v11 = vsel %vm4098_vm9, %v825_v25, %v1022_v63  ;;  %v1026_v13 = vld [vmem:[#allocation2 + $0xa4] sm:$0x1]  ;;  %564 = vst [vmem:[#allocation2 + $0x14] sm:$0x1] %v563_v6 }
  0x5e   : > { %v1251_v16 = vsel %vm4181_vm13, %v1246_v62, %v1250_v45  ;;  %v1504_v5 = vunpack.c.l.b16 %v1241_v61  ;;  %v1341_v18 = vor.u32 %v1340_v60, %v1336_v44  ;;  %1024 = vst [vmem:[#allocation2 + $0x9c] sm:$0xf] %v1023_v11  ;;  %v1027_v22 = vsel %vm4019_vm3, %v835_v19, %v1026_v13  ;;  %v1090_v23 = vld [vmem:[#allocation2 + $0xa0] sm:$0xf]  ;;  %v319_v60 = vld [vmem:[%s4035_s21 + $0xd0] sm:$0xff] }
  0x5f   : > { %v1505_v24 = vunpack.c.l.b16 %v1251_v16  ;;  %v1332_v26 = vrot.slane %v1331_v4, 4  ;;  %1028 = vst [vmem:[#allocation2 + $0xa4] sm:$0x1] %v1027_v22  ;;  %v1430_v27 = vshll.u32 %v1090_v23, 16  ;;  %v1434_v28 = vshrl.u32 %v1090_v23, 16 }
  0x60   : > { %v1342_v30 = vrot.slane %v1341_v18, 4  ;;  %v619_v25 = vshll.u32 %v4316_v20, 16  ;;  %v624_v6 = vshrl.u32 %v4324_v32, 16  ;;  %523 = vst [vmem:[#allocation2 + $0x48] sm:$0x1] %v522_v17  ;;  %v622_v9 = vrot.slane %v618_v31, 4 }
  0x61   : > { %v4357_v33 = vpack.c.b16 %v1505_v24, %v1504_v5  ;;  %v1337_v19 = vsel %vm4181_vm13, %v1332_v26, %v1336_v44  ;;  %v4361_v35 = vrot.slane %v1430_v27, 5  ;;  %v1436_v36 = vrot.slane %v1434_v28, 4  ;;  %579 = vst [vmem:[#allocation2 + $0x50] sm:$0x1] %v578_v21  ;;  %v533_v44 = vld [vmem:[#allocation2 + $0x78] sm:$0x1] }
  0x62   : > { %v1347_v20 = vsel %vm4181_vm13, %v1342_v30, %v1346_v10  ;;  %v1512_v37 = vunpack.c.l.b16 %v1337_v19  ;;  %v621_v38 = vor.u32 %v619_v25, %v618_v31  ;;  %v938_v17 = vld [vmem:[#allocation2 + $0xc] sm:$0xf]  ;;  %v626_v43 = vrot.slane %v624_v6, 7  ;;  %v589_v16 = vld [vmem:[#allocation2 + $0x80] sm:$0x1] }
  0x63   : > { %5550 = vst [vmem:[#allocation10_spill] sm:$0xff] %v4357_v33  ;;  %3411 = vmatmul.msk.bf16.gmra.mxu1 %vm1542_vm12, %v4357_v33  ;;  %v1513_v39 = vunpack.c.l.b16 %v1347_v20  ;;  %v1437_v40 = vor.u32 %v1436_v36, %v4361_v35  ;;  %v627_v45 = vshll.u32 %v4324_v32, 16  ;;  %v405_v46 = vmax.f32 %v4332_v12, 0.0 }
  0x64   : > { %v939_v1 = vsel %vm4098_vm9, %v621_v38, %v938_v17  ;;  %v942_v21 = vld [vmem:[#allocation2 + $0x14] sm:$0x1]  ;;  %v406_v47 = vmax.f32 %v4335_v41, 0.0  ;;  %v381_v42 = vadd.f32 %v4040_v8, %v346_v54  ;;  %v631_v52 = vrot.slane %v626_v43, 4  ;;  %v320_v17 = vld [vmem:[%s4035_s21 + $0xd8] sm:$0xff] }
  0x65   : > { %v4378_v48 = vpack.c.b16 %v1513_v39, %v1512_v37  ;;  %v1089_v50 = vld [vmem:[#allocation2 + $0x9c] sm:$0xf]  ;;  %v629_v51 = vor.u32 %v627_v45, %v626_v43  ;;  %940 = vst [vmem:[#allocation2 + $0xc] sm:$0xf] %v939_v1  ;;  %v382_v53 = vadd.f32 %v4040_v8, %v347_v49  ;;  %v437_v58 = vpack.c.bf16 %v405_v46, %v405_v46 }
  0x66   : > { %v1091_v32 = vld [vmem:[#allocation2 + $0xa4] sm:$0x1]  ;;  %v1421_v55 = vshrl.u32 %v1089_v50, 16  ;;  %v1424_v56 = vshll.u32 %v1089_v50, 16  ;;  %v438_v59 = vpack.c.bf16 %v406_v47, %v406_v47  ;;  %v1438_v12 = vrot.slane %v1437_v40, 4 }
  0x67   : > { %3415 = vmatmul.msk.bf16.gmra.mxu2 %vm1542_vm12, %v4378_v48  ;;  %v1440_v41 = vshll.u32 %v1091_v32, 16  ;;  %v630_v54 = vsel %vm4088_vm8, %v622_v9, %v629_v51  ;;  %v943_v62 = vsel %vm4019_vm3, %v631_v52, %v942_v21  ;;  %v701_v49 = vshrl.u32 %v437_v58, 16  ;;  %470 = vst.msk [vmem:[%s4072_s13 + $0x28] sm:$0xf] %vm459_vm5, %v437_v58  ;;  %v973_v22 = vld [vmem:[#allocation2 + $0x48] sm:$0xf] }
  0x68   : > { %v1423_v8 = vrot.slane %v1421_v55, 4  ;;  %v1426_v63 = vrot.slane %v1424_v56, 5  ;;  %941 = vst.msk [vmem:[#allocation2 + $0x10] sm:$0xf] %vm459_vm5, %v630_v54  ;;  %v704_v61 = vshll.u32 %v437_v58, 16  ;;  %v709_v10 = vshrl.u32 %v438_v59, 16 }
  0x69   : > { %v1442_v4 = vrot.slane %v1440_v41, 5  ;;  %944 = vst [vmem:[#allocation2 + $0x14] sm:$0x1] %v943_v62  ;;  %v712_v11 = vshll.u32 %v438_v59, 16  ;;  %v413_v13 = vmax.f32 %v381_v42, 0.0  ;;  %v703_v18 = vrot.slane %v701_v49, 7 }
  0x6a   : > { %v1427_v5 = vor.u32 %v1426_v63, %v1423_v8  ;;  %v414_v23 = vmax.f32 %v382_v53, 0.0  ;;  %v354_v24 = vmul.f32 %v4015_v2, %v319_v60  ;;  %471 = vst.msk [vmem:[%s4072_s13 + $0x2c] sm:$0xf] %vm459_vm5, %v438_v59  ;;  %v711_v27 = vrot.slane %v709_v10, 7  ;;  %v977_v28 = vld [vmem:[#allocation2 + $0x50] sm:$0x1] }
  0x6b   : > { %v1443_v26 = vsel %vm4181_vm13, %v1438_v12, %v1442_v4  ;;  %v445_v30 = vpack.c.bf16 %v413_v13, %v413_v13  ;;  %v534_v31 = vsel %vm4019_vm3, 0, %v533_v44  ;;  %v706_v36 = vor.u32 %v704_v61, %v703_v18  ;;  %v4426_v53 = vld [vmem:[%s5495_s1] ss:$0 sm:$0xff]  ;;  %v545_v12 = vld [vmem:[#allocation2 + $0xa8] sm:$0x1] }
  0x6c   : > { %v1428_v25 = vrot.slane %v1427_v5, 4  ;;  %v1521_v6 = vunpack.c.l.b16 %v1443_v26  ;;  %v4398_v19 = vld [vmem:[#allocation2 + $0xc] sm:$0xf]  ;;  %v707_v20 = vrot.slane %v703_v18, 4  ;;  %535 = vst [vmem:[#allocation2 + $0x78] sm:$0x1] %v534_v31  ;;  %v714_v38 = vor.u32 %v712_v11, %v711_v27 }
  0x6d   : > { %v1133_v2 = vshrl.u32 %v4398_v19, 16  ;;  %v1136_v37 = vshll.u32 %v4398_v19, 16  ;;  %v716_v9 = vrot.slane %v711_v27, 4  ;;  %478 = vst.msk [vmem:[%s4072_s13 + $0x48] sm:$0xf] %vm459_vm5, %v445_v30  ;;  %v974_v40 = vsel %vm4098_vm9, %v706_v36, %v973_v22 }
  0x6e   : > { %v1433_v39 = vsel %vm4181_vm13, %v1428_v25, %v4361_v35  ;;  %v446_v43 = vpack.c.bf16 %v414_v23, %v414_v23  ;;  %v590_v45 = vsel %vm4028_vm6, 0, %v589_v16  ;;  %v715_v42 = vsel %vm4088_vm8, %v707_v20, %v714_v38  ;;  %975 = vst [vmem:[#allocation2 + $0x48] sm:$0xf] %v974_v40  ;;  %v4439_v11 = vld [vmem:[%s5496_s2] ss:$0 sm:$0xff] }
  0x6f   : > { %v1520_v1 = vunpack.c.l.b16 %v1433_v39  ;;  %v4412_v21 = vld [vmem:[#allocation2 + $0x10] sm:$0xf]  ;;  %v1135_v46 = vrot.slane %v1133_v2, 4  ;;  %v1138_v47 = vrot.slane %v1136_v37, 5  ;;  %976 = vst.msk [vmem:[#allocation2 + $0x4c] sm:$0xf] %vm459_vm5, %v715_v42  ;;  %v978_v52 = vsel %vm4019_vm3, %v716_v9, %v977_v28 }
  0x70   : > { %v4416_v50 = vld [vmem:[#allocation2 + $0x14] sm:$0x1]  ;;  %v1142_v35 = vshll.u32 %v4412_v21, 16  ;;  %v1146_v51 = vshrl.u32 %v4412_v21, 16  ;;  %v355_v32 = vmul.f32 %v4426_v53, %v320_v17  ;;  %979 = vst [vmem:[#allocation2 + $0x50] sm:$0x1] %v978_v52  ;;  %v389_v13 = vadd.f32 %v4439_v11, %v354_v24 }
  0x71   : > { %v4429_v55 = vpack.c.b16 %v1521_v6, %v1520_v1  ;;  %v1139_v56 = vor.u32 %v1138_v47, %v1135_v46  ;;  %v1152_v58 = vshll.u32 %v4416_v50, 16  ;;  %v769_v59 = vshrl.u32 %v445_v30, 16  ;;  %479 = vst.msk [vmem:[%s4072_s13 + $0x4c] sm:$0xf] %vm459_vm5, %v446_v43  ;;  %v601_v2 = vld [vmem:[#allocation2 + $0xb0] sm:$0x1] }
  0x72   : > { %v1144_v41 = vrot.slane %v1142_v35, 5  ;;  %v1148_v54 = vrot.slane %v1146_v51, 4  ;;  %v772_v62 = vshll.u32 %v445_v30, 16  ;;  %v777_v44 = vshrl.u32 %v446_v43, 16  ;;  %591 = vst [vmem:[#allocation2 + $0x80] sm:$0x1] %v590_v45 }
  0x73   : > { %3419 = vmatmul.msk.bf16.gmra.mxu3 %vm1542_vm12, %v4429_v55  ;;  %v1140_v60 = vrot.slane %v1139_v56, 4  ;;  %v1154_v8 = vrot.slane %v1152_v58, 5  ;;  %v771_v63 = vrot.slane %v769_v59, 7  ;;  %v780_v49 = vshll.u32 %v446_v43, 16  ;;  %v1001_v10 = vld [vmem:[#allocation2 + $0x78] sm:$0xf] }
  0x74   : > { %v1149_v61 = vor.u32 %v1148_v54, %v1144_v41  ;;  %v779_v4 = vrot.slane %v777_v44, 7  ;;  %v390_v16 = vadd.f32 %v4439_v11, %v355_v32  ;;  %v546_v23 = vsel %vm4019_vm3, 0, %v545_v12  ;;  %v295_v46 = vld [vmem:[%s4035_s21 + $0x10] sm:$0xff]  ;;  %v296_v32 = vld [vmem:[%s4035_s21 + $0x18] sm:$0xff] }
  0x75   : > { %v1145_v5 = vsel %vm4181_vm13, %v1140_v60, %v1144_v41  ;;  %v774_v18 = vor.u32 %v772_v62, %v771_v63  ;;  %v775_v22 = vrot.slane %v771_v63, 4  ;;  %v1068_v28 = vld [vmem:[#allocation2 + $0x48] sm:$0xf]  ;;  %547 = vst [vmem:[#allocation2 + $0xa8] sm:$0x1] %v546_v23  ;;  %v421_v20 = vmax.f32 %v389_v13, 0.0 }
  0x76   : > { %v1150_v26 = vrot.slane %v1149_v61, 4  ;;  %v1496_v27 = vunpack.c.l.b16 %v1145_v5  ;;  %v782_v30 = vor.u32 %v780_v49, %v779_v4  ;;  %v784_v31 = vrot.slane %v779_v4, 4  ;;  %v4447_v25 = vld [vmem:[#allocation2 + $0x4c] sm:$0xf]  ;;  %v509_v60 = vld [vmem:[#allocation2 + $0x18] sm:$0x1] }
  0x77   : > { %v1253_v6 = vshrl.u32 %v1068_v28, 16  ;;  %v1256_v24 = vshll.u32 %v1068_v28, 16  ;;  %v1002_v36 = vsel %vm4098_vm9, %v774_v18, %v1001_v10  ;;  %v4453_v38 = vld [vmem:[#allocation2 + $0x50] sm:$0x1]  ;;  %v1262_v9 = vshll.u32 %v4447_v25, 16 }
  0x78   : > { %v1155_v37 = vsel %vm4181_vm13, %v1150_v26, %v1154_v8  ;;  %v1266_v17 = vshrl.u32 %v4447_v25, 16  ;;  %v783_v39 = vsel %vm4088_vm8, %v775_v22, %v782_v30  ;;  %1003 = vst [vmem:[#allocation2 + $0x78] sm:$0xf] %v1002_v36  ;;  %v1272_v1 = vshll.u32 %v4453_v38, 16 }
  0x79   : > { %v1497_v40 = vunpack.c.l.b16 %v1155_v37  ;;  %v1255_v43 = vrot.slane %v1253_v6, 4  ;;  %v1258_v45 = vrot.slane %v1256_v24, 5  ;;  %1004 = vst.msk [vmem:[#allocation2 + $0x7c] sm:$0xf] %vm459_vm5, %v783_v39  ;;  %v1264_v47 = vrot.slane %v1262_v9, 5 }
  0x7a   : > { %v1268_v42 = vrot.slane %v1266_v17, 4  ;;  %v1005_v35 = vld [vmem:[#allocation2 + $0x80] sm:$0x1]  ;;  %v422_v51 = vmax.f32 %v390_v16, 0.0  ;;  %v453_v52 = vpack.c.bf16 %v421_v20, %v421_v20  ;;  %v1274_v59 = vrot.slane %v1272_v1, 5 }
  0x7b   : > { %v4463_v56 = vpack.c.b16 %v1497_v40, %v1496_v27  ;;  %v1259_v58 = vor.u32 %v1258_v45, %v1255_v43  ;;  %v1006_v12 = vsel %vm4019_vm3, %v784_v31, %v1005_v35  ;;  %v602_v62 = vsel %vm4028_vm6, 0, %v601_v2 }
  0x7c   : > { %v1269_v41 = vor.u32 %v1268_v42, %v1264_v47  ;;  %1007 = vst [vmem:[#allocation2 + $0x80] sm:$0x1] %v1006_v12  ;;  %v454_v54 = vpack.c.bf16 %v422_v51, %v422_v51  ;;  %v837_v44 = vshrl.u32 %v453_v52, 16  ;;  %v840_v63 = vshll.u32 %v453_v52, 16  ;;  %v1029_v5 = vld [vmem:[#allocation2 + $0xa8] sm:$0xf] }
  0x7d   : > { %3407 = vmatmul.msk.bf16.gmra.mxu0 %vm1542_vm12, %v4463_v56  ;;  %v1260_v8 = vrot.slane %v1259_v58, 4  ;;  %486 = vst.msk [vmem:[%s4072_s13 + $0x68] sm:$0xf] %vm459_vm5, %v453_v52  ;;  %v330_v49 = vmul.f32 %v4426_v53, %v295_v46  ;;  %v331_v61 = vmul.f32 %v4426_v53, %v296_v32  ;;  %v510_v27 = vsel %vm4019_vm3, 0, %v509_v60  ;;  %v565_v42 = vld [vmem:[#allocation2 + $0x20] sm:$0x1] }
  0x7e   : > { %v1270_v4 = vrot.slane %v1269_v41, 4  ;;  %487 = vst.msk [vmem:[%s4072_s13 + $0x6c] sm:$0xf] %vm459_vm5, %v454_v54  ;;  %v839_v10 = vrot.slane %v837_v44, 7  ;;  %v845_v13 = vshrl.u32 %v454_v54, 16  ;;  %v848_v16 = vshll.u32 %v454_v54, 16 }
  0x7f   : > { %v1265_v18 = vsel %vm4181_vm13, %v1260_v8, %v1264_v47  ;;  %v1080_v22 = vld [vmem:[#allocation2 + $0x78] sm:$0xf]  ;;  %603 = vst [vmem:[#allocation2 + $0xb0] sm:$0x1] %v602_v62  ;;  %v365_v23 = vadd.f32 %v4439_v11, %v330_v49  ;;  %v366_v26 = vadd.f32 %v4439_v11, %v331_v61  ;;  %v305_v32 = vld [vmem:[%s4035_s21 + $0x60] sm:$0xff]  ;;  %v306_v54 = vld [vmem:[%s4035_s21 + $0x68] sm:$0xff] }
  0x80   : > { %v1275_v28 = vsel %vm4181_vm13, %v1270_v4, %v1274_v59  ;;  %v1506_v30 = vunpack.c.l.b16 %v1265_v18  ;;  %v1081_v31 = vld [vmem:[#allocation2 + $0x7c] sm:$0xf]  ;;  %v1349_v6 = vshrl.u32 %v1080_v22, 16  ;;  %v1352_v24 = vshll.u32 %v1080_v22, 16  ;;  %511 = vst [vmem:[#allocation2 + $0x18] sm:$0x1] %v510_v27 }
  0x81   : > { %v1507_v36 = vunpack.c.l.b16 %v1275_v28  ;;  %v1358_v20 = vshll.u32 %v1081_v31, 16  ;;  %v1362_v2 = vshrl.u32 %v1081_v31, 16  ;;  %v842_v37 = vor.u32 %v840_v63, %v839_v10  ;;  %v524_v62 = vld [vmem:[#allocation2 + $0x54] sm:$0x1] }
  0x82   : > { %v1351_v9 = vrot.slane %v1349_v6, 4  ;;  %v1354_v17 = vrot.slane %v1352_v24, 5  ;;  %v843_v39 = vrot.slane %v839_v10, 4  ;;  %v847_v40 = vrot.slane %v845_v13, 7 }
  0x83   : > { %v4485_v43 = vpack.c.b16 %v1507_v36, %v1506_v30  ;;  %v1082_v45 = vld [vmem:[#allocation2 + $0x80] sm:$0x1]  ;;  %v1360_v1 = vrot.slane %v1358_v20, 5  ;;  %v1364_v46 = vrot.slane %v1362_v2, 4  ;;  %v1030_v47 = vsel %vm4098_vm9, %v842_v37, %v1029_v5 }
  0x84   : > { %v1355_v35 = vor.u32 %v1354_v17, %v1351_v9  ;;  %v1368_v51 = vshll.u32 %v1082_v45, 16  ;;  %v850_v52 = vor.u32 %v848_v16, %v847_v40  ;;  %1031 = vst [vmem:[#allocation2 + $0xa8] sm:$0xf] %v1030_v47  ;;  %v852_v59 = vrot.slane %v847_v40, 4 }
  0x85   : > { %5551 = vst [vmem:[#allocation11_spill] sm:$0xff] %v4485_v43  ;;  %3412 = vmatmul.msk.bf16.gmra.mxu1 %vm1542_vm12, %v4485_v43  ;;  %v1365_v58 = vor.u32 %v1364_v46, %v1360_v1  ;;  %v397_v12 = vmax.f32 %v365_v23, 0.0  ;;  %v398_v41 = vmax.f32 %v366_v26, 0.0  ;;  %v566_v49 = vsel %vm4028_vm6, 0, %v565_v42  ;;  %v580_v23 = vld [vmem:[#allocation2 + $0x5c] sm:$0x1] }
  0x86   : > { %v1356_v44 = vrot.slane %v1355_v35, 4  ;;  %v1370_v60 = vrot.slane %v1368_v51, 5  ;;  %v851_v8 = vsel %vm4088_vm8, %v843_v39, %v850_v52  ;;  %v1033_v63 = vld [vmem:[#allocation2 + $0xb0] sm:$0x1]  ;;  %v340_v5 = vmul.f32 %v4426_v53, %v305_v32  ;;  %v313_v26 = vld [vmem:[%s4035_s21 + $0xa0] sm:$0xff] }
  0x87   : > { %v1366_v61 = vrot.slane %v1365_v58, 4  ;;  %1032 = vst.msk [vmem:[#allocation2 + $0xac] sm:$0xf] %vm459_vm5, %v851_v8  ;;  %v1034_v4 = vsel %vm4019_vm3, %v852_v59, %v1033_v63  ;;  %v429_v10 = vpack.c.bf16 %v397_v12, %v397_v12  ;;  %v430_v13 = vpack.c.bf16 %v398_v41, %v398_v41  ;;  %v945_v20 = vld [vmem:[#allocation2 + $0x18] sm:$0xf]  ;;  %v314_v63 = vld [vmem:[%s4035_s21 + $0xa8] sm:$0xff] }
  0x88   : > { %v1361_v16 = vsel %vm4181_vm13, %v1356_v44, %v1360_v1  ;;  %1035 = vst [vmem:[#allocation2 + $0xb0] sm:$0x1] %v1034_v4  ;;  %v341_v18 = vmul.f32 %v4426_v53, %v306_v54  ;;  %v525_v22 = vsel %vm4019_vm3, 0, %v524_v62  ;;  %v375_v2 = vadd.f32 %v4439_v11, %v340_v5 }
  0x89   : > { %v1371_v27 = vsel %vm4181_vm13, %v1366_v61, %v1370_v60  ;;  %v1514_v28 = vunpack.c.l.b16 %v1361_v16  ;;  %462 = vst.msk [vmem:[%s4072_s13 + $0x8] sm:$0xf] %vm459_vm5, %v429_v10  ;;  %v633_v30 = vshrl.u32 %v429_v10, 16  ;;  %v636_v31 = vshll.u32 %v429_v10, 16 }
  0x8a   : > { %v1515_v6 = vunpack.c.l.b16 %v1371_v27  ;;  %463 = vst.msk [vmem:[%s4072_s13 + $0xc] sm:$0xf] %vm459_vm5, %v430_v13  ;;  %v641_v24 = vshrl.u32 %v430_v13, 16  ;;  %v644_v36 = vshll.u32 %v430_v13, 16  ;;  %v376_v17 = vadd.f32 %v4439_v11, %v341_v18  ;;  %v536_v18 = vld [vmem:[#allocation2 + $0x84] sm:$0x1] }
  0x8b   : > { %v1092_v37 = vld [vmem:[#allocation2 + $0xa8] sm:$0xf]  ;;  %567 = vst [vmem:[#allocation2 + $0x20] sm:$0x1] %v566_v49  ;;  %v635_v9 = vrot.slane %v633_v30, 7  ;;  %v581_v39 = vsel %vm4028_vm6, 0, %v580_v23  ;;  %v348_v40 = vmul.f32 %v4426_v53, %v313_v26  ;;  %v349_v27 = vmul.f32 %v4426_v53, %v314_v63 }
  0x8c   : > { %v4518_v45 = vpack.c.b16 %v1515_v6, %v1514_v28  ;;  %v1445_v1 = vshrl.u32 %v1092_v37, 16  ;;  %v1448_v46 = vshll.u32 %v1092_v37, 16  ;;  %v643_v47 = vrot.slane %v641_v24, 7  ;;  %526 = vst [vmem:[#allocation2 + $0x54] sm:$0x1] %v525_v22  ;;  %v321_v30 = vld [vmem:[%s4035_s21 + $0xe0] sm:$0xff] }
  0x8d   : > { %v638_v42 = vor.u32 %v636_v31, %v635_v9  ;;  %v639_v35 = vrot.slane %v635_v9, 4  ;;  %v407_v51 = vmax.f32 %v375_v2, 0.0  ;;  %v408_v52 = vmax.f32 %v376_v17, 0.0  ;;  %582 = vst [vmem:[#allocation2 + $0x5c] sm:$0x1] %v581_v39 }
  0x8e   : > { %3416 = vmatmul.msk.bf16.gmra.mxu2 %vm1542_vm12, %v4518_v45  ;;  %v1093_v32 = vld [vmem:[#allocation2 + $0xac] sm:$0xf]  ;;  %v1447_v58 = vrot.slane %v1445_v1, 4  ;;  %v1450_v59 = vrot.slane %v1448_v46, 5  ;;  %v646_v12 = vor.u32 %v644_v36, %v643_v47  ;;  %v648_v41 = vrot.slane %v643_v47, 4 }
  0x8f   : > { %v1094_v54 = vld [vmem:[#allocation2 + $0xb0] sm:$0x1]  ;;  %v1454_v62 = vshll.u32 %v1093_v32, 16  ;;  %v1458_v44 = vshrl.u32 %v1093_v32, 16  ;;  %v946_v60 = vsel %vm4098_vm9, %v638_v42, %v945_v20  ;;  %v439_v8 = vpack.c.bf16 %v407_v51, %v407_v51  ;;  %v592_v20 = vld [vmem:[#allocation2 + $0x8c] sm:$0x1] }
  0x90   : > { %v1451_v49 = vor.u32 %v1450_v59, %v1447_v58  ;;  %v1464_v61 = vshll.u32 %v1094_v54, 16  ;;  %v647_v4 = vsel %vm4088_vm8, %v639_v35, %v646_v12  ;;  %947 = vst [vmem:[#allocation2 + $0x18] sm:$0xf] %v946_v60  ;;  %v440_v16 = vpack.c.bf16 %v408_v52, %v408_v52 }
  0x91   : > { %v1456_v10 = vrot.slane %v1454_v62, 5  ;;  %v1460_v13 = vrot.slane %v1458_v44, 4  ;;  %948 = vst.msk [vmem:[#allocation2 + $0x1c] sm:$0xf] %vm459_vm5, %v647_v4  ;;  %v718_v5 = vshrl.u32 %v439_v8, 16  ;;  %v383_v28 = vadd.f32 %v4439_v11, %v348_v40 }
  0x92   : > { %v1452_v22 = vrot.slane %v1451_v49, 4  ;;  %v1466_v23 = vrot.slane %v1464_v61, 5  ;;  %v949_v26 = vld [vmem:[#allocation2 + $0x20] sm:$0x1]  ;;  %472 = vst.msk [vmem:[%s4072_s13 + $0x30] sm:$0xf] %vm459_vm5, %v439_v8  ;;  %v384_v39 = vadd.f32 %v4439_v11, %v349_v27  ;;  %v356_v54 = vmul.f32 %v4426_v53, %v321_v30 }
  0x93   : > { %v1461_v31 = vor.u32 %v1460_v13, %v1456_v10  ;;  %v950_v6 = vsel %vm4019_vm3, %v648_v41, %v949_v26  ;;  %473 = vst.msk [vmem:[%s4072_s13 + $0x34] sm:$0xf] %vm459_vm5, %v440_v16  ;;  %v720_v24 = vrot.slane %v718_v5, 7  ;;  %v721_v36 = vshll.u32 %v439_v8, 16  ;;  %v980_v17 = vld [vmem:[#allocation2 + $0x54] sm:$0xf] }
  0x94   : > { %v1457_v2 = vsel %vm4181_vm13, %v1452_v22, %v1456_v10  ;;  %951 = vst [vmem:[#allocation2 + $0x20] sm:$0x1] %v950_v6  ;;  %v726_v37 = vshrl.u32 %v440_v16, 16  ;;  %v729_v9 = vshll.u32 %v440_v16, 16  ;;  %v984_v35 = vld [vmem:[#allocation2 + $0x5c] sm:$0x1] }
  0x95   : > { %v1462_v40 = vrot.slane %v1461_v31, 4  ;;  %v1522_v1 = vunpack.c.l.b16 %v1457_v2  ;;  %v723_v46 = vor.u32 %v721_v36, %v720_v24  ;;  %v724_v47 = vrot.slane %v720_v24, 4  ;;  %v322_v22 = vld [vmem:[%s4035_s21 + $0xe8] sm:$0xff] }
  0x96   : > { %v728_v42 = vrot.slane %v726_v37, 7  ;;  %v415_v51 = vmax.f32 %v383_v28, 0.0  ;;  %v416_v52 = vmax.f32 %v384_v39, 0.0  ;;  %v537_v32 = vsel %vm4019_vm3, 0, %v536_v18 }
  0x97   : > { %v1467_v58 = vsel %vm4181_vm13, %v1462_v40, %v1466_v23  ;;  %v4544_v59 = vld [vmem:[#allocation2 + $0x18] sm:$0xf]  ;;  %v981_v12 = vsel %vm4098_vm9, %v723_v46, %v980_v17  ;;  %538 = vst [vmem:[#allocation2 + $0x84] sm:$0x1] %v537_v32  ;;  %v593_v41 = vsel %vm4028_vm6, 0, %v592_v20  ;;  %v297_v20 = vld [vmem:[%s4035_s21 + $0x20] sm:$0xff]  ;;  %v357_v17 = vmul.f32 %v4426_v53, %v322_v22 }
  0x98   : > { %v1523_v62 = vunpack.c.l.b16 %v1467_v58  ;;  %v4551_v44 = vld [vmem:[#allocation2 + $0x1c] sm:$0xf]  ;;  %v1157_v60 = vshrl.u32 %v4544_v59, 16  ;;  %v1160_v8 = vshll.u32 %v4544_v59, 16  ;;  %v731_v63 = vor.u32 %v729_v9, %v728_v42  ;;  %982 = vst [vmem:[#allocation2 + $0x54] sm:$0xf] %v981_v12 }
  0x99   : > { %v1166_v49 = vshll.u32 %v4551_v44, 16  ;;  %v1170_v61 = vshrl.u32 %v4551_v44, 16  ;;  %v733_v4 = vrot.slane %v728_v42, 4  ;;  %v447_v10 = vpack.c.bf16 %v415_v51, %v415_v51  ;;  %594 = vst [vmem:[#allocation2 + $0x8c] sm:$0x1] %v593_v41 }
  0x9a   : > { %v4557_v13 = vpack.c.b16 %v1523_v62, %v1522_v1  ;;  %v1159_v16 = vrot.slane %v1157_v60, 4  ;;  %v1162_v5 = vrot.slane %v1160_v8, 5  ;;  %v732_v18 = vsel %vm4088_vm8, %v724_v47, %v731_v63 }
  0x9b   : > { %v4562_v23 = vld [vmem:[#allocation2 + $0x20] sm:$0x1]  ;;  %v1168_v26 = vrot.slane %v1166_v49, 5  ;;  %v1172_v27 = vrot.slane %v1170_v61, 4  ;;  %983 = vst.msk [vmem:[#allocation2 + $0x58] sm:$0xf] %vm459_vm5, %v732_v18  ;;  %v985_v28 = vsel %vm4019_vm3, %v733_v4, %v984_v35  ;;  %v448_v30 = vpack.c.bf16 %v416_v52, %v416_v52 }
  0x9c   : > { %3420 = vmatmul.msk.bf16.gmra.mxu3 %vm1542_vm12, %v4557_v13  ;;  %v1163_v31 = vor.u32 %v1162_v5, %v1159_v16  ;;  %v1176_v6 = vshll.u32 %v4562_v23, 16  ;;  %986 = vst [vmem:[#allocation2 + $0x5c] sm:$0x1] %v985_v28  ;;  %v786_v24 = vshrl.u32 %v447_v10, 16  ;;  %v789_v36 = vshll.u32 %v447_v10, 16 }
  0x9d   : > { %v1173_v2 = vor.u32 %v1172_v27, %v1168_v26  ;;  %480 = vst.msk [vmem:[%s4072_s13 + $0x50] sm:$0xf] %vm459_vm5, %v447_v10  ;;  %v794_v37 = vshrl.u32 %v448_v30, 16  ;;  %v797_v9 = vshll.u32 %v448_v30, 16  ;;  %v391_v46 = vadd.f32 %v4439_v11, %v356_v54  ;;  %v548_v61 = vld [vmem:[#allocation2 + $0xb4] sm:$0x1] }
  0x9e   : > { %v1164_v39 = vrot.slane %v1163_v31, 4  ;;  %v1178_v40 = vrot.slane %v1176_v6, 5  ;;  %481 = vst.msk [vmem:[%s4072_s13 + $0x54] sm:$0xf] %vm459_vm5, %v448_v30  ;;  %v788_v1 = vrot.slane %v786_v24, 7  ;;  %v392_v51 = vadd.f32 %v4439_v11, %v357_v17 }
  0x9f   : > { %v1174_v47 = vrot.slane %v1173_v2, 4  ;;  %v4577_v42 = vld [vmem:[#allocation2 + $0x54] sm:$0xf]  ;;  %v796_v35 = vrot.slane %v794_v37, 7  ;;  %v332_v52 = vmul.f32 %v4426_v53, %v297_v20  ;;  %v1008_v62 = vld [vmem:[#allocation2 + $0x84] sm:$0xf] }
  0xa0   : > { %v1169_v32 = vsel %vm4181_vm13, %v1164_v39, %v1168_v26  ;;  %v1277_v58 = vshrl.u32 %v4577_v42, 16  ;;  %v1280_v12 = vshll.u32 %v4577_v42, 16  ;;  %v791_v41 = vor.u32 %v789_v36, %v788_v1  ;;  %v1012_v49 = vld [vmem:[#allocation2 + $0x8c] sm:$0x1]  ;;  %v604_v31 = vld [vmem:[#allocation2 + $0xbc] sm:$0x1] }
  0xa1   : > { %v1179_v54 = vsel %vm4181_vm13, %v1174_v47, %v1178_v40  ;;  %v1498_v60 = vunpack.c.l.b16 %v1169_v32  ;;  %v792_v8 = vrot.slane %v788_v1, 4  ;;  %v799_v63 = vor.u32 %v797_v9, %v796_v35  ;;  %v298_v2 = vld [vmem:[%s4035_s21 + $0x28] sm:$0xff]  ;;  %v512_v37 = vld [vmem:[#allocation2 + $0x24] sm:$0x1] }
  0xa2   : > { %v1499_v4 = vunpack.c.l.b16 %v1179_v54  ;;  %v4587_v10 = vld [vmem:[#allocation2 + $0x58] sm:$0xf]  ;;  %v1279_v16 = vrot.slane %v1277_v58, 4  ;;  %v1282_v5 = vrot.slane %v1280_v12, 5  ;;  %v801_v18 = vrot.slane %v796_v35, 4 }
  0xa3   : > { %v4589_v22 = vld [vmem:[#allocation2 + $0x5c] sm:$0x1]  ;;  %v1286_v26 = vshll.u32 %v4587_v10, 16  ;;  %v1290_v27 = vshrl.u32 %v4587_v10, 16  ;;  %v800_v28 = vsel %vm4088_vm8, %v792_v8, %v799_v63  ;;  %v1009_v30 = vsel %vm4098_vm9, %v791_v41, %v1008_v62 }
  0xa4   : > { %v4597_v6 = vpack.c.b16 %v1499_v4, %v1498_v60  ;;  %v1283_v24 = vor.u32 %v1282_v5, %v1279_v16  ;;  %v1296_v36 = vshll.u32 %v4589_v22, 16  ;;  %1010 = vst [vmem:[#allocation2 + $0x84] sm:$0xf] %v1009_v30  ;;  %v1013_v20 = vsel %vm4019_vm3, %v801_v18, %v1012_v49 }
  0xa5   : > { %v1288_v9 = vrot.slane %v1286_v26, 5  ;;  %v1292_v17 = vrot.slane %v1290_v27, 4  ;;  %1011 = vst.msk [vmem:[#allocation2 + $0x88] sm:$0xf] %vm459_vm5, %v800_v28  ;;  %v423_v39 = vmax.f32 %v391_v46, 0.0  ;;  %v424_v40 = vmax.f32 %v392_v51, 0.0 }
  0xa6   : > { %3408 = vmatmul.msk.bf16.gmra.mxu0 %vm1542_vm12, %v4597_v6  ;;  %v1284_v1 = vrot.slane %v1283_v24, 4  ;;  %v1298_v47 = vrot.slane %v1296_v36, 5  ;;  %1014 = vst [vmem:[#allocation2 + $0x8c] sm:$0x1] %v1013_v20  ;;  %v549_v35 = vsel %vm4019_vm3, 0, %v548_v61  ;;  %v605_v32 = vsel %vm4028_vm6, 0, %v604_v31 }
  0xa7   : > { %v1293_v58 = vor.u32 %v1292_v17, %v1288_v9  ;;  %v455_v12 = vpack.c.bf16 %v423_v39, %v423_v39  ;;  %v456_v41 = vpack.c.bf16 %v424_v40, %v424_v40  ;;  %550 = vst [vmem:[#allocation2 + $0xb4] sm:$0x1] %v549_v35  ;;  %v333_v46 = vmul.f32 %v4426_v53, %v298_v2  ;;  %v568_v51 = vld [vmem:[#allocation2 + $0x2c] sm:$0x1] }
  0xa8   : > { %v1289_v62 = vsel %vm4181_vm13, %v1284_v1, %v1288_v9  ;;  %606 = vst [vmem:[#allocation2 + $0xbc] sm:$0x1] %v605_v32  ;;  %v367_v54 = vadd.f32 %v4439_v11, %v332_v52  ;;  %v513_v60 = vsel %vm4019_vm3, 0, %v512_v37  ;;  %v569_v16 = vsel %vm4028_vm6, 0, %v568_v51 }
  0xa9   : > { %v1294_v8 = vrot.slane %v1293_v58, 4  ;;  %488 = vst.msk [vmem:[%s4072_s13 + $0x70] sm:$0xf] %vm459_vm5, %v455_v12  ;;  %v854_v63 = vshrl.u32 %v455_v12, 16  ;;  %v857_v49 = vshll.u32 %v455_v12, 16  ;;  %v1508_v61 = vunpack.c.l.b16 %v1289_v62 }
  0xaa   : > { %489 = vst.msk [vmem:[%s4072_s13 + $0x74] sm:$0xf] %vm459_vm5, %v456_v41  ;;  %v862_v4 = vshrl.u32 %v456_v41, 16  ;;  %v865_v53 = vshll.u32 %v456_v41, 16  ;;  %v368_v26 = vadd.f32 %v4439_v11, %v333_v46  ;;  %v399_v27 = vmax.f32 %v367_v54, 0.0 }
  0xab   : > { %v1299_v5 = vsel %vm4181_vm13, %v1294_v8, %v1298_v47  ;;  %v4624_v52 = vld [vmem:[#allocation2 + $0x84] sm:$0xf]  ;;  %v856_v18 = vrot.slane %v854_v63, 7  ;;  %514 = vst [vmem:[#allocation2 + $0x24] sm:$0x1] %v513_v60 }
  0xac   : > { %v1509_v28 = vunpack.c.l.b16 %v1299_v5  ;;  %v4627_v30 = vld [vmem:[#allocation2 + $0x88] sm:$0xf]  ;;  %v1373_v31 = vshrl.u32 %v4624_v52, 16  ;;  %v1376_v24 = vshll.u32 %v4624_v52, 16  ;;  %v864_v36 = vrot.slane %v862_v4, 7 }
  0xad   : > { %v4631_v20 = vld [vmem:[#allocation2 + $0x8c] sm:$0x1]  ;;  %v1382_v2 = vshll.u32 %v4627_v30, 16  ;;  %v1386_v37 = vshrl.u32 %v4627_v30, 16  ;;  %v859_v9 = vor.u32 %v857_v49, %v856_v18  ;;  %v860_v17 = vrot.slane %v856_v18, 4 }
  0xae   : > { %v4635_v39 = vpack.c.b16 %v1509_v28, %v1508_v61  ;;  %v1375_v11 = vrot.slane %v1373_v31, 4  ;;  %v1378_v40 = vrot.slane %v1376_v24, 5  ;;  %v1392_v1 = vshll.u32 %v4631_v20, 16  ;;  %v1036_v47 = vld [vmem:[#allocation2 + $0xb4] sm:$0xf] }
  0xaf   : > { %v1384_v35 = vrot.slane %v1382_v2, 5  ;;  %v1388_v32 = vrot.slane %v1386_v37, 4  ;;  %v867_v58 = vor.u32 %v865_v53, %v864_v36  ;;  %v1040_v12 = vld [vmem:[#allocation2 + $0xbc] sm:$0x1]  ;;  %v869_v51 = vrot.slane %v864_v36, 4 }
  0xb0   : > { %5552 = vst [vmem:[#allocation12_spill] sm:$0xff] %v4635_v39  ;;  %3413 = vmatmul.msk.bf16.gmra.mxu1 %vm1542_vm12, %v4635_v39  ;;  %v1379_v41 = vor.u32 %v1378_v40, %v1375_v11  ;;  %v1394_v46 = vrot.slane %v1392_v1, 5  ;;  %v1037_v62 = vsel %vm4098_vm9, %v859_v9, %v1036_v47  ;;  %v400_v8 = vmax.f32 %v368_v26, 0.0  ;;  %v3819_v24 = vld [vmem:[#allocation2 + $0x8] sm:$0x1] }
  0xb1   : > { %570 = vst [vmem:[#allocation2 + $0x2c] sm:$0x1] %v569_v16  ;;  %v1389_v54 = vor.u32 %v1388_v32, %v1384_v35  ;;  %v868_v60 = vsel %vm4088_vm8, %v860_v17, %v867_v58  ;;  %v431_v63 = vpack.c.bf16 %v399_v27, %v399_v27  ;;  %v1041_v61 = vsel %vm4019_vm3, %v869_v51, %v1040_v12  ;;  %v3820_v40 = vld [vmem:[#allocation2 + $0x4] sm:$0xf]  ;;  %v3591_v47 = vld [vmem:[%s5497_s3 + $0xc] sm:$0x3] }
  0xb2   : > { %1038 = vst [vmem:[#allocation2 + $0xb4] sm:$0xf] %v1037_v62  ;;  %v1380_v49 = vrot.slane %v1379_v41, 4  ;;  %v432_v53 = vpack.c.bf16 %v400_v8, %v400_v8  ;;  %v1928_v36 = vrot.slane %v3819_v24, 5  ;;  %v952_v9 = vld [vmem:[#allocation2 + $0x24] sm:$0xf] }
  0xb3   : > { %1039 = vst.msk [vmem:[#allocation2 + $0xb8] sm:$0xf] %vm459_vm5, %v868_v60  ;;  %v1390_v4 = vrot.slane %v1389_v54, 4  ;;  %v650_v5 = vshrl.u32 %v431_v63, 16  ;;  %v653_v18 = vshll.u32 %v431_v63, 16  ;;  %v1925_v1 = vrot.slane %v3820_v40, 5 }
  0xb4   : > { %1042 = vst [vmem:[#allocation2 + $0xbc] sm:$0x1] %v1041_v61  ;;  %v1385_v16 = vsel %vm4181_vm13, %v1380_v49, %v1384_v35  ;;  %v658_v31 = vshrl.u32 %v432_v53, 16  ;;  %v661_v37 = vshll.u32 %v432_v53, 16  ;;  %v2698_v41 = vsel %vm1591_vm0, %v3591_v47, 0 }
  0xb5   : > { %464 = vst.msk [vmem:[%s4072_s13 + $0x10] sm:$0xf] %vm459_vm5, %v431_v63  ;;  %v1395_v26 = vsel %vm4181_vm13, %v1390_v4, %v1394_v46  ;;  %v1516_v27 = vunpack.c.l.b16 %v1385_v16  ;;  %v652_v28 = vrot.slane %v650_v5, 7  ;;  %2707 = vmatpush.bf16.msra.mxu2 %v2698_v41  ;;  %v3821_v4 = vld [vmem:[#allocation2] sm:$0xf] }
  0xb6   : > { %465 = vst.msk [vmem:[%s4072_s13 + $0x14] sm:$0xf] %vm459_vm5, %v432_v53  ;;  %v1517_v2 = vunpack.c.l.b16 %v1395_v26  ;;  %v660_v11 = vrot.slane %v658_v31, 7  ;;  %v3502_v53 = vrot.slane %v3821_v4, 9  ;;  %v1927_v26 = vrot.slane %v1925_v1, 4 }
  0xb7   : > { %v655_v17 = vor.u32 %v653_v18, %v652_v28  ;;  %v656_v58 = vrot.slane %v652_v28, 4  ;;  %v3574_v4 = vld [vmem:[%s5497_s3 + $0xa] sm:$0x3] }
  0xb8   : > { %v4658_v35 = vpack.c.b16 %v1517_v2, %v1516_v27  ;;  %v956_v12 = vld [vmem:[#allocation2 + $0x2c] sm:$0x1]  ;;  %v663_v54 = vor.u32 %v661_v37, %v660_v11  ;;  %v665_v60 = vrot.slane %v660_v11, 4  ;;  %v3654_v2 = vld [vmem:[#allocation2] sm:$0xff]  ;;  %v1926_v47 = vsel %vm4682_vm1, %v3502_v53, %v1925_v1 }
  0xb9   : > { %v4660_v32 = vld [vmem:[#allocation2 + $0xb4] sm:$0xf]  ;;  %v953_v61 = vsel %vm4098_vm9, %v655_v17, %v952_v9 }
  0xba   : > { %5553 = vst [vmem:[#allocation13_spill] sm:$0xff] %v4658_v35  ;;  %v4663_v46 = vld [vmem:[#allocation2 + $0xb8] sm:$0xf]  ;;  %v1469_v51 = vshrl.u32 %v4660_v32, 16  ;;  %v1472_v62 = vshll.u32 %v4660_v32, 16  ;;  %3417 = vmatmul.msk.bf16.gmra.mxu2 %vm1542_vm12, %v4658_v35  ;;  %v664_v31 = vsel %vm4088_vm8, %v656_v58, %v663_v54  ;;  %v957_v24 = vsel %vm4019_vm3, %v665_v60, %v956_v12 }
  0xbb   : > { %v4669_v8 = vld [vmem:[#allocation2 + $0xbc] sm:$0x1]  ;;  %v1478_v63 = vshll.u32 %v4663_v46, 16  ;;  %v1482_v49 = vshrl.u32 %v4663_v46, 16  ;;  %954 = vst [vmem:[#allocation2 + $0x24] sm:$0xf] %v953_v61  ;;  %v1929_v58 = vsel %vm4682_vm1, %v1927_v26, %v1928_v36  ;;  %v2037_v60 = vunpack.c.l.b16 %v1926_v47 }
  0xbc   : > { %v1471_v5 = vrot.slane %v1469_v51, 4  ;;  %v1474_v18 = vrot.slane %v1472_v62, 5  ;;  %v1488_v16 = vshll.u32 %v4669_v8, 16  ;;  %955 = vst.msk [vmem:[#allocation2 + $0x28] sm:$0xf] %vm459_vm5, %v664_v31 }
  0xbd   : > { %v1480_v27 = vrot.slane %v1478_v63, 5  ;;  %v1484_v28 = vrot.slane %v1482_v49, 4  ;;  %958 = vst [vmem:[#allocation2 + $0x2c] sm:$0x1] %v957_v24  ;;  %v2038_v63 = vunpack.c.l.b16 %v1929_v58  ;;  %v3612_v36 = vld [vmem:[%s5497_s3 + $0xe] sm:$0x3] }
  0xbe   : > { %v1475_v9 = vor.u32 %v1474_v18, %v1471_v5  ;;  %v1490_v11 = vrot.slane %v1488_v16, 5  ;;  %v2854_v5 = vsel %vm1591_vm0, %v3612_v36, 0  ;;  %v2564_v18 = vsel %vm1591_vm0, %v3574_v4, 0  ;;  %v3630_v16 = vld [vmem:[%s5497_s3 + $0x10] sm:$0x3] }
  0xbf   : > { %v1485_v17 = vor.u32 %v1484_v28, %v1480_v27  ;;  %2863 = vmatpush.bf16.msra.mxu3 %v2854_v5  ;;  %2573 = vmatpush.bf16.msra.mxu1 %v2564_v18  ;;  %v1932_v58 = vrot.slane %v4412_v21, 5  ;;  %v3655_v21 = vld [vmem:[#allocation2 + $0xc] sm:$0xff] }
  0xc0   : > { %v1476_v40 = vrot.slane %v1475_v9, 4  ;;  %3486 = vmatmul.msk.bf16.vlgmr.msrb.gmra.mxu1 %vm1542_vm12, %v3654_v2 }
  0xc1   : > { %v1486_v12 = vrot.slane %v1485_v17, 4  ;;  %v2069_v17 = vpack.c.b16 %v2038_v63, %v2037_v60  ;;  %v3503_v60 = vrot.slane %v4398_v19, 9  ;;  %v1934_v63 = vrot.slane %v1932_v58, 4 }
  0xc2   : > { %v1481_v41 = vsel %vm4181_vm13, %v1476_v40, %v1480_v27  ;;  %v4696_v54 = vld [vmem:[#allocation2 + $0x24] sm:$0xf] }
  0xc3   : > { %v1491_v51 = vsel %vm4181_vm13, %v1486_v12, %v1490_v11  ;;  %v1524_v62 = vunpack.c.l.b16 %v1481_v41  ;;  %v1181_v1 = vshrl.u32 %v4696_v54, 16  ;;  %v1184_v61 = vshll.u32 %v4696_v54, 16  ;;  %v4706_v53 = vld [vmem:[#allocation2 + $0x28] sm:$0xf] }
  0xc4   : > { %v1525_v49 = vunpack.c.l.b16 %v1491_v51  ;;  %v1061_v27 = vld [vmem:[#allocation2 + $0x2c] sm:$0x1]  ;;  %v1190_v24 = vshll.u32 %v4706_v53, 16  ;;  %v1194_v2 = vshrl.u32 %v4706_v53, 16  ;;  %v2994_v11 = vsel %vm1591_vm0, %v3630_v16, 0 }
  0xc5   : > { %v1183_v28 = vrot.slane %v1181_v1, 4  ;;  %v1186_v31 = vrot.slane %v1184_v61, 5  ;;  %v1200_v9 = vshll.u32 %v1061_v27, 16  ;;  %3003 = vmatpush.bf16.msra.mxu0 %v2994_v11  ;;  %v1935_v1 = vrot.slane %v4416_v50, 5 }
  0xc6   : > { %v4713_v26 = vpack.c.b16 %v1525_v49, %v1524_v62  ;;  %v1192_v47 = vrot.slane %v1190_v24, 5  ;;  %v1196_v12 = vrot.slane %v1194_v2, 4  ;;  %v1933_v18 = vsel %vm4682_vm1, %v3503_v60, %v1932_v58 }
  0xc7   : > { %v1187_v40 = vor.u32 %v1186_v31, %v1183_v28  ;;  %v1202_v62 = vrot.slane %v1200_v9, 5  ;;  %v1936_v16 = vsel %vm4682_vm1, %v1934_v63, %v1935_v1  ;;  %v2039_v19 = vunpack.c.l.b16 %v1933_v18  ;;  %v4779_v1 = vpop.f32.mrf.mxu1  ;;  %v4781_v18 = vld [vmem:[#allocation2 + $0x30] sm:$0xff] }
  0xc8   : > { %3421 = vmatmul.msk.bf16.gmra.mxu3 %vm1542_vm12, %v4713_v26  ;;  %v1197_v51 = vor.u32 %v1196_v12, %v1192_v47  ;;  %v2040_v31 = vunpack.c.l.b16 %v1936_v16  ;;  %v3504_v50 = vrot.slane %v4544_v59, 9  ;;  %v1939_v24 = vrot.slane %v4551_v44, 5  ;;  %v4751_v44 = vld [vmem:[#allocation2 + $0x18] sm:$0xff]  ;;  %5556 = vst [vmem:[#allocation14_spill] sm:$0xff] %v4781_v18 }
  0xc9   : > { %v1188_v41 = vrot.slane %v1187_v40, 4  ;;  %v1942_v2 = vrot.slane %v4562_v23, 5  ;;  %v1946_v23 = vrot.slane %v4706_v53, 5  ;;  %v3505_v12 = vrot.slane %v4696_v54, 9  ;;  %v3822_v54 = vld [vmem:[#allocation2 + $0x34] sm:$0xf] }
  0xca   : > { %3519 = vmatmul.msk.bf16.vlgmr.msrb.gmra.mxu2 %vm1542_vm12, %v2069_v17  ;;  %v1198_v61 = vrot.slane %v1197_v51, 4  ;;  %v1940_v9 = vsel %vm4682_vm1, %v3504_v50, %v1939_v24  ;;  %v1941_v17 = vrot.slane %v1939_v24, 4  ;;  %v4742_v11 = vpack.c.b16 %v2040_v31, %v2039_v19  ;;  %v4791_v24 = vpop.f32.mrf.mxu2 }
  0xcb   : > { %v1193_v49 = vsel %vm4181_vm13, %v1188_v41, %v1192_v47  ;;  %v2041_v40 = vunpack.c.l.b16 %v1940_v9  ;;  %v1948_v41 = vrot.slane %v1946_v23, 4  ;;  %v1949_v51 = vrot.slane %v1061_v27, 5 }
  0xcc   : > { %v1500_v36 = vunpack.c.l.b16 %v1193_v49  ;;  %v1203_v4 = vsel %vm4181_vm13, %v1198_v61, %v1202_v62  ;;  %v1943_v47 = vsel %vm4682_vm1, %v1941_v17, %v1942_v2  ;;  %v4763_v62 = vld [vmem:[#allocation2 + $0x24] sm:$0xff]  ;;  %v1947_v49 = vsel %vm4682_vm1, %v3505_v12, %v1946_v23  ;;  %v3823_v61 = vld [vmem:[#allocation2 + $0x30] sm:$0xf]  ;;  %v3825_v17 = vld [vmem:[#allocation2 + $0x40] sm:$0xf] }
  0xcd   : > { %v1501_v5 = vunpack.c.l.b16 %v1203_v4  ;;  %v2042_v58 = vunpack.c.l.b16 %v1943_v47  ;;  %v2043_v60 = vunpack.c.l.b16 %v1947_v49  ;;  %v1953_v27 = vrot.slane %v3822_v54, 5 }
  0xcf   : > { %v4733_v28 = vpack.c.b16 %v1501_v5, %v1500_v36  ;;  %v4749_v59 = vpack.c.b16 %v2042_v58, %v2041_v40  ;;  %v3506_v36 = vrot.slane %v3823_v61, 9  ;;  %v1955_v4 = vrot.slane %v1953_v27, 4  ;;  %v4793_v2 = vpop.f32.mrf.mxu1  ;;  %v3826_v58 = vld [vmem:[#allocation2 + $0x3c] sm:$0xf] }
  0xd0   : > { %3487 = vmatmul.msk.bf16.gmra.mxu1 %vm1542_vm12, %v3655_v21  ;;  %v1960_v40 = vrot.slane %v3825_v17, 5  ;;  %v3507_v23 = vrot.slane %v3826_v58, 9 }
  0xd1   : > { %3409 = vmatmul.msk.bf16.gmra.mxu0 %vm1542_vm12, %v4733_v28  ;;  %v1954_v16 = vsel %vm4682_vm1, %v3506_v36, %v1953_v27  ;;  %v1604_v36 = vpop.f32.mrf.mxu0 }
  0xd2   : > { %v2045_v31 = vunpack.c.l.b16 %v1954_v16  ;;  %v4801_v47 = vpop.f32.mrf.mxu2  ;;  %v1962_v12 = vrot.slane %v1960_v40, 4  ;;  %v1967_v16 = vrot.slane %v4447_v25, 5 }
  0xd4   : > { %v1969_v17 = vrot.slane %v1967_v16, 4 }
  0xd8   : > { %3540 = vmatmul.msk.bf16.vlgmr.msrb.gmra.mxu3 %vm1542_vm12, %v3655_v21  ;;  %v3824_v21 = vld [vmem:[#allocation2 + $0x38] sm:$0x1] }
  0xd9   : > { %v1956_v5 = vrot.slane %v3824_v21, 5 }
  0xda   : > { %3520 = vmatmul.msk.bf16.gmra.mxu2 %vm1542_vm12, %v4742_v11 }
  0xdb   : > { %v1957_v19 = vsel %vm4682_vm1, %v1955_v4, %v1956_v5 }
  0xdc   : > { %v2046_v50 = vunpack.c.l.b16 %v1957_v19 }
  0xde   : > { %v4795_v9 = vpack.c.b16 %v2046_v50, %v2045_v31  ;;  %v3828_v31 = vld [vmem:[#allocation2 + $0x48] sm:$0xf] }
  0xdf   : > { %v3508_v50 = vrot.slane %v3828_v31, 9  ;;  %v1974_v31 = vrot.slane %v4587_v10, 5 }
  0xe0   : > { %3488 = vmatmul.msk.bf16.gmra.mxu1 %vm1542_vm12, %v4751_v44  ;;  %5557 = vst [vmem:[#allocation15_spill] sm:$0xff] %v4795_v9  ;;  %v4803_v49 = vpop.f32.mrf.mxu1 }
  0xe1   : > { %3557 = vmatmul.msk.bf16.vlgmr.msrb.gmra.mxu0 %vm1542_vm12, %v4463_v56  ;;  %v1950_v56 = vsel %vm4682_vm1, %v1948_v41, %v1949_v51  ;;  %v3827_v41 = vld [vmem:[#allocation2 + $0x44] sm:$0x1]  ;;  %v1968_v25 = vsel %vm4682_vm1, %v3508_v50, %v1967_v16 }
  0xe2   : > { %v2044_v53 = vunpack.c.l.b16 %v1950_v56  ;;  %v1963_v51 = vrot.slane %v3827_v41, 5  ;;  %v4805_v56 = vld [vmem:[#allocation2 + $0x3c] sm:$0xff] }
  0xe3   : > { %5558 = vst [vmem:[#allocation16_spill] sm:$0xff] %v4805_v56 }
  0xe4   : > { %v4773_v63 = vpack.c.b16 %v2044_v53, %v2043_v60  ;;  %v4807_v60 = vpop.f32.mrf.mxu3  ;;  %v1961_v53 = vsel %vm4682_vm1, %v3507_v23, %v1960_v40  ;;  %v1964_v54 = vsel %vm4682_vm1, %v1962_v12, %v1963_v51  ;;  %v1970_v40 = vrot.slane %v4453_v38, 5  ;;  %v4833_v23 = vpop.f32.mrf.mxu0  ;;  %v4835_v12 = vld [vmem:[#allocation2 + $0x48] sm:$0xff] }
  0xe5   : > { %5559 = vst [vmem:[#allocation17_spill] sm:$0xff] %v4807_v60  ;;  %v2047_v27 = vunpack.c.l.b16 %v1961_v53  ;;  %v2048_v61 = vunpack.c.l.b16 %v1964_v54  ;;  %v2049_v38 = vunpack.c.l.b16 %v1968_v25  ;;  %v1977_v25 = vrot.slane %v4589_v22, 5 }
  0xe6   : > { %5562 = vst [vmem:[#allocation20_spill] sm:$0xff] %v4835_v12  ;;  %v1971_v51 = vsel %vm4682_vm1, %v1969_v17, %v1970_v40  ;;  %v3509_v17 = vrot.slane %v4577_v42, 9  ;;  %v1976_v40 = vrot.slane %v1974_v31, 4 }
  0xe7   : > { %v4821_v5 = vpack.c.b16 %v2048_v61, %v2047_v27  ;;  %v2050_v54 = vunpack.c.l.b16 %v1971_v51 }
  0xe8   : > { %3541 = vmatmul.msk.bf16.gmra.mxu3 %vm1542_vm12, %v4751_v44  ;;  %v4817_v4 = vpop.f32.mrf.mxu1  ;;  %v1978_v10 = vsel %vm4682_vm1, %v1976_v40, %v1977_v25 }
  0xe9   : > { %5560 = vst [vmem:[#allocation18_spill] sm:$0xff] %v4821_v5  ;;  %v4851_v61 = vpack.c.b16 %v2050_v54, %v2049_v38  ;;  %v4866_v54 = vld [vmem:[#allocation2 + $0x54] sm:$0xff] }
  0xea   : > { %3521 = vmatmul.msk.bf16.gmra.mxu2 %vm1542_vm12, %v4749_v59  ;;  %v4819_v21 = vpop.f32.mrf.mxu2  ;;  %5567 = vst [vmem:[#allocation25_spill] sm:$0xff] %v4866_v54 }
  0xeb   : > { %5564 = vst [vmem:[#allocation22_spill] sm:$0xff] %v4851_v61 }
  0xec   : > { %v4826_v19 = vpop.f32.mrf.mxu3 }
  0xed   : > { %5561 = vst [vmem:[#allocation19_spill] sm:$0xff] %v4826_v19 }
  0xf0   : > { %3489 = vmatmul.msk.bf16.gmra.mxu1 %vm1542_vm12, %v4763_v62 }
  0xf1   : > { %3558 = vmatmul.msk.bf16.gmra.mxu0 %vm1542_vm12, %v4597_v6 }
  0xf2   : > { %v4837_v41 = vpop.f32.mrf.mxu2 }
  0xf6   : > { %v4845_v53 = vpop.f32.mrf.mxu3 }
  0xf7   : > { %5563 = vst [vmem:[#allocation21_spill] sm:$0xff] %v4845_v53  ;;  %v1975_v53 = vsel %vm4682_vm1, %v3509_v17, %v1974_v31  ;;  %v3829_v17 = vld [vmem:[#allocation2 + $0x64] sm:$0xf] }
  0xf8   : > { %3542 = vmatmul.msk.bf16.gmra.mxu3 %vm1542_vm12, %v4763_v62  ;;  %v2051_v42 = vunpack.c.l.b16 %v1975_v53  ;;  %v1981_v40 = vrot.slane %v3829_v17, 5  ;;  %v3830_v53 = vld [vmem:[#allocation2 + $0x68] sm:$0x1] }
  0xf9   : > { %v1984_v25 = vrot.slane %v3830_v53, 5 }
  0xfa   : > { %3522 = vmatmul.msk.bf16.gmra.mxu2 %vm1542_vm12, %v4773_v63  ;;  %v1609_v16 = vpop.f32.mrf.mxu0 }
  0xfe   : > { %v4862_v51 = vpop.f32.mrf.mxu3 }
  0xff   : > { %5566 = vst [vmem:[#allocation24_spill] sm:$0xff] %v4862_v51 }
 0x100   : > { %3490 = vmatmul.msk.bf16.gmra.mxu1 %vm1542_vm12, %v4781_v18 }
 0x101   : > { %3559 = vmatmul.msk.bf16.gmra.mxu0 %vm1542_vm12, %v4733_v28 }
 0x102   : > { %v4831_v58 = vpop.f32.mrf.mxu1  ;;  %v4874_v19 = vpop.f32.mrf.mxu0 }
 0x108   : > { %3543 = vmatmul.msk.bf16.gmra.mxu3 %vm1542_vm12, %v4781_v18 }
 0x10a   : > { %3523 = vmatmul.msk.bf16.gmra.mxu2 %vm1542_vm12, %v4795_v9  ;;  %v4849_v27 = vpop.f32.mrf.mxu1 }
 0x110   : > { %3491 = vmatmul.msk.bf16.gmra.mxu1 %vm1542_vm12, %v4805_v56 }
 0x111   : > { %3560 = vmatmul.msk.bf16.gmra.mxu0 %vm1542_vm12, %v4201_v14  ;;  %v4856_v50 = vpop.f32.mrf.mxu2 }
 0x112   : > { %5565 = vst [vmem:[#allocation23_spill] sm:$0xff] %v4856_v50 }
 0x118   : > { %3544 = vmatmul.msk.bf16.gmra.mxu3 %vm1542_vm12, %v4805_v56 }
 0x119   : > { %v4878_v22 = vpop.f32.mrf.mxu2 }
 0x11a   : > { %3524 = vmatmul.msk.bf16.gmra.mxu2 %vm1542_vm12, %v4821_v5  ;;  %5568 = vst [vmem:[#allocation26_spill] sm:$0xff] %v4878_v22  ;;  %v4914_v22 = vld [vmem:[#allocation2 + $0x6c] sm:$0xff] }
 0x11b   : > { %5577 = vst [vmem:[#allocation35_spill] sm:$0xff] %v4914_v22 }
 0x11f   : > { %v4882_v60 = vpop.f32.mrf.mxu3 }
 0x120   : > { %3492 = vmatmul.msk.bf16.gmra.mxu1 %vm1542_vm12, %v4835_v12  ;;  %5569 = vst [vmem:[#allocation27_spill] sm:$0xff] %v4882_v60  ;;  %v4892_v60 = vld [vmem:[#allocation2 + $0x60] sm:$0xff] }
 0x121   : > { %3561 = vmatmul.msk.bf16.gmra.mxu0 %vm1542_vm12, %v4357_v33  ;;  %5572 = vst [vmem:[#allocation30_spill] sm:$0xff] %v4892_v60 }
 0x123   : > { %v1614_v33 = vpop.f32.mrf.mxu0 }
 0x128   : > { %3545 = vmatmul.msk.bf16.gmra.mxu3 %vm1542_vm12, %v4835_v12  ;;  %v1983_v12 = vrot.slane %v1981_v40, 4 }
 0x12a   : > { %3525 = vmatmul.msk.bf16.gmra.mxu2 %vm1542_vm12, %v4851_v61  ;;  %v2052_v61 = vunpack.c.l.b16 %v1978_v10  ;;  %v3831_v10 = vld [vmem:[#allocation2 + $0x60] sm:$0xf]  ;;  %v1985_v17 = vsel %vm4682_vm1, %v1983_v12, %v1984_v25  ;;  %v3833_v25 = vld [vmem:[#allocation2 + $0x74] sm:$0x1] }
 0x12c   : > { %v4884_v31 = vpack.c.b16 %v2052_v61, %v2051_v42 }
 0x12d   : > { %v4864_v38 = vpop.f32.mrf.mxu1 }
 0x12e   : > { %5570 = vst [vmem:[#allocation28_spill] sm:$0xff] %v4884_v31 }
 0x130   : > { %3493 = vmatmul.msk.bf16.gmra.mxu1 %vm1542_vm12, %v4866_v54 }
 0x131   : > { %3562 = vmatmul.msk.bf16.gmra.mxu0 %vm1542_vm12, %v4485_v43  ;;  %v3510_v43 = vrot.slane %v3831_v10, 9  ;;  %v2054_v10 = vunpack.c.l.b16 %v1985_v17  ;;  %v3834_v17 = vld [vmem:[#allocation2 + $0x6c] sm:$0xf] }
 0x133   : > { %v1982_v42 = vsel %vm4682_vm1, %v3510_v43, %v1981_v40  ;;  %v3832_v43 = vld [vmem:[#allocation2 + $0x70] sm:$0xf] }
 0x134   : > { %v2053_v53 = vunpack.c.l.b16 %v1982_v42  ;;  %v1988_v12 = vrot.slane %v3832_v43, 5  ;;  %v1991_v42 = vrot.slane %v3833_v25, 5 }
 0x135   : > { %v4880_v51 = vpop.f32.mrf.mxu1 }
 0x138   : > { %3546 = vmatmul.msk.bf16.gmra.mxu3 %vm1542_vm12, %v4866_v54  ;;  %v4898_v54 = vpop.f32.mrf.mxu3 }
 0x139   : > { %5573 = vst [vmem:[#allocation31_spill] sm:$0xff] %v4898_v54  ;;  %v3511_v54 = vrot.slane %v3834_v17, 9 }
 0x13a   : > { %3526 = vmatmul.msk.bf16.gmra.mxu2 %vm1542_vm12, %v4884_v31 }
 0x13d   : > { %v4890_v5 = vpop.f32.mrf.mxu2  ;;  %v1824_v56 = vpop.f32.mrf.mxu1 }
 0x13e   : > { %5571 = vst [vmem:[#allocation29_spill] sm:$0xff] %v4890_v5  ;;  %v1825_v61 = vadd.f32 %v1824_v56, %v1604_v36  ;;  %v1616_v56 = vpop.f32.mrf.mxu0  ;;  %v4906_v36 = vpack.c.b16 %v2054_v10, %v2053_v53 }
 0x140   : > { %3494 = vmatmul.msk.bf16.gmra.mxu1 %vm1542_vm12, %v4892_v60  ;;  %5575 = vst [vmem:[#allocation33_spill] sm:$0xff] %v4906_v36 }
 0x141   : > { %3563 = vmatmul.msk.bf16.gmra.mxu0 %vm1542_vm12, %v4635_v39  ;;  %v1990_v39 = vrot.slane %v1988_v12, 4 }
 0x143   : > { %v1992_v43 = vsel %vm4682_vm1, %v1990_v39, %v1991_v42 }
 0x145   : > { %v4904_v31 = vpop.f32.mrf.mxu2  ;;  %v1826_v5 = vpop.f32.mrf.mxu1 }
 0x146   : > { %5574 = vst [vmem:[#allocation32_spill] sm:$0xff] %v4904_v31 }
 0x148   : > { %3547 = vmatmul.msk.bf16.gmra.mxu3 %vm1542_vm12, %v4892_v60  ;;  %v1989_v60 = vsel %vm4682_vm1, %v3511_v54, %v1988_v12  ;;  %v3835_v12 = vld [vmem:[#allocation2 + $0x7c] sm:$0xf] }
 0x149   : > { %v2055_v17 = vunpack.c.l.b16 %v1989_v60  ;;  %v1995_v42 = vrot.slane %v3835_v12, 5  ;;  %v3836_v60 = vld [vmem:[#allocation2 + $0x80] sm:$0x1] }
 0x14a   : > { %3527 = vmatmul.msk.bf16.gmra.mxu2 %vm1542_vm12, %v4906_v36  ;;  %v2056_v36 = vunpack.c.l.b16 %v1992_v43  ;;  %v1998_v43 = vrot.slane %v3836_v60, 5 }
 0x14b   : > { %v4910_v40 = vpop.f32.mrf.mxu3 }
 0x14c   : > { %5576 = vst [vmem:[#allocation34_spill] sm:$0xff] %v4910_v40  ;;  %v4927_v54 = vpack.c.b16 %v2056_v36, %v2055_v17  ;;  %v4933_v36 = vld [vmem:[#allocation2 + $0x78] sm:$0xff] }
 0x14d   : > { %v2145_v31 = vpop.f32.mrf.mxu2  ;;  %v1829_v14 = vpop.f32.mrf.mxu1 }
 0x14e   : > { %v2225_v53 = vadd.f32 %v2145_v31, %v1825_v61  ;;  %v1830_v10 = vadd.f32 %v1829_v14, %v1609_v16  ;;  %v1619_v40 = vpop.f32.mrf.mxu0  ;;  %v1827_v31 = vadd.f32 %v1826_v5, %v4833_v23  ;;  %v1997_v23 = vrot.slane %v1995_v42, 4 }
 0x150   : > { %3495 = vmatmul.msk.bf16.gmra.mxu1 %vm1542_vm12, %v4914_v22  ;;  %v1999_v12 = vsel %vm4682_vm1, %v1997_v23, %v1998_v43 }
 0x151   : > { %3564 = vmatmul.msk.bf16.gmra.mxu0 %vm1542_vm12, %v4214_v29  ;;  %v3837_v29 = vld [vmem:[#allocation2 + $0x78] sm:$0xf]  ;;  %v2058_v60 = vunpack.c.l.b16 %v1999_v12 }
 0x152   : > { %v3512_v5 = vrot.slane %v3837_v29, 9 }
 0x153   : > { %v4922_v25 = vpop.f32.mrf.mxu3 }
 0x154   : > { %5578 = vst [vmem:[#allocation36_spill] sm:$0xff] %v4922_v25 }
 0x155   : > { %v2147_v14 = vpop.f32.mrf.mxu2  ;;  %v1831_v16 = vpop.f32.mrf.mxu1 }
 0x156   : > { %v2226_v61 = vadd.f32 %v2147_v14, %v1827_v31  ;;  %v1621_v39 = vpop.f32.mrf.mxu0 }
 0x158   : > { %3548 = vmatmul.msk.bf16.gmra.mxu3 %vm1542_vm12, %v4914_v22  ;;  %v1996_v22 = vsel %vm4682_vm1, %v3512_v5, %v1995_v42 }
 0x15a   : > { %3528 = vmatmul.msk.bf16.gmra.mxu2 %vm1542_vm12, %v4927_v54 }
 0x15b   : > { %v2279_v9 = vpop.f32.mrf.mxu3 }
 0x15c   : > { %v2359_v25 = vadd.f32 %v2279_v9, %v2225_v53  ;;  %v2057_v53 = vunpack.c.l.b16 %v1996_v22 }
 0x15d   : > { %v2150_v50 = vpop.f32.mrf.mxu2  ;;  %v1834_v31 = vpop.f32.mrf.mxu1 }
 0x15e   : > { %v2227_v17 = vadd.f32 %v2150_v50, %v1830_v10  ;;  %v1835_v14 = vadd.f32 %v1834_v31, %v1614_v33  ;;  %v2435_v18 = vpop.f32.mrf.mxu0  ;;  %v1832_v33 = vadd.f32 %v1831_v16, %v4874_v19  ;;  %v4946_v31 = vpack.c.b16 %v2058_v60, %v2057_v53  ;;  %v4957_v53 = vld [vmem:[#allocation2 + $0x84] sm:$0xff] }
 0x15f   : > { %v4941_v9 = vadd.f32 %v2435_v18, %v2359_v25  ;;  %v2002_v25 = vrot.slane %v4627_v30, 5  ;;  %v2005_v19 = vrot.slane %v4631_v20, 5 }
 0x160   : > { %3496 = vmatmul.msk.bf16.gmra.mxu1 %vm1542_vm12, %v4933_v36 }
 0x161   : > { %3565 = vmatmul.msk.bf16.gmra.mxu0 %vm1542_vm12, %v4378_v48  ;;  %v2004_v12 = vrot.slane %v2002_v25, 4 }
 0x163   : > { %v2281_v29 = vpop.f32.mrf.mxu3 }
 0x164   : > { %v2360_v50 = vadd.f32 %v2281_v29, %v2226_v61  ;;  %v3513_v61 = vrot.slane %v4624_v52, 9 }
 0x165   : > { %v2152_v10 = vpop.f32.mrf.mxu2  ;;  %v1836_v42 = vpop.f32.mrf.mxu1 }
 0x166   : > { %v2228_v5 = vadd.f32 %v2152_v10, %v1832_v33  ;;  %v1837_v43 = vadd.f32 %v1836_v42, %v1616_v56  ;;  %v2437_v18 = vpop.f32.mrf.mxu0  ;;  %v2003_v30 = vsel %vm4682_vm1, %v3513_v61, %v2002_v25 }
 0x167   : > { %v4951_v22 = vadd.f32 %v2437_v18, %v2360_v50  ;;  %v2006_v50 = vsel %vm4682_vm1, %v2004_v12, %v2005_v19  ;;  %v3838_v12 = vld [vmem:[#allocation2 + $0x94] sm:$0xf] }
 0x168   : > { %3549 = vmatmul.msk.bf16.gmra.mxu3 %vm1542_vm12, %v4933_v36  ;;  %v2060_v42 = vunpack.c.l.b16 %v2006_v50 }
 0x16a   : > { %3529 = vmatmul.msk.bf16.gmra.mxu2 %vm1542_vm12, %v4946_v31 }
 0x16b   : > { %v2284_v23 = vpop.f32.mrf.mxu3 }
 0x16c   : > { %v2361_v16 = vadd.f32 %v2284_v23, %v2227_v17  ;;  %v2059_v17 = vunpack.c.l.b16 %v2003_v30  ;;  %v3839_v30 = vld [vmem:[#allocation2 + $0x98] sm:$0x1] }
 0x16d   : > { %v2155_v29 = vpop.f32.mrf.mxu2  ;;  %v1839_v56 = vpop.f32.mrf.mxu1 }
 0x16e   : > { %v2229_v60 = vadd.f32 %v2155_v29, %v1835_v14  ;;  %v1840_v33 = vadd.f32 %v1839_v56, %v1619_v40  ;;  %v2440_v10 = vpop.f32.mrf.mxu0  ;;  %v4969_v25 = vpack.c.b16 %v2060_v42, %v2059_v17  ;;  %v4977_v42 = vld [vmem:[#allocation2 + $0x90] sm:$0xff] }
 0x16f   : > { %v4965_v20 = vadd.f32 %v2440_v10, %v2361_v16  ;;  %v2009_v16 = vrot.slane %v3838_v12, 5  ;;  %v3840_v10 = vld [vmem:[#allocation2 + $0x90] sm:$0xf]  ;;  %5582 = vst [vmem:[#allocation40_spill] sm:$0xff] %v4977_v42 }
 0x170   : > { %3497 = vmatmul.msk.bf16.gmra.mxu1 %vm1542_vm12, %v4957_v53  ;;  %5580 = vst [vmem:[#allocation38_spill] sm:$0xff] %v4969_v25 }
 0x171   : > { %5579 = vst [vmem:[#allocation37_spill] sm:$0xff] %v4965_v20  ;;  %3566 = vmatmul.msk.bf16.gmra.mxu0 %vm1542_vm12, %v4518_v45  ;;  %v323_v20 = vld [vmem:[%s4035_s21 + $0xf0] sm:$0xff] }
 0x173   : > { %v2286_v52 = vpop.f32.mrf.mxu3 }
 0x174   : > { %v2362_v14 = vadd.f32 %v2286_v52, %v2228_v5  ;;  %v2012_v5 = vrot.slane %v3839_v30, 5  ;;  %v2011_v52 = vrot.slane %v2009_v16, 4 }
 0x175   : > { %v2157_v40 = vpop.f32.mrf.mxu2  ;;  %v1841_v18 = vpop.f32.mrf.mxu1 }
 0x176   : > { %v2230_v23 = vadd.f32 %v2157_v40, %v1837_v43  ;;  %v1842_v61 = vadd.f32 %v1841_v18, %v1621_v39  ;;  %v2442_v19 = vpop.f32.mrf.mxu0  ;;  %v3514_v43 = vrot.slane %v3840_v10, 9 }
 0x177   : > { %v4973_v29 = vadd.f32 %v2442_v19, %v2362_v14  ;;  %v2013_v14 = vsel %vm4682_vm1, %v2011_v52, %v2012_v5 }
 0x178   : > { %3550 = vmatmul.msk.bf16.gmra.mxu3 %vm1542_vm12, %v4957_v53  ;;  %v2010_v18 = vsel %vm4682_vm1, %v3514_v43, %v2009_v16  ;;  %v2062_v30 = vunpack.c.l.b16 %v2013_v14  ;;  %v3841_v43 = vld [vmem:[#allocation2 + $0xa0] sm:$0xf] }
 0x179   : > { %5581 = vst [vmem:[#allocation39_spill] sm:$0xff] %v4973_v29 }
 0x17a   : > { %3530 = vmatmul.msk.bf16.gmra.mxu2 %vm1542_vm12, %v4969_v25 }
 0x17b   : > { %v2289_v56 = vpop.f32.mrf.mxu3 }
 0x17c   : > { %v2363_v50 = vadd.f32 %v2289_v56, %v2229_v60  ;;  %v2061_v56 = vunpack.c.l.b16 %v2010_v18 }
 0x17d   : > { %v2160_v17 = vpop.f32.mrf.mxu2  ;;  %v1844_v39 = vpop.f32.mrf.mxu1 }
 0x17e   : > { %v2231_v40 = vadd.f32 %v2160_v17, %v1840_v33  ;;  %v2445_v19 = vpop.f32.mrf.mxu0  ;;  %v4989_v16 = vpack.c.b16 %v2062_v30, %v2061_v56  ;;  %v1845_v30 = vadd.f32 %v1844_v39, %v4779_v1  ;;  %v3845_v39 = vld [vmem:[%s5496_s2] ss:$0 sm:$0xff] }
 0x17f   : > { %v4985_v12 = vadd.f32 %v2445_v19, %v2363_v50  ;;  %v2016_v50 = vrot.slane %v3841_v43, 5 }
 0x180   : > { %3498 = vmatmul.msk.bf16.gmra.mxu1 %vm1542_vm12, %v4977_v42  ;;  %5584 = vst [vmem:[#allocation42_spill] sm:$0xff] %v4989_v16 }
 0x181   : > { %5583 = vst [vmem:[#allocation41_spill] sm:$0xff] %v4985_v12  ;;  %3567 = vmatmul.msk.bf16.gmra.mxu0 %vm1542_vm12, %v4658_v35  ;;  %v2018_v56 = vrot.slane %v2016_v50, 4 }
 0x183   : > { %v2291_v60 = vpop.f32.mrf.mxu3 }
 0x184   : > { %v2364_v10 = vadd.f32 %v2291_v60, %v2230_v23  ;;  %v3842_v23 = vld [vmem:[#allocation2 + $0xa4] sm:$0x1] }
 0x185   : > { %v2162_v33 = vpop.f32.mrf.mxu2  ;;  %v1846_v17 = vpop.f32.mrf.mxu1  ;;  %v2019_v14 = vrot.slane %v3842_v23, 5 }
 0x186   : > { %v2232_v29 = vadd.f32 %v2162_v33, %v1842_v61  ;;  %v2447_v5 = vpop.f32.mrf.mxu0  ;;  %v3843_v61 = vld [vmem:[#allocation2 + $0x9c] sm:$0xf] }
 0x187   : > { %v4993_v52 = vadd.f32 %v2447_v5, %v2364_v10  ;;  %v3515_v60 = vrot.slane %v3843_v61, 9  ;;  %v324_v10 = vld [vmem:[%s4035_s21 + $0xf8] sm:$0xff]  ;;  %s3865_s21 = scalar_lea.hbm %s3864_s9, 128 }
 0x188   : > { %3551 = vmatmul.msk.bf16.gmra.mxu3 %vm1542_vm12, %v4977_v42  ;;  %v4998_v42 = vld [vmem:[#allocation2 + $0x9c] sm:$0xff]  ;;  %p3866_p11 = scmp.ne.s32.totalorder %s3864_s9, %s3865_s21  ;;  %p3871_p1 = scmp.lt.s32.totalorder %s3869_s15, %s3865_s21 }
 0x189   : > { %5585 = vst [vmem:[#allocation43_spill] sm:$0xff] %v4993_v52  ;;  %v2017_v5 = vsel %vm4682_vm1, %v3515_v60, %v2016_v50  ;;  %v2020_v52 = vsel %vm4682_vm1, %v2018_v56, %v2019_v14 }
 0x18a   : > { %3531 = vmatmul.msk.bf16.gmra.mxu2 %vm1542_vm12, %v4989_v16  ;;  %5586 = vst [vmem:[#allocation44_spill] sm:$0xff] %v4998_v42  ;;  %v2063_v14 = vunpack.c.l.b16 %v2017_v5  ;;  %v2064_v56 = vunpack.c.l.b16 %v2020_v52  ;;  %v1847_v16 = vadd.f32 %v1846_v17, %v4793_v2  ;;  %v607_v2 = vld [vmem:[#allocation2 + $0xc8] sm:$0x1]  ;;  %p3867_p12 = pnand %p3866_p11, %p3994_p5  ;;  %p3872_p2 = por %p3871_p1, %p3870_p0 }
 0x18b   : > { %v2294_v18 = vpop.f32.mrf.mxu3 }
 0x18c   : > { %v2365_v19 = vadd.f32 %v2294_v18, %v2231_v40  ;;  %v3844_v40 = vld [vmem:[%s5495_s1] ss:$0 sm:$0xff]  ;;  %v5021_v5 = vpack.c.b16 %v2064_v56, %v2063_v14  ;;  %p3868_p13 = pneg %p3867_p12 }
 0x18d   : > { %v2165_v33 = vpop.f32.mrf.mxu2  ;;  %v1849_v12 = vpop.f32.mrf.mxu1  ;;  %v358_v18 = vmul.f32 %v3844_v40, %v323_v20  ;;  %v359_v23 = vmul.f32 %v3844_v40, %v324_v10  ;;  %v551_v40 = vld [vmem:[#allocation2 + $0xc0] sm:$0x1] }
 0x18e   : > { %v2233_v43 = vadd.f32 %v2165_v33, %v1845_v30  ;;  %v2450_v1 = vpop.f32.mrf.mxu0  ;;  %v552_v35 = vsel %vm4019_vm3, 0, %v551_v40  ;;  %5588 = vst [vmem:[#allocation46_spill] sm:$0xff] %v5021_v5  ;;  %p3873_p3 = pnand %p3872_p2, %p3868_p13 }
 0x18f   : > { %v393_v61 = vadd.f32 %v3845_v39, %v358_v18  ;;  %v394_v30 = vadd.f32 %v3845_v39, %v359_v23  ;;  %v5014_v50 = vadd.f32 %v2450_v1, %v2365_v19  ;;  %553 = vst [vmem:[#allocation2 + $0xc0] sm:$0x1] %v552_v35 }
 0x190   : > { %3499 = vmatmul.msk.bf16.gmra.mxu1 %vm1542_vm12, %v4998_v42 }
 0x191   : > { %5587 = vst [vmem:[#allocation45_spill] sm:$0xff] %v5014_v50  ;;  %3568 = vmatmul.msk.bf16.gmra.mxu0 %vm1542_vm12, %v4248_v15  ;;  %v425_v33 = vmax.f32 %v393_v61, 0.0  ;;  %v426_v10 = vmax.f32 %v394_v30, 0.0  ;;  %v3846_v61 = vld [vmem:[#allocation2 + $0xac] sm:$0xf] }
 0x192   : > { %v2023_v30 = vrot.slane %v3846_v61, 5 }
 0x193   : > { %v2296_v60 = vpop.f32.mrf.mxu3  ;;  %v457_v23 = vpack.c.bf16 %v425_v33, %v425_v33  ;;  %v458_v1 = vpack.c.bf16 %v426_v10, %v426_v10  ;;  %v3847_v33 = vld [vmem:[#allocation2 + $0xb0] sm:$0x1] }
 0x194   : > { %v2366_v20 = vadd.f32 %v2296_v60, %v2232_v29  ;;  %v608_v60 = vsel %vm4028_vm6, 0, %v607_v2  ;;  %v2026_v10 = vrot.slane %v3847_v33, 5 }
 0x195   : > { %v2167_v18 = vpop.f32.mrf.mxu2  ;;  %v1851_v19 = vpop.f32.mrf.mxu1  ;;  %490 = vst.msk [vmem:[%s4072_s13 + $0x78] sm:$0xf] %vm459_vm5, %v457_v23  ;;  %v871_v29 = vshrl.u32 %v457_v23, 16  ;;  %v879_v39 = vshrl.u32 %v458_v1, 16  ;;  %v882_v56 = vshll.u32 %v458_v1, 16 }
 0x196   : > { %v2234_v52 = vadd.f32 %v2167_v18, %v1847_v16  ;;  %v2452_v17 = vpop.f32.mrf.mxu0  ;;  %491 = vst.msk [vmem:[%s4072_s13 + $0x7c] sm:$0xf] %vm459_vm5, %v458_v1  ;;  %v874_v16 = vshll.u32 %v457_v23, 16  ;;  %v3848_v18 = vld [vmem:[#allocation2 + $0xa8] sm:$0xf]  ;;  %v1850_v23 = vadd.f32 %v1849_v12, %v4803_v49 }
 0x197   : > { %v873_v35 = vrot.slane %v871_v29, 7  ;;  %v881_v14 = vrot.slane %v879_v39, 7  ;;  %609 = vst [vmem:[#allocation2 + $0xc8] sm:$0x1] %v608_v60  ;;  %v3516_v50 = vrot.slane %v3848_v18, 9  ;;  %v5033_v61 = vadd.f32 %v2452_v17, %v2366_v20 }
 0x198   : > { %3552 = vmatmul.msk.bf16.gmra.mxu3 %vm1542_vm12, %v4998_v42  ;;  %v2025_v42 = vrot.slane %v2023_v30, 4  ;;  %v1043_v29 = vld [vmem:[#allocation2 + $0xc0] sm:$0xf] }
 0x199   : > { %v876_v25 = vor.u32 %v874_v16, %v873_v35  ;;  %v877_v7 = vrot.slane %v873_v35, 4  ;;  %v884_v2 = vor.u32 %v882_v56, %v881_v14  ;;  %v886_v49 = vrot.slane %v881_v14, 4 }
 0x19a   : > { %3532 = vmatmul.msk.bf16.gmra.mxu2 %vm1542_vm12, %v5021_v5  ;;  %v5040_v5 = vld [vmem:[#allocation2 + $0xa8] sm:$0xff]  ;;  %v2027_v20 = vsel %vm4682_vm1, %v2025_v42, %v2026_v10  ;;  %v2030_v10 = vrot.slane %v4663_v46, 5 }
 0x19b   : > { %v2299_v40 = vpop.f32.mrf.mxu3  ;;  %v885_v60 = vsel %vm4088_vm8, %v877_v7, %v884_v2  ;;  %v1044_v33 = vsel %vm4098_vm9, %v876_v25, %v1043_v29  ;;  %v2066_v35 = vunpack.c.l.b16 %v2027_v20 }
 0x19c   : > { %v2367_v15 = vadd.f32 %v2299_v40, %v2233_v43  ;;  %1045 = vst [vmem:[#allocation2 + $0xc0] sm:$0xf] %v1044_v33  ;;  %v2024_v43 = vsel %vm4682_vm1, %v3516_v50, %v2023_v30  ;;  %v1852_v50 = vadd.f32 %v1851_v19, %v4817_v4  ;;  %v3517_v19 = vrot.slane %v4660_v32, 9  ;;  %v5068_v33 = vld [vmem:[#allocation2 + $0xb4] sm:$0xff] }
 0x19d   : > { %v2170_v1 = vpop.f32.mrf.mxu2  ;;  %v1854_v39 = vpop.f32.mrf.mxu1  ;;  %1046 = vst.msk [vmem:[#allocation2 + $0xc4] sm:$0xf] %vm459_vm5, %v885_v60  ;;  %v2065_v17 = vunpack.c.l.b16 %v2024_v43 }
 0x19e   : > { %v2235_v18 = vadd.f32 %v2170_v1, %v1850_v23  ;;  %v2455_v12 = vpop.f32.mrf.mxu0  ;;  %v1047_v7 = vld [vmem:[#allocation2 + $0xc8] sm:$0x1]  ;;  %v2032_v23 = vrot.slane %v2030_v10, 4  ;;  %v1855_v29 = vadd.f32 %v1854_v39, %v4831_v58  ;;  %v2031_v46 = vsel %vm4682_vm1, %v3517_v19, %v2030_v10 }
 0x19f   : > { %v1048_v57 = vsel %vm4019_vm3, %v886_v49, %v1047_v7  ;;  %v5051_v0 = vadd.f32 %v2455_v12, %v2367_v15  ;;  %v5056_v56 = vpack.c.b16 %v2066_v35, %v2065_v17 }
 0x1a0   : > { %3500 = vmatmul.msk.bf16.gmra.mxu1 %vm1542_vm12, %v5040_v5  ;;  %1049 = vst [vmem:[#allocation2 + $0xc8] sm:$0x1] %v1048_v57 }
 0x1a1   : > { %3569 = vmatmul.msk.bf16.gmra.mxu0 %vm1542_vm12, %v4429_v55 }
 0x1a3   : > { %v2301_v25 = vpop.f32.mrf.mxu3  ;;  %v5081_v7 = vld [vmem:[#allocation2 + $0xc0] sm:$0xf] }
 0x1a4   : > { %v2368_v42 = vadd.f32 %v2301_v25, %v2234_v52  ;;  %v2033_v52 = vrot.slane %v4669_v8, 5  ;;  %v5083_v25 = vld [vmem:[#allocation2 + $0xc4] sm:$0xf] }
 0x1a5   : > { %v2172_v30 = vpop.f32.mrf.mxu2  ;;  %v1856_v16 = vpop.f32.mrf.mxu1 }
 0x1a6   : > { %v2236_v14 = vadd.f32 %v2172_v30, %v1852_v50  ;;  %v2457_v15 = vpop.f32.mrf.mxu0  ;;  %v2034_v20 = vsel %vm4682_vm1, %v2032_v23, %v2033_v52  ;;  %v1857_v12 = vadd.f32 %v1856_v16, %v4849_v27  ;;  %v2392_v50 = vshrl.u32 %v5081_v7, 16 }
 0x1a7   : > { %v5061_v40 = vadd.f32 %v2457_v15, %v2368_v42  ;;  %v2068_v58 = vunpack.c.l.b16 %v2034_v20  ;;  %v2395_v15 = vshll.u32 %v5081_v7, 16  ;;  %v2405_v27 = vshrl.u32 %v5083_v25, 16 }
 0x1a8   : > { %3553 = vmatmul.msk.bf16.gmra.mxu3 %vm1542_vm12, %v5040_v5  ;;  %v2394_v52 = vrot.slane %v2392_v50, 4 }
 0x1a9   : > { %v2397_v19 = vrot.slane %v2395_v15, 5 }
 0x1aa   : > { %3533 = vmatmul.msk.bf16.gmra.mxu2 %vm1542_vm12, %v5056_v56 }
 0x1ab   : > { %v2304_v2 = vpop.f32.mrf.mxu3 }
 0x1ac   : > { %v2369_v4 = vadd.f32 %v2304_v2, %v2235_v18  ;;  %v2067_v18 = vunpack.c.l.b16 %v2031_v46 }
 0x1ad   : > { %v2175_v1 = vpop.f32.mrf.mxu2  ;;  %v1859_v60 = vpop.f32.mrf.mxu1 }
 0x1ae   : > { %v2237_v43 = vadd.f32 %v2175_v1, %v1855_v29  ;;  %v2460_v49 = vpop.f32.mrf.mxu0  ;;  %v5085_v42 = vpack.c.b16 %v2068_v58, %v2067_v18  ;;  %v2407_v29 = vrot.slane %v2405_v27, 4  ;;  %v5098_v1 = vld [vmem:[#allocation2 + $0xc8] sm:$0x1]  ;;  %v2398_v18 = vor.u32 %v2397_v19, %v2394_v52 }
 0x1af   : > { %v5076_v8 = vadd.f32 %v2460_v49, %v2369_v4  ;;  %v1860_v4 = vadd.f32 %v1859_v60, %v4864_v38  ;;  %v5107_v60 = vld [vmem:[#allocation2 + $0xc0] sm:$0xff] }
 0x1b0   : > { %3501 = vmatmul.msk.bf16.gmra.mxu1 %vm1542_vm12, %v5068_v33 }
 0x1b1   : > { %3570 = vmatmul.msk.bf16.gmra.mxu0 %vm1542_vm12, %v4557_v13 }
 0x1b3   : > { %v2306_v32 = vpop.f32.mrf.mxu3 }
 0x1b4   : > { %v2370_v39 = vadd.f32 %v2306_v32, %v2236_v14  ;;  %v2401_v14 = vshll.u32 %v5083_v25, 16 }
 0x1b5   : > { %v2177_v57 = vpop.f32.mrf.mxu2  ;;  %v1861_v17 = vpop.f32.mrf.mxu1 }
 0x1b6   : > { %v2238_v35 = vadd.f32 %v2177_v57, %v1857_v12  ;;  %v2462_v30 = vpop.f32.mrf.mxu0  ;;  %v2403_v23 = vrot.slane %v2401_v14, 5  ;;  %v2399_v57 = vrot.slane %v2398_v18, 4  ;;  %v1862_v15 = vadd.f32 %v1861_v17, %v4880_v51 }
 0x1b7   : > { %v5093_v16 = vadd.f32 %v2462_v30, %v2370_v39  ;;  %v2411_v39 = vshll.u32 %v5098_v1, 16 }
 0x1b8   : > { %3554 = vmatmul.msk.bf16.gmra.mxu3 %vm1542_vm12, %v5068_v33  ;;  %v2408_v58 = vor.u32 %v2407_v29, %v2403_v23 }
 0x1b9   : > { %v2413_v30 = vrot.slane %v2411_v39, 5 }
 0x1ba   : > { %3534 = vmatmul.msk.bf16.gmra.mxu2 %vm1542_vm12, %v5085_v42  ;;  %v2409_v50 = vrot.slane %v2408_v58, 4 }
 0x1bb   : > { %v2309_v10 = vpop.f32.mrf.mxu3 }
 0x1bc   : > { %v2371_v2 = vadd.f32 %v2309_v10, %v2237_v43 }
 0x1bd   : > { %v2180_v46 = vpop.f32.mrf.mxu2  ;;  %v1864_v20 = vpop.f32.mrf.mxu1 }
 0x1be   : > { %v2239_v49 = vadd.f32 %v2180_v46, %v1860_v4  ;;  %v2465_v32 = vpop.f32.mrf.mxu0  ;;  %v1865_v29 = vadd.f32 %v1864_v20, %v4791_v24 }
 0x1bf   : > { %v5103_v43 = vadd.f32 %v2465_v32, %v2371_v2  ;;  %v2404_v2 = vsel %vm4181_vm13, %v2399_v57, %v2403_v23 }
 0x1c0   : > { %3575 = vmatmul.msk.bf16.vlgmr.msra.gmra.mxu1 %vm1542_vm12, %v4742_v11  ;;  %v2417_v51 = vunpack.c.l.b16 %v2404_v2 }
 0x1c1   : > { %3571 = vmatmul.msk.bf16.gmra.mxu0 %vm1542_vm12, %v4713_v26 }
 0x1c3   : > { %v2311_v12 = vpop.f32.mrf.mxu3 }
 0x1c4   : > { %v2372_v38 = vadd.f32 %v2311_v12, %v2238_v35  ;;  %v2414_v35 = vsel %vm4181_vm13, %v2409_v50, %v2413_v30 }
 0x1c5   : > { %v2182_v14 = vpop.f32.mrf.mxu2  ;;  %v1866_v27 = vpop.f32.mrf.mxu1  ;;  %v2418_v17 = vunpack.c.l.b16 %v2414_v35 }
 0x1c6   : > { %v2240_v10 = vadd.f32 %v2182_v14, %v1862_v15  ;;  %v2467_v11 = vpop.f32.mrf.mxu0 }
 0x1c7   : > { %v5116_v52 = vadd.f32 %v2467_v11, %v2372_v38  ;;  %v5121_v58 = vpack.c.b16 %v2418_v17, %v2417_v51 }
 0x1c8   : > { %3555 = vmatmul.msk.bf16.gmra.mxu3 %vm1542_vm12, %v5107_v60 }
 0x1ca   : > { %3596 = vmatmul.msk.bf16.vlgmr.msra.gmra.mxu2 %vm1542_vm12, %v4751_v44 }
 0x1cb   : > { %v2314_v4 = vpop.f32.mrf.mxu3 }
 0x1cc   : > { %v2373_v19 = vadd.f32 %v2314_v4, %v2239_v49  ;;  %v1867_v49 = vadd.f32 %v1866_v27, %v4801_v47 }
 0x1cd   : > { %v2185_v46 = vpop.f32.mrf.mxu2  ;;  %v1869_v32 = vpop.f32.mrf.mxu1 }
 0x1ce   : > { %v2241_v18 = vadd.f32 %v2185_v46, %v1865_v29  ;;  %v2470_v23 = vpop.f32.mrf.mxu0  ;;  %v1870_v14 = vadd.f32 %v1869_v32, %v4819_v21  ;;  %v5589_v46 = vld [vmem:[#allocation14_spill] sm:$0xff] }
 0x1cf   : > { %v5125_v39 = vadd.f32 %v2470_v23, %v2373_v19 }
 0x1d0   : > { %3576 = vmatmul.msk.bf16.gmra.mxu1 %vm1542_vm12, %v4749_v59 }
 0x1d1   : > { %3572 = vmatmul.msk.bf16.gmra.mxu0 %vm1542_vm12, %v5121_v58 }
 0x1d3   : > { %v2316_v12 = vpop.f32.mrf.mxu3 }
 0x1d4   : > { %v2374_v44 = vadd.f32 %v2316_v12, %v2240_v10 }
 0x1d5   : > { %v2187_v38 = vpop.f32.mrf.mxu2  ;;  %v1871_v24 = vpop.f32.mrf.mxu1 }
 0x1d6   : > { %v2242_v20 = vadd.f32 %v2187_v38, %v1867_v49  ;;  %v2472_v57 = vpop.f32.mrf.mxu0  ;;  %v1872_v4 = vadd.f32 %v1871_v24, %v4837_v41  ;;  %v5591_v49 = vld [vmem:[#allocation15_spill] sm:$0xff] }
 0x1d7   : > { %v5132_v50 = vadd.f32 %v2472_v57, %v2374_v44 }
 0x1d8   : > { %3613 = vmatmul.msk.bf16.vlgmr.msra.gmra.mxu3 %vm1542_vm12, %v4597_v6 }
 0x1da   : > { %3597 = vmatmul.msk.bf16.gmra.mxu2 %vm1542_vm12, %v4763_v62 }
 0x1db   : > { %v2319_v30 = vpop.f32.mrf.mxu3 }
 0x1dc   : > { %v2375_v15 = vadd.f32 %v2319_v30, %v2241_v18  ;;  %v5590_v18 = vld [vmem:[#allocation23_spill] sm:$0xff] }
 0x1dd   : > { %v2190_v11 = vpop.f32.mrf.mxu2  ;;  %v1874_v10 = vpop.f32.mrf.mxu1 }
 0x1de   : > { %v2243_v2 = vadd.f32 %v2190_v11, %v1870_v14  ;;  %v2475_v47 = vpop.f32.mrf.mxu0  ;;  %v1875_v23 = vadd.f32 %v1874_v10, %v5590_v18  ;;  %v5593_v11 = vld [vmem:[#allocation7_spill] sm:$0xff] }
 0x1df   : > { %v5139_v27 = vadd.f32 %v2475_v47, %v2375_v15 }
 0x1e0   : > { %3577 = vmatmul.msk.bf16.gmra.mxu1 %vm1542_vm12, %v4773_v63 }
 0x1e1   : > { %3631 = vmatmul.msk.bf16.vlgmr.msra.gmra.mxu0 %vm1542_vm12, %v4749_v59 }
 0x1e3   : > { %v2321_v6 = vpop.f32.mrf.mxu3 }
 0x1e4   : > { %v2376_v35 = vadd.f32 %v2321_v6, %v2242_v20  ;;  %v5592_v20 = vld [vmem:[#allocation26_spill] sm:$0xff]  ;;  %v5594_v6 = vld [vmem:[#allocation16_spill] sm:$0xff] }
 0x1e5   : > { %v2192_v62 = vpop.f32.mrf.mxu2  ;;  %v1876_v51 = vpop.f32.mrf.mxu1 }
 0x1e6   : > { %v2244_v17 = vadd.f32 %v2192_v62, %v1872_v4  ;;  %v2477_v21 = vpop.f32.mrf.mxu0  ;;  %v1877_v57 = vadd.f32 %v1876_v51, %v5592_v20  ;;  %v5595_v4 = vld [vmem:[#allocation29_spill] sm:$0xff] }
 0x1e7   : > { %v5146_v19 = vadd.f32 %v2477_v21, %v2376_v35 }
 0x1e8   : > { %3614 = vmatmul.msk.bf16.gmra.mxu3 %vm1542_vm12, %v4733_v28 }
 0x1ea   : > { %3598 = vmatmul.msk.bf16.gmra.mxu2 %vm1542_vm12, %v5589_v46 }
 0x1eb   : > { %v2324_v29 = vpop.f32.mrf.mxu3 }
 0x1ec   : > { %v2377_v32 = vadd.f32 %v2324_v29, %v2243_v2  ;;  %v5596_v29 = vld [vmem:[#allocation18_spill] sm:$0xff] }
 0x1ed   : > { %v2195_v59 = vpop.f32.mrf.mxu2  ;;  %v1879_v12 = vpop.f32.mrf.mxu1 }
 0x1ee   : > { %v2245_v44 = vadd.f32 %v2195_v59, %v1875_v23  ;;  %v2480_v41 = vpop.f32.mrf.mxu0  ;;  %v1880_v62 = vadd.f32 %v1879_v12, %v5595_v4  ;;  %v5597_v23 = vld [vmem:[#allocation32_spill] sm:$0xff]  ;;  %v5598_v12 = vld [vmem:[#allocation10_spill] sm:$0xff] }
 0x1ef   : > { %v5153_v38 = vadd.f32 %v2480_v41, %v2377_v32 }
 0x1f0   : > { %3578 = vmatmul.msk.bf16.gmra.mxu1 %vm1542_vm12, %v5591_v49 }
 0x1f1   : > { %3632 = vmatmul.msk.bf16.gmra.mxu0 %vm1542_vm12, %v4773_v63 }
 0x1f3   : > { %v2326_v28 = vpop.f32.mrf.mxu3 }
 0x1f4   : > { %v2378_v24 = vadd.f32 %v2326_v28, %v2244_v17 }
 0x1f5   : > { %v2197_v30 = vpop.f32.mrf.mxu2  ;;  %v1881_v15 = vpop.f32.mrf.mxu1 }
 0x1f6   : > { %v2246_v14 = vadd.f32 %v2197_v30, %v1877_v57  ;;  %v2482_v10 = vpop.f32.mrf.mxu0  ;;  %v1882_v59 = vadd.f32 %v1881_v15, %v5597_v23  ;;  %v5599_v30 = vld [vmem:[#allocation20_spill] sm:$0xff] }
 0x1f7   : > { %v5160_v2 = vadd.f32 %v2482_v10, %v2378_v24  ;;  %v5600_v10 = vld [vmem:[#allocation17_spill] sm:$0xff] }
 0x1f8   : > { %3615 = vmatmul.msk.bf16.gmra.mxu3 %vm1542_vm12, %v5593_v11 }
 0x1fa   : > { %3599 = vmatmul.msk.bf16.gmra.mxu2 %vm1542_vm12, %v5594_v6 }
 0x1fb   : > { %v2329_v47 = vpop.f32.mrf.mxu3 }
 0x1fc   : > { %v2379_v35 = vadd.f32 %v2329_v47, %v2245_v44 }
 0x1fd   : > { %v2200_v63 = vpop.f32.mrf.mxu2  ;;  %v1884_v17 = vpop.f32.mrf.mxu1 }
 0x1fe   : > { %v2247_v21 = vadd.f32 %v2200_v63, %v1880_v62  ;;  %v2485_v51 = vpop.f32.mrf.mxu0  ;;  %v1885_v47 = vadd.f32 %v1884_v17, %v5600_v10  ;;  %v5603_v17 = vld [vmem:[#allocation11_spill] sm:$0xff] }
 0x1ff   : > { %v5167_v46 = vadd.f32 %v2485_v51, %v2379_v35  ;;  %v5601_v35 = vld [vmem:[#allocation22_spill] sm:$0xff]  ;;  %v5602_v51 = vld [vmem:[#allocation19_spill] sm:$0xff] }
 0x200   : > { %3579 = vmatmul.msk.bf16.gmra.mxu1 %vm1542_vm12, %v5596_v29 }
 0x201   : > { %3633 = vmatmul.msk.bf16.gmra.mxu0 %vm1542_vm12, %v5591_v49 }
 0x203   : > { %v2331_v32 = vpop.f32.mrf.mxu3 }
 0x204   : > { %v2380_v18 = vadd.f32 %v2331_v32, %v2246_v14 }
 0x205   : > { %v2202_v41 = vpop.f32.mrf.mxu2  ;;  %v1886_v44 = vpop.f32.mrf.mxu1 }
 0x206   : > { %v2248_v28 = vadd.f32 %v2202_v41, %v1882_v59  ;;  %v2487_v24 = vpop.f32.mrf.mxu0  ;;  %v1887_v32 = vadd.f32 %v1886_v44, %v5602_v51 }
 0x207   : > { %v5174_v20 = vadd.f32 %v2487_v24, %v2380_v18  ;;  %v5604_v24 = vld [vmem:[#allocation25_spill] sm:$0xff] }
 0x208   : > { %3616 = vmatmul.msk.bf16.gmra.mxu3 %vm1542_vm12, %v5598_v12 }
 0x20a   : > { %3600 = vmatmul.msk.bf16.gmra.mxu2 %vm1542_vm12, %v5599_v30  ;;  %v5605_v30 = vld [vmem:[#allocation21_spill] sm:$0xff] }
 0x20b   : > { %v2334_v57 = vpop.f32.mrf.mxu3 }
 0x20c   : > { %v2381_v11 = vadd.f32 %v2334_v57, %v2247_v21 }
 0x20d   : > { %v2205_v49 = vpop.f32.mrf.mxu2  ;;  %v1889_v14 = vpop.f32.mrf.mxu1 }
 0x20e   : > { %v2249_v6 = vadd.f32 %v2205_v49, %v1885_v47  ;;  %v2490_v15 = vpop.f32.mrf.mxu0  ;;  %v5606_v47 = vld [vmem:[#allocation28_spill] sm:$0xff] }
 0x20f   : > { %v5181_v4 = vadd.f32 %v2490_v15, %v2381_v11  ;;  %v1890_v11 = vadd.f32 %v1889_v14, %v5605_v30  ;;  %v5608_v14 = vld [vmem:[#allocation12_spill] sm:$0xff]  ;;  %v5610_v30 = vld [vmem:[#allocation27_spill] sm:$0xff] }
 0x210   : > { %3580 = vmatmul.msk.bf16.gmra.mxu1 %vm1542_vm12, %v5601_v35 }
 0x211   : > { %3634 = vmatmul.msk.bf16.gmra.mxu0 %vm1542_vm12, %v5596_v29 }
 0x213   : > { %v2336_v62 = vpop.f32.mrf.mxu3 }
 0x214   : > { %v2382_v63 = vadd.f32 %v2336_v62, %v2248_v28 }
 0x215   : > { %v2207_v18 = vpop.f32.mrf.mxu2  ;;  %v1891_v21 = vpop.f32.mrf.mxu1 }
 0x216   : > { %v2250_v23 = vadd.f32 %v2207_v18, %v1887_v32  ;;  %v2492_v59 = vpop.f32.mrf.mxu0 }
 0x217   : > { %v5188_v41 = vadd.f32 %v2492_v59, %v2382_v63  ;;  %v5607_v63 = vld [vmem:[#allocation24_spill] sm:$0xff] }
 0x218   : > { %3617 = vmatmul.msk.bf16.gmra.mxu3 %vm1542_vm12, %v5603_v17  ;;  %v1892_v51 = vadd.f32 %v1891_v21, %v5607_v63 }
 0x21a   : > { %3601 = vmatmul.msk.bf16.gmra.mxu2 %vm1542_vm12, %v5604_v24  ;;  %v5609_v24 = vld [vmem:[#allocation30_spill] sm:$0xff] }
 0x21b   : > { %v2339_v12 = vpop.f32.mrf.mxu3 }
 0x21c   : > { %v2383_v57 = vadd.f32 %v2339_v12, %v2249_v6 }
 0x21d   : > { %v2210_v29 = vpop.f32.mrf.mxu2  ;;  %v1894_v28 = vpop.f32.mrf.mxu1 }
 0x21e   : > { %v2251_v10 = vadd.f32 %v2210_v29, %v1890_v11  ;;  %v2495_v44 = vpop.f32.mrf.mxu0  ;;  %v1895_v11 = vadd.f32 %v1894_v28, %v5610_v30  ;;  %v5613_v28 = vld [vmem:[#allocation8_spill] sm:$0xff] }
 0x21f   : > { %v5195_v49 = vadd.f32 %v2495_v44, %v2383_v57  ;;  %v5611_v44 = vld [vmem:[#allocation33_spill] sm:$0xff] }
 0x220   : > { %3581 = vmatmul.msk.bf16.gmra.mxu1 %vm1542_vm12, %v5606_v47 }
 0x221   : > { %3635 = vmatmul.msk.bf16.gmra.mxu0 %vm1542_vm12, %v5601_v35 }
 0x223   : > { %v2341_v15 = vpop.f32.mrf.mxu3 }
 0x224   : > { %v2384_v62 = vadd.f32 %v2341_v15, %v2250_v23 }
 0x225   : > { %v2212_v32 = vpop.f32.mrf.mxu2  ;;  %v1896_v6 = vpop.f32.mrf.mxu1 }
 0x226   : > { %v2252_v18 = vadd.f32 %v2212_v32, %v1892_v51  ;;  %v2497_v17 = vpop.f32.mrf.mxu0  ;;  %v5612_v51 = vld [vmem:[#allocation31_spill] sm:$0xff] }
 0x227   : > { %v5202_v59 = vadd.f32 %v2497_v17, %v2384_v62  ;;  %v1897_v32 = vadd.f32 %v1896_v6, %v5612_v51 }
 0x228   : > { %3618 = vmatmul.msk.bf16.gmra.mxu3 %vm1542_vm12, %v5608_v14 }
 0x22a   : > { %3602 = vmatmul.msk.bf16.gmra.mxu2 %vm1542_vm12, %v5609_v24 }
 0x22b   : > { %v2344_v12 = vpop.f32.mrf.mxu3 }
 0x22c   : > { %v2385_v57 = vadd.f32 %v2344_v12, %v2251_v10 }
 0x22d   : > { %v2215_v35 = vpop.f32.mrf.mxu2  ;;  %v1899_v23 = vpop.f32.mrf.mxu1 }
 0x22e   : > { %v2253_v29 = vadd.f32 %v2215_v35, %v1895_v11  ;;  %v2500_v21 = vpop.f32.mrf.mxu0  ;;  %v5614_v11 = vld [vmem:[#allocation35_spill] sm:$0xff]  ;;  %v5615_v35 = vld [vmem:[#allocation34_spill] sm:$0xff] }
 0x22f   : > { %v5209_v15 = vadd.f32 %v2500_v21, %v2385_v57  ;;  %v1900_v21 = vadd.f32 %v1899_v23, %v5615_v35 }
 0x230   : > { %3582 = vmatmul.msk.bf16.gmra.mxu1 %vm1542_vm12, %v5611_v44 }
 0x231   : > { %3636 = vmatmul.msk.bf16.gmra.mxu0 %vm1542_vm12, %v5606_v47 }
 0x233   : > { %v2346_v63 = vpop.f32.mrf.mxu3 }
 0x234   : > { %v2386_v62 = vadd.f32 %v2346_v63, %v2252_v18 }
 0x235   : > { %v2217_v14 = vpop.f32.mrf.mxu2  ;;  %v1901_v10 = vpop.f32.mrf.mxu1 }
 0x236   : > { %v2254_v17 = vadd.f32 %v2217_v14, %v1897_v32  ;;  %v2502_v12 = vpop.f32.mrf.mxu0  ;;  %v5617_v14 = vld [vmem:[#allocation36_spill] sm:$0xff] }
 0x237   : > { %v5216_v24 = vadd.f32 %v2502_v12, %v2386_v62 }
 0x238   : > { %3619 = vmatmul.msk.bf16.gmra.mxu3 %vm1542_vm12, %v5613_v28  ;;  %v1902_v28 = vadd.f32 %v1901_v10, %v5617_v14 }
 0x23a   : > { %3603 = vmatmul.msk.bf16.gmra.mxu2 %vm1542_vm12, %v5614_v11 }
 0x23b   : > { %v2349_v30 = vpop.f32.mrf.mxu3 }
 0x23c   : > { %v2387_v57 = vadd.f32 %v2349_v30, %v2253_v29 }
 0x23d   : > { %v2220_v47 = vpop.f32.mrf.mxu2  ;;  %v2575_v18 = vpop.f32.mrf.mxu1 }
 0x23e   : > { %v2255_v63 = vadd.f32 %v2220_v47, %v1900_v21  ;;  %v2505_v6 = vpop.f32.mrf.mxu0 }
 0x23f   : > { %v5223_v51 = vadd.f32 %v2505_v6, %v2387_v57 }
 0x240   : > { %3583 = vmatmul.msk.bf16.gmra.mxu1 %vm1542_vm12, %v4927_v54 }
 0x241   : > { %5616 = vst [vmem:[#allocation14_spill] sm:$0xff] %v5223_v51  ;;  %3637 = vmatmul.msk.bf16.gmra.mxu0 %vm1542_vm12, %v5611_v44 }
 0x243   : > { %v2351_v32 = vpop.f32.mrf.mxu3 }
 0x244   : > { %v2388_v62 = vadd.f32 %v2351_v32, %v2254_v17 }
 0x245   : > { %v2222_v12 = vpop.f32.mrf.mxu2  ;;  %v2577_v30 = vpop.f32.mrf.mxu1 }
 0x246   : > { %v2256_v29 = vadd.f32 %v2222_v12, %v1902_v28  ;;  %v2507_v23 = vpop.f32.mrf.mxu0 }
 0x247   : > { %v5230_v11 = vadd.f32 %v2507_v23, %v2388_v62 }
 0x248   : > { %3620 = vmatmul.msk.bf16.gmra.mxu3 %vm1542_vm12, %v4378_v48 }
 0x249   : > { %5618 = vst [vmem:[#allocation23_spill] sm:$0xff] %v5230_v11 }
 0x24a   : > { %3604 = vmatmul.msk.bf16.gmra.mxu2 %vm1542_vm12, %v4933_v36 }
 0x24b   : > { %v2354_v35 = vpop.f32.mrf.mxu3 }
 0x24c   : > { %v2389_v57 = vadd.f32 %v2354_v35, %v2255_v63  ;;  %v2655_v63 = vadd.f32 %v2575_v18, %v4941_v9 }
 0x24d   : > { %v2709_v21 = vpop.f32.mrf.mxu2  ;;  %v2580_v47 = vpop.f32.mrf.mxu1 }
 0x24e   : > { %v2510_v44 = vpop.f32.mrf.mxu0  ;;  %v2789_v28 = vadd.f32 %v2709_v21, %v2655_v63 }
 0x24f   : > { %v5236_v10 = vadd.f32 %v2510_v44, %v2389_v57  ;;  %v5621_v57 = vld [vmem:[#allocation38_spill] sm:$0xff] }
 0x250   : > { %3584 = vmatmul.msk.bf16.gmra.mxu1 %vm1542_vm12, %v4946_v31 }
 0x251   : > { %5619 = vst [vmem:[#allocation15_spill] sm:$0xff] %v5236_v10  ;;  %3638 = vmatmul.msk.bf16.gmra.mxu0 %vm1542_vm12, %v4927_v54  ;;  %v2656_v54 = vadd.f32 %v2577_v30, %v4951_v22  ;;  %v5626_v10 = vld [vmem:[#allocation42_spill] sm:$0xff] }
 0x253   : > { %v2356_v17 = vpop.f32.mrf.mxu3 }
 0x254   : > { %v2390_v48 = vadd.f32 %v2356_v17, %v2256_v29  ;;  %v5261_v17 = vld [vmem:[%s5499_s5] ss:$0 sm:$0xff] }
 0x255   : > { %v2711_v6 = vpop.f32.mrf.mxu2  ;;  %v2582_v32 = vpop.f32.mrf.mxu1 }
 0x256   : > { %v2512_v36 = vpop.f32.mrf.mxu0 }
 0x257   : > { %v5243_v62 = vadd.f32 %v2512_v36, %v2390_v48  ;;  %v5622_v48 = vld [vmem:[#allocation13_spill] sm:$0xff] }
 0x258   : > { %3621 = vmatmul.msk.bf16.gmra.mxu3 %vm1542_vm12, %v4518_v45  ;;  %v2790_v45 = vadd.f32 %v2711_v6, %v2656_v54  ;;  %v5623_v36 = vld [vmem:[#allocation37_spill] sm:$0xff] }
 0x259   : > { %5620 = vst [vmem:[#allocation26_spill] sm:$0xff] %v5243_v62  ;;  %v2657_v63 = vadd.f32 %v2580_v47, %v5623_v36  ;;  %v5625_v47 = vld [vmem:[#allocation39_spill] sm:$0xff] }
 0x25a   : > { %3605 = vmatmul.msk.bf16.gmra.mxu2 %vm1542_vm12, %v4957_v53  ;;  %v5255_v53 = vld [vmem:[%s5498_s4] ss:$0 sm:$0xff]  ;;  %v2658_v36 = vadd.f32 %v2582_v32, %v5625_v47 }
 0x25b   : > { %v2865_v14 = vpop.f32.mrf.mxu3 }
 0x25c   : > { %v2945_v35 = vadd.f32 %v2865_v14, %v2789_v28  ;;  %v5624_v28 = vld [vmem:[#allocation40_spill] sm:$0xff] }
 0x25d   : > { %v2714_v12 = vpop.f32.mrf.mxu2  ;;  %v2585_v23 = vpop.f32.mrf.mxu1 }
 0x25e   : > { %v3005_v29 = vpop.f32.mrf.mxu0 }
 0x25f   : > { %v3085_v9 = vadd.f32 %v3005_v29, %v2945_v35  ;;  %v2791_v29 = vadd.f32 %v2714_v12, %v2657_v63 }
 0x260   : > { %3585 = vmatmul.msk.bf16.gmra.mxu1 %vm1542_vm12, %v5621_v57 }
 0x261   : > { %3639 = vmatmul.msk.bf16.gmra.mxu0 %vm1542_vm12, %v4946_v31  ;;  %v3121_v30 = vmul.f32 %v5255_v53, %v3085_v9 }
 0x263   : > { %v2867_v44 = vpop.f32.mrf.mxu3  ;;  %v3157_v35 = vadd.f32 %v5261_v17, %v3121_v30 }
 0x264   : > { %v2946_v18 = vadd.f32 %v2867_v44, %v2790_v45 }
 0x265   : > { %v2716_v21 = vpop.f32.mrf.mxu2  ;;  %v2587_v22 = vpop.f32.mrf.mxu1 }
 0x266   : > { %v3007_v31 = vpop.f32.mrf.mxu0  ;;  %v2792_v30 = vadd.f32 %v2716_v21, %v2658_v36  ;;  %v5628_v21 = vld [vmem:[#allocation41_spill] sm:$0xff] }
 0x267   : > { %v3086_v6 = vadd.f32 %v3007_v31, %v2946_v18 }
 0x268   : > { %3622 = vmatmul.msk.bf16.gmra.mxu3 %vm1542_vm12, %v5622_v48  ;;  %v3189_v48 = vmax.f32 %v3157_v35, 0.0  ;;  %v5627_v35 = vld [vmem:[#allocation9_spill] sm:$0xff] }
 0x269   : > { %v3122_v54 = vmul.f32 %v5255_v53, %v3086_v6 }
 0x26a   : > { %3606 = vmatmul.msk.bf16.gmra.mxu2 %vm1542_vm12, %v5624_v28 }
 0x26b   : > { %v2870_v14 = vpop.f32.mrf.mxu3  ;;  %v3158_v45 = vadd.f32 %v5261_v17, %v3122_v54 }
 0x26c   : > { %v2947_v31 = vadd.f32 %v2870_v14, %v2791_v29 }
 0x26d   : > { %v2719_v44 = vpop.f32.mrf.mxu2  ;;  %v2590_v9 = vpop.f32.mrf.mxu1  ;;  %v3190_v18 = vmax.f32 %v3158_v45, 0.0  ;;  %v2659_v45 = vadd.f32 %v2585_v23, %v5628_v21 }
 0x26e   : > { %v3010_v62 = vpop.f32.mrf.mxu0 }
 0x26f   : > { %v3676_v28 = vpack.c.bf16 %v3190_v18, %v3189_v48  ;;  %v3087_v12 = vadd.f32 %v3010_v62, %v2947_v31  ;;  %v5629_v18 = vld [vmem:[#allocation44_spill] sm:$0xff]  ;;  %v2793_v62 = vadd.f32 %v2719_v44, %v2659_v45 }
 0x270   : > { %3586 = vmatmul.msk.bf16.gmra.mxu1 %vm1542_vm12, %v5626_v10 }
 0x271   : > { %3677 = vst [vmem:[%s5277_s18] sm:$0xff] %v3676_v28   ;;  %3640 = vmatmul.msk.bf16.gmra.mxu0 %vm1542_vm12, %v5621_v57  ;;  %v3123_v32 = vmul.f32 %v5255_v53, %v3087_v12 }
 0x273   : > { %v2872_v11 = vpop.f32.mrf.mxu3  ;;  %v3159_v57 = vadd.f32 %v5261_v17, %v3123_v32 }
 0x274   : > { %v2948_v6 = vadd.f32 %v2872_v11, %v2792_v30 }
 0x275   : > { %v2721_v63 = vpop.f32.mrf.mxu2  ;;  %v2592_v14 = vpop.f32.mrf.mxu1  ;;  %v3191_v28 = vmax.f32 %v3159_v57, 0.0 }
 0x276   : > { %v3012_v54 = vpop.f32.mrf.mxu0 }
 0x277   : > { %v3088_v29 = vadd.f32 %v3012_v54, %v2948_v6  ;;  %v5630_v6 = vld [vmem:[#allocation43_spill] sm:$0xff]  ;;  %v5631_v54 = vld [vmem:[#allocation46_spill] sm:$0xff] }
 0x278   : > { %3623 = vmatmul.msk.bf16.gmra.mxu3 %vm1542_vm12, %v5627_v35  ;;  %v2660_v35 = vadd.f32 %v2587_v22, %v5630_v6 }
 0x279   : > { %v3124_v11 = vmul.f32 %v5255_v53, %v3088_v29 }
 0x27a   : > { %3607 = vmatmul.msk.bf16.gmra.mxu2 %vm1542_vm12, %v5629_v18  ;;  %v2794_v18 = vadd.f32 %v2721_v63, %v2660_v35 }
 0x27b   : > { %v2875_v48 = vpop.f32.mrf.mxu3  ;;  %v3160_v31 = vadd.f32 %v5261_v17, %v3124_v11  ;;  %v5632_v11 = vld [vmem:[#allocation45_spill] sm:$0xff] }
 0x27c   : > { %v2949_v12 = vadd.f32 %v2875_v48, %v2793_v62  ;;  %v2661_v62 = vadd.f32 %v2590_v9, %v5632_v11 }
 0x27d   : > { %v2724_v47 = vpop.f32.mrf.mxu2  ;;  %v2595_v36 = vpop.f32.mrf.mxu1  ;;  %v3192_v30 = vmax.f32 %v3160_v31, 0.0 }
 0x27e   : > { %v3015_v23 = vpop.f32.mrf.mxu0  ;;  %v2795_v63 = vadd.f32 %v2724_v47, %v2661_v62 }
 0x27f   : > { %v3681_v21 = vpack.c.bf16 %v3192_v30, %v3191_v28  ;;  %v3089_v44 = vadd.f32 %v3015_v23, %v2949_v12  ;;  %v2662_v23 = vadd.f32 %v2592_v14, %v5033_v61 }
 0x280   : > { %3587 = vmatmul.msk.bf16.gmra.mxu1 %vm1542_vm12, %v5631_v54 }
 0x281   : > { %3753 = vst [vmem:[%s5277_s18 + $0x8] sm:$0xff] %v3681_v21   ;;  %3641 = vmatmul.msk.bf16.gmra.mxu0 %vm1542_vm12, %v5626_v10  ;;  %v3125_v57 = vmul.f32 %v5255_v53, %v3089_v44 }
 0x283   : > { %v2877_v51 = vpop.f32.mrf.mxu3  ;;  %v3161_v10 = vadd.f32 %v5261_v17, %v3125_v57 }
 0x284   : > { %v2950_v32 = vadd.f32 %v2877_v51, %v2794_v18 }
 0x285   : > { %v2726_v29 = vpop.f32.mrf.mxu2  ;;  %v2597_v45 = vpop.f32.mrf.mxu1  ;;  %v3193_v6 = vmax.f32 %v3161_v10, 0.0 }
 0x286   : > { %v3017_v22 = vpop.f32.mrf.mxu0  ;;  %v2796_v21 = vadd.f32 %v2726_v29, %v2662_v23  ;;  %v554_v29 = vld [vmem:[#allocation2 + $0xcc] sm:$0x1] }
 0x287   : > { %v3090_v48 = vadd.f32 %v3017_v22, %v2950_v32  ;;  %v555_v10 = vsel %vm4019_vm3, 0, %v554_v29 }
 0x288   : > { %3624 = vmatmul.msk.bf16.gmra.mxu3 %vm1542_vm12, %v4429_v55  ;;  %556 = vst [vmem:[#allocation2 + $0xcc] sm:$0x1] %v555_v10 }
 0x289   : > { %v3126_v51 = vmul.f32 %v5255_v53, %v3090_v48  ;;  %v2663_v48 = vadd.f32 %v2595_v36, %v5051_v0  ;;  %v2664_v0 = vadd.f32 %v2597_v45, %v5061_v40  ;;  %v3573_v45 = vrot.slane %v5081_v7, 9 }
 0x28a   : > { %3608 = vmatmul.msk.bf16.gmra.mxu2 %vm1542_vm12, %v5040_v5 }
 0x28b   : > { %v2880_v31 = vpop.f32.mrf.mxu3  ;;  %v3162_v28 = vadd.f32 %v5261_v17, %v3126_v51 }
 0x28c   : > { %v2951_v35 = vadd.f32 %v2880_v31, %v2795_v63  ;;  %v610_v63 = vld [vmem:[#allocation2 + $0xd4] sm:$0x1] }
 0x28d   : > { %v2729_v30 = vpop.f32.mrf.mxu2  ;;  %v2600_v12 = vpop.f32.mrf.mxu1  ;;  %v3194_v55 = vmax.f32 %v3162_v28, 0.0 }
 0x28e   : > { %v3020_v9 = vpop.f32.mrf.mxu0  ;;  %v2797_v31 = vadd.f32 %v2729_v30, %v2663_v48  ;;  %v611_v30 = vsel %vm4028_vm6, 0, %v610_v63  ;;  %v5348_v48 = vld [vmem:[#allocation2 + $0xd0] sm:$0xf] }
 0x28f   : > { %v3686_v5 = vpack.c.bf16 %v3194_v55, %v3193_v6  ;;  %v3091_v47 = vadd.f32 %v3020_v9, %v2951_v35  ;;  %v2550_v55 = vrot.slane %v5083_v25, 5  ;;  %612 = vst [vmem:[#allocation2 + $0xd4] sm:$0x1] %v611_v30  ;;  %v2553_v25 = vrot.slane %v5098_v1, 5 }
 0x290   : > { %3588 = vmatmul.msk.bf16.gmra.mxu1 %vm1542_vm12, %v5056_v56  ;;  %v2665_v1 = vadd.f32 %v2600_v12, %v5076_v8  ;;  %v2835_v8 = vshrl.u32 %v5348_v48, 16 }
 0x291   : > { %3754 = vst [vmem:[%s5277_s18 + $0x10] sm:$0xff] %v3686_v5   ;;  %3642 = vmatmul.msk.bf16.gmra.mxu0 %vm1542_vm12, %v5631_v54  ;;  %v3127_v22 = vmul.f32 %v5255_v53, %v3091_v47 }
 0x293   : > { %v2882_v18 = vpop.f32.mrf.mxu3  ;;  %v3163_v54 = vadd.f32 %v5261_v17, %v3127_v22 }
 0x294   : > { %v2952_v44 = vadd.f32 %v2882_v18, %v2796_v21  ;;  %v2552_v21 = vrot.slane %v2550_v55, 4 }
 0x295   : > { %v2731_v32 = vpop.f32.mrf.mxu2  ;;  %v2602_v57 = vpop.f32.mrf.mxu1 }
 0x296   : > { %v3022_v61 = vpop.f32.mrf.mxu0  ;;  %v2798_v9 = vadd.f32 %v2731_v32, %v2664_v0  ;;  %v2551_v32 = vsel %vm4682_vm1, %v3573_v45, %v2550_v55  ;;  %v2831_v0 = vshll.u32 %v5348_v48, 16  ;;  %v1103_v45 = vld [vmem:[#allocation2 + $0xd4] sm:$0x1] }
 0x297   : > { %v3092_v14 = vadd.f32 %v3022_v61, %v2952_v44  ;;  %v5345_v61 = vld [vmem:[#allocation2 + $0xcc] sm:$0xf]  ;;  %v2557_v29 = vunpack.c.l.b16 %v2551_v32 }
 0x298   : > { %3625 = vmatmul.msk.bf16.gmra.mxu3 %vm1542_vm12, %v4557_v13 }
 0x299   : > { %v3128_v62 = vmul.f32 %v5255_v53, %v3092_v14 }
 0x29a   : > { %3609 = vmatmul.msk.bf16.gmra.mxu2 %vm1542_vm12, %v5068_v33  ;;  %v3195_v33 = vmax.f32 %v3163_v54, 0.0  ;;  %v2822_v54 = vshrl.u32 %v5345_v61, 16 }
 0x29b   : > { %v2885_v11 = vpop.f32.mrf.mxu3  ;;  %v3164_v13 = vadd.f32 %v5261_v17, %v3128_v62 }
 0x29c   : > { %v2953_v6 = vadd.f32 %v2885_v11, %v2797_v31 }
 0x29d   : > { %v2734_v51 = vpop.f32.mrf.mxu2  ;;  %v5324_v36 = vpop.f32.mrf.mxu1  ;;  %v3196_v28 = vmax.f32 %v3164_v13, 0.0  ;;  %v2825_v13 = vshll.u32 %v5345_v61, 16 }
 0x29e   : > { %v3025_v35 = vpop.f32.mrf.mxu0  ;;  %v2799_v10 = vadd.f32 %v2734_v51, %v2665_v1 }
 0x29f   : > { %v3691_v23 = vpack.c.bf16 %v3196_v28, %v3195_v33  ;;  %v3093_v40 = vadd.f32 %v3025_v35, %v2953_v6  ;;  %v2824_v6 = vrot.slane %v2822_v54, 4  ;;  %v2827_v51 = vrot.slane %v2825_v13, 5 }
 0x2a0   : > { %3589 = vmatmul.msk.bf16.gmra.mxu1 %vm1542_vm12, %v5085_v42 }
 0x2a1   : > { %3755 = vst [vmem:[%s5277_s18 + $0x18] sm:$0xff] %v3691_v23   ;;  %3643 = vmatmul.msk.bf16.gmra.mxu0 %vm1542_vm12, %v5056_v56  ;;  %v3129_v22 = vmul.f32 %v5255_v53, %v3093_v40  ;;  %v2554_v56 = vsel %vm4682_vm1, %v2552_v21, %v2553_v25  ;;  %v2833_v23 = vrot.slane %v2831_v0, 5 }
 0x2a3   : > { %v2887_v5 = vpop.f32.mrf.mxu3  ;;  %v3165_v62 = vadd.f32 %v5261_v17, %v3129_v22 }
 0x2a4   : > { %v2954_v18 = vadd.f32 %v2887_v5, %v2798_v9  ;;  %v2837_v9 = vrot.slane %v2835_v8, 4 }
 0x2a5   : > { %v2736_v47 = vpop.f32.mrf.mxu2  ;;  %v5336_v44 = vpop.f32.mrf.mxu1  ;;  %v3197_v55 = vmax.f32 %v3165_v62, 0.0 }
 0x2a6   : > { %v3027_v7 = vpop.f32.mrf.mxu0  ;;  %v2838_v25 = vor.u32 %v2837_v9, %v2833_v23 }
 0x2a7   : > { %v3094_v14 = vadd.f32 %v3027_v7, %v2954_v18  ;;  %v2841_v18 = vshll.u32 %v1103_v45, 16 }
 0x2a8   : > { %3626 = vmatmul.msk.bf16.gmra.mxu3 %vm1542_vm12, %v4713_v26  ;;  %v2558_v26 = vunpack.c.l.b16 %v2554_v56  ;;  %v3671_v56 = vld [vmem:[#allocation2 + $0xcc] sm:$0xff] }
 0x2a9   : > { %v3130_v31 = vmul.f32 %v5255_v53, %v3094_v14 }
 0x2aa   : > { %3610 = vmatmul.msk.bf16.gmra.mxu2 %vm1542_vm12, %v5107_v60  ;;  %v2666_v60 = vadd.f32 %v2602_v57, %v5093_v16  ;;  %v2559_v33 = vpack.c.b16 %v2558_v26, %v2557_v29  ;;  %v2828_v57 = vor.u32 %v2827_v51, %v2824_v6  ;;  %v2843_v29 = vrot.slane %v2841_v18, 5 }
 0x2ab   : > { %v2890_v11 = vpop.f32.mrf.mxu3  ;;  %v3166_v12 = vadd.f32 %v5261_v17, %v3130_v31 }
 0x2ac   : > { %v2955_v3 = vadd.f32 %v2890_v11, %v2799_v10  ;;  %v2800_v40 = vadd.f32 %v2736_v47, %v2666_v60  ;;  %v2829_v47 = vrot.slane %v2828_v57, 4  ;;  %v2839_v11 = vrot.slane %v2838_v25, 4 }
 0x2ad   : > { %v2739_v63 = vpop.f32.mrf.mxu2  ;;  %v5360_v28 = vpop.f32.mrf.mxu1  ;;  %v3198_v35 = vmax.f32 %v3166_v12, 0.0  ;;  %v2980_v12 = vrot.slane %v5348_v48, 5 }
 0x2ae   : > { %v3030_v30 = vpop.f32.mrf.mxu0  ;;  %v2834_v13 = vsel %vm4181_vm13, %v2829_v47, %v2833_v23  ;;  %v3629_v23 = vrot.slane %v5345_v61, 9 }
 0x2af   : > { %v3696_v5 = vpack.c.bf16 %v3198_v35, %v3197_v55  ;;  %v3095_v16 = vadd.f32 %v3030_v30, %v2955_v3 }
 0x2b0   : > { %3590 = vmatmul.msk.bf16.gmra.mxu1 %vm1542_vm12, %v2559_v33  ;;  %v2981_v57 = vsel %vm4682_vm1, %v3629_v23, %v2980_v12 }
 0x2b1   : > { %3756 = vst [vmem:[%s5277_s18 + $0x20] sm:$0xff] %v3696_v5   ;;  %3644 = vmatmul.msk.bf16.gmra.mxu0 %vm1542_vm12, %v5085_v42  ;;  %v3131_v14 = vmul.f32 %v5255_v53, %v3095_v16  ;;  %v2667_v42 = vadd.f32 %v5324_v36, %v5103_v43  ;;  %v2668_v43 = vadd.f32 %v5336_v44, %v5116_v52  ;;  %v2847_v36 = vunpack.c.l.b16 %v2834_v13 }
 0x2b2   : > { %v2982_v52 = vrot.slane %v2980_v12, 4  ;;  %v2983_v44 = vrot.slane %v1103_v45, 5 }
 0x2b3   : > { %v2892_v21 = vpop.f32.mrf.mxu3  ;;  %v3167_v62 = vadd.f32 %v5261_v17, %v3131_v14  ;;  %v2801_v10 = vadd.f32 %v2739_v63, %v2667_v42 }
 0x2b4   : > { %v2956_v22 = vadd.f32 %v2892_v21, %v2800_v40  ;;  %v2984_v61 = vsel %vm4682_vm1, %v2982_v52, %v2983_v44 }
 0x2b5   : > { %v2741_v32 = vpop.f32.mrf.mxu2  ;;  %v2612_v7 = vpop.f32.mrf.mxu1  ;;  %v3199_v6 = vmax.f32 %v3167_v62, 0.0  ;;  %v2988_v45 = vunpack.c.l.b16 %v2984_v61 }
 0x2b6   : > { %v3032_v1 = vpop.f32.mrf.mxu0  ;;  %v2802_v30 = vadd.f32 %v2741_v32, %v2668_v43  ;;  %v2670_v62 = vadd.f32 %v2612_v7, %v5132_v50 }
 0x2b7   : > { %v3096_v26 = vadd.f32 %v3032_v1, %v2956_v22  ;;  %v2987_v22 = vunpack.c.l.b16 %v2981_v57 }
 0x2b8   : > { %3627 = vmatmul.msk.bf16.gmra.mxu3 %vm1542_vm12, %v5121_v58  ;;  %v2844_v58 = vsel %vm4181_vm13, %v2839_v11, %v2843_v29 }
 0x2b9   : > { %v3132_v31 = vmul.f32 %v5255_v53, %v3096_v26  ;;  %v2848_v35 = vunpack.c.l.b16 %v2844_v58  ;;  %v2989_v29 = vpack.c.b16 %v2988_v45, %v2987_v22 }
 0x2ba   : > { %3611 = vmatmul.msk.bf16.gmra.mxu2 %vm1542_vm12, %v3671_v56 }
 0x2bb   : > { %v2895_v54 = vpop.f32.mrf.mxu3  ;;  %v3168_v0 = vadd.f32 %v5261_v17, %v3132_v31  ;;  %v2849_v5 = vpack.c.b16 %v2848_v35, %v2847_v36 }
 0x2bc   : > { %v2957_v63 = vadd.f32 %v2895_v54, %v2801_v10 }
 0x2bd   : > { %v2744_v8 = vpop.f32.mrf.mxu2  ;;  %v2615_v60 = vpop.f32.mrf.mxu1  ;;  %v3200_v55 = vmax.f32 %v3168_v0, 0.0 }
 0x2be   : > { %v3035_v3 = vpop.f32.mrf.mxu0 }
 0x2bf   : > { %v3701_v51 = vpack.c.bf16 %v3200_v55, %v3199_v6  ;;  %v3097_v9 = vadd.f32 %v3035_v3, %v2957_v63  ;;  %v2671_v6 = vadd.f32 %v2615_v60, %v5139_v27 }
 0x2c1   : > { %3757 = vst [vmem:[%s5277_s18 + $0x28] sm:$0xff] %v3701_v51   ;;  %3645 = vmatmul.msk.bf16.gmra.mxu0 %vm1542_vm12, %v2559_v33  ;;  %v3133_v16 = vmul.f32 %v5255_v53, %v3097_v9  ;;  %v2669_v33 = vadd.f32 %v5360_v28, %v5125_v39 }
 0x2c3   : > { %v2897_v34 = vpop.f32.mrf.mxu3  ;;  %v3169_v56 = vadd.f32 %v5261_v17, %v3133_v16  ;;  %v2803_v47 = vadd.f32 %v2744_v8, %v2669_v33 }
 0x2c4   : > { %v2958_v40 = vadd.f32 %v2897_v34, %v2802_v30 }
 0x2c5   : > { %v2746_v48 = vpop.f32.mrf.mxu2  ;;  %v2617_v21 = vpop.f32.mrf.mxu1  ;;  %v3201_v26 = vmax.f32 %v3169_v56, 0.0 }
 0x2c6   : > { %v3037_v25 = vpop.f32.mrf.mxu0  ;;  %v2804_v31 = vadd.f32 %v2746_v48, %v2670_v62  ;;  %v2672_v9 = vadd.f32 %v2617_v21, %v5146_v19 }
 0x2c7   : > { %v3098_v18 = vadd.f32 %v3037_v25, %v2958_v40 }
 0x2c8   : > { %3628 = vmatmul.msk.bf16.gmra.mxu3 %vm1542_vm12, %v2849_v5 }
 0x2c9   : > { %v3134_v14 = vmul.f32 %v5255_v53, %v3098_v18 }
 0x2cb   : > { %v2900_v32 = vpop.f32.mrf.mxu3  ;;  %v3170_v1 = vadd.f32 %v5261_v17, %v3134_v14 }
 0x2cc   : > { %v2959_v54 = vadd.f32 %v2900_v32, %v2803_v47 }
 0x2cd   : > { %v2749_v11 = vpop.f32.mrf.mxu2  ;;  %v2620_v37 = vpop.f32.mrf.mxu1  ;;  %v3202_v42 = vmax.f32 %v3170_v1, 0.0 }
 0x2ce   : > { %v3040_v39 = vpop.f32.mrf.mxu0  ;;  %v2805_v63 = vadd.f32 %v2749_v11, %v2671_v6  ;;  %v2673_v18 = vadd.f32 %v2620_v37, %v5153_v38 }
 0x2cf   : > { %v3706_v28 = vpack.c.bf16 %v3202_v42, %v3201_v26  ;;  %v3099_v13 = vadd.f32 %v3040_v39, %v2959_v54 }
 0x2d1   : > { %3758 = vst [vmem:[%s5277_s18 + $0x30] sm:$0xff] %v3706_v28   ;;  %3646 = vmatmul.msk.bf16.gmra.mxu0 %vm1542_vm12, %v2989_v29  ;;  %v3135_v43 = vmul.f32 %v5255_v53, %v3099_v13 }
 0x2d3   : > { %v2902_v10 = vpop.f32.mrf.mxu3  ;;  %v3171_v50 = vadd.f32 %v5261_v17, %v3135_v43 }
 0x2d4   : > { %v2960_v58 = vadd.f32 %v2902_v10, %v2804_v31 }
 0x2d5   : > { %v2751_v0 = vpop.f32.mrf.mxu2  ;;  %v2622_v8 = vpop.f32.mrf.mxu1  ;;  %v3203_v30 = vmax.f32 %v3171_v50, 0.0 }
 0x2d6   : > { %v3042_v36 = vpop.f32.mrf.mxu0  ;;  %v2806_v44 = vadd.f32 %v2751_v0, %v2672_v9  ;;  %v2674_v1 = vadd.f32 %v2622_v8, %v5160_v2 }
 0x2d7   : > { %v3100_v12 = vadd.f32 %v3042_v36, %v2960_v58 }
 0x2d9   : > { %v3136_v7 = vmul.f32 %v5255_v53, %v3100_v12 }
 0x2db   : > { %v2905_v55 = vpop.f32.mrf.mxu3  ;;  %v3172_v35 = vadd.f32 %v5261_v17, %v3136_v7 }
 0x2dc   : > { %v2961_v23 = vadd.f32 %v2905_v55, %v2805_v63 }
 0x2dd   : > { %v2754_v3 = vpop.f32.mrf.mxu2  ;;  %v2625_v51 = vpop.f32.mrf.mxu1  ;;  %v3204_v34 = vmax.f32 %v3172_v35, 0.0 }
 0x2de   : > { %v3045_v5 = vpop.f32.mrf.mxu0  ;;  %v2807_v21 = vadd.f32 %v2754_v3, %v2673_v18  ;;  %v2675_v10 = vadd.f32 %v2625_v51, %v5167_v46 }
 0x2df   : > { %v3711_v52 = vpack.c.bf16 %v3204_v34, %v3203_v30  ;;  %v3101_v60 = vadd.f32 %v3045_v5, %v2961_v23 }
 0x2e1   : > { %3759 = vst [vmem:[%s5277_s18 + $0x38] sm:$0xff] %v3711_v52   ;;  %v3137_v16 = vmul.f32 %v5255_v53, %v3101_v60 }
 0x2e3   : > { %v2907_v27 = vpop.f32.mrf.mxu3  ;;  %v3173_v22 = vadd.f32 %v5261_v17, %v3137_v16 }
 0x2e4   : > { %v2962_v40 = vadd.f32 %v2907_v27, %v2806_v44 }
 0x2e5   : > { %v2756_v48 = vpop.f32.mrf.mxu2  ;;  %v2627_v61 = vpop.f32.mrf.mxu1  ;;  %v3205_v56 = vmax.f32 %v3173_v22, 0.0 }
 0x2e6   : > { %v3047_v57 = vpop.f32.mrf.mxu0  ;;  %v2808_v26 = vadd.f32 %v2756_v48, %v2674_v1  ;;  %v2676_v50 = vadd.f32 %v2627_v61, %v5174_v20 }
 0x2e7   : > { %v3102_v25 = vadd.f32 %v3047_v57, %v2962_v40 }
 0x2e9   : > { %v3138_v19 = vmul.f32 %v5255_v53, %v3102_v25 }
 0x2eb   : > { %v2910_v33 = vpop.f32.mrf.mxu3  ;;  %v3174_v45 = vadd.f32 %v5261_v17, %v3138_v19 }
 0x2ec   : > { %v2963_v47 = vadd.f32 %v2910_v33, %v2807_v21 }
 0x2ed   : > { %v2759_v32 = vpop.f32.mrf.mxu2  ;;  %v3206_v14 = vmax.f32 %v3174_v45, 0.0  ;;  %v2630_v38 = vpop.f32.mrf.mxu1 }
 0x2ee   : > { %v3050_v11 = vpop.f32.mrf.mxu0  ;;  %v2809_v0 = vadd.f32 %v2759_v32, %v2675_v10  ;;  %v2677_v52 = vadd.f32 %v2630_v38, %v5181_v4 }
 0x2ef   : > { %v3716_v29 = vpack.c.bf16 %v3206_v14, %v3205_v56  ;;  %v3103_v37 = vadd.f32 %v3050_v11, %v2963_v47 }
 0x2f1   : > { %3760 = vst [vmem:[%s5277_s18 + $0x40] sm:$0xff] %v3716_v29   ;;  %v3139_v39 = vmul.f32 %v5255_v53, %v3103_v37 }
 0x2f3   : > { %v2912_v42 = vpop.f32.mrf.mxu3  ;;  %v3175_v58 = vadd.f32 %v5261_v17, %v3139_v39 }
 0x2f4   : > { %v2964_v54 = vadd.f32 %v2912_v42, %v2808_v26 }
 0x2f5   : > { %v2761_v62 = vpop.f32.mrf.mxu2  ;;  %v2632_v8 = vpop.f32.mrf.mxu1  ;;  %v3207_v12 = vmax.f32 %v3175_v58, 0.0 }
 0x2f6   : > { %v3052_v28 = vpop.f32.mrf.mxu0  ;;  %v2810_v35 = vadd.f32 %v2761_v62, %v2676_v50  ;;  %v2678_v25 = vadd.f32 %v2632_v8, %v5188_v41 }
 0x2f7   : > { %v3104_v31 = vadd.f32 %v3052_v28, %v2964_v54 }
 0x2f9   : > { %v3140_v2 = vmul.f32 %v5255_v53, %v3104_v31 }
 0x2fb   : > { %v2915_v13 = vpop.f32.mrf.mxu3  ;;  %v3176_v43 = vadd.f32 %v5261_v17, %v3140_v2 }
 0x2fc   : > { %v2965_v55 = vadd.f32 %v2915_v13, %v2809_v0 }
 0x2fd   : > { %v2764_v36 = vpop.f32.mrf.mxu2  ;;  %v3208_v6 = vmax.f32 %v3176_v43, 0.0  ;;  %v2635_v34 = vpop.f32.mrf.mxu1 }
 0x2fe   : > { %v3055_v7 = vpop.f32.mrf.mxu0  ;;  %v2811_v60 = vadd.f32 %v2764_v36, %v2677_v52  ;;  %v2679_v1 = vadd.f32 %v2635_v34, %v5195_v49 }
 0x2ff   : > { %v3721_v63 = vpack.c.bf16 %v3208_v6, %v3207_v12  ;;  %v3105_v3 = vadd.f32 %v3055_v7, %v2965_v55 }
 0x301   : > { %3761 = vst [vmem:[%s5277_s18 + $0x48] sm:$0xff] %v3721_v63   ;;  %v3141_v23 = vmul.f32 %v5255_v53, %v3105_v3 }
 0x303   : > { %v2917_v46 = vpop.f32.mrf.mxu3  ;;  %v3177_v27 = vadd.f32 %v5261_v17, %v3141_v23 }
 0x304   : > { %v2966_v51 = vadd.f32 %v2917_v46, %v2810_v35 }
 0x305   : > { %v2766_v30 = vpop.f32.mrf.mxu2  ;;  %v3209_v16 = vmax.f32 %v3177_v27, 0.0  ;;  %v2637_v33 = vpop.f32.mrf.mxu1 }
 0x306   : > { %v3057_v9 = vpop.f32.mrf.mxu0  ;;  %v2812_v19 = vadd.f32 %v2766_v30, %v2678_v25  ;;  %v2680_v28 = vadd.f32 %v2637_v33, %v5202_v59 }
 0x307   : > { %v3106_v5 = vadd.f32 %v3057_v9, %v2966_v51 }
 0x309   : > { %v3142_v20 = vmul.f32 %v5255_v53, %v3106_v5 }
 0x30b   : > { %v2920_v44 = vpop.f32.mrf.mxu3  ;;  %v3178_v40 = vadd.f32 %v5261_v17, %v3142_v20 }
 0x30c   : > { %v2967_v61 = vadd.f32 %v2920_v44, %v2811_v60 }
 0x30d   : > { %v2769_v48 = vpop.f32.mrf.mxu2  ;;  %v3210_v57 = vmax.f32 %v3178_v40, 0.0  ;;  %v2640_v29 = vpop.f32.mrf.mxu1 }
 0x30e   : > { %v3060_v18 = vpop.f32.mrf.mxu0  ;;  %v2813_v42 = vadd.f32 %v2769_v48, %v2679_v1  ;;  %v2681_v6 = vadd.f32 %v2640_v29, %v5209_v15  ;;  %v5634_v48 = vld [vmem:[#allocation14_spill] sm:$0xff] }
 0x30f   : > { %v3726_v22 = vpack.c.bf16 %v3210_v57, %v3209_v16  ;;  %v3107_v21 = vadd.f32 %v3060_v18, %v2967_v61 }
 0x311   : > { %3762 = vst [vmem:[%s5277_s18 + $0x50] sm:$0xff] %v3726_v22   ;;  %v3143_v56 = vmul.f32 %v5255_v53, %v3107_v21  ;;  %v5635_v21 = vld [vmem:[#allocation23_spill] sm:$0xff] }
 0x313   : > { %v2922_v4 = vpop.f32.mrf.mxu3  ;;  %v3179_v41 = vadd.f32 %v5261_v17, %v3143_v56 }
 0x314   : > { %v2968_v45 = vadd.f32 %v2922_v4, %v2812_v19 }
 0x315   : > { %v2771_v32 = vpop.f32.mrf.mxu2  ;;  %v3211_v54 = vmax.f32 %v3179_v41, 0.0  ;;  %v2642_v2 = vpop.f32.mrf.mxu1 }
 0x316   : > { %v3062_v14 = vpop.f32.mrf.mxu0  ;;  %v2814_v13 = vadd.f32 %v2771_v32, %v2680_v28  ;;  %v2682_v30 = vadd.f32 %v2642_v2, %v5216_v24 }
 0x317   : > { %v3108_v47 = vadd.f32 %v3062_v14, %v2968_v45 }
 0x319   : > { %v3144_v26 = vmul.f32 %v5255_v53, %v3108_v47 }
 0x31b   : > { %v2925_v11 = vpop.f32.mrf.mxu3  ;;  %v3180_v38 = vadd.f32 %v5261_v17, %v3144_v26 }
 0x31c   : > { %v2969_v39 = vadd.f32 %v2925_v11, %v2813_v42 }
 0x31d   : > { %v2774_v37 = vpop.f32.mrf.mxu2  ;;  %v3212_v62 = vmax.f32 %v3180_v38, 0.0  ;;  %v2645_v35 = vpop.f32.mrf.mxu1 }
 0x31e   : > { %v3065_v31 = vpop.f32.mrf.mxu0  ;;  %v2815_v7 = vadd.f32 %v2774_v37, %v2681_v6  ;;  %v2683_v16 = vadd.f32 %v2645_v35, %v5634_v48  ;;  %v5636_v37 = vld [vmem:[#allocation15_spill] sm:$0xff] }
 0x31f   : > { %v3731_v10 = vpack.c.bf16 %v3212_v62, %v3211_v54  ;;  %v3109_v58 = vadd.f32 %v3065_v31, %v2969_v39 }
 0x321   : > { %3763 = vst [vmem:[%s5277_s18 + $0x58] sm:$0xff] %v3731_v10   ;;  %v3145_v43 = vmul.f32 %v5255_v53, %v3109_v58 }
 0x323   : > { %v2927_v49 = vpop.f32.mrf.mxu3  ;;  %v3181_v50 = vadd.f32 %v5261_v17, %v3145_v43 }
 0x324   : > { %v2970_v0 = vadd.f32 %v2927_v49, %v2814_v13 }
 0x325   : > { %v2776_v8 = vpop.f32.mrf.mxu2  ;;  %v3213_v46 = vmax.f32 %v3181_v50, 0.0  ;;  %v2647_v60 = vpop.f32.mrf.mxu1 }
 0x326   : > { %v3067_v36 = vpop.f32.mrf.mxu0  ;;  %v2816_v5 = vadd.f32 %v2776_v8, %v2682_v30  ;;  %v2684_v45 = vadd.f32 %v2647_v60, %v5635_v21  ;;  %v5637_v8 = vld [vmem:[#allocation26_spill] sm:$0xff] }
 0x327   : > { %v3110_v12 = vadd.f32 %v3067_v36, %v2970_v0 }
 0x329   : > { %v3146_v59 = vmul.f32 %v5255_v53, %v3110_v12 }
 0x32b   : > { %v2930_v55 = vpop.f32.mrf.mxu3  ;;  %v3182_v63 = vadd.f32 %v5261_v17, %v3146_v59 }
 0x32c   : > { %v2971_v51 = vadd.f32 %v2930_v55, %v2815_v7 }
 0x32d   : > { %v3214_v3 = vmax.f32 %v3182_v63, 0.0  ;;  %v2779_v23 = vpop.f32.mrf.mxu2  ;;  %v2650_v1 = vpop.f32.mrf.mxu1 }
 0x32e   : > { %v3070_v34 = vpop.f32.mrf.mxu0  ;;  %v2817_v18 = vadd.f32 %v2779_v23, %v2683_v16  ;;  %v2685_v54 = vadd.f32 %v2650_v1, %v5636_v37 }
 0x32f   : > { %v3736_v9 = vpack.c.bf16 %v3214_v3, %v3213_v46  ;;  %v3111_v52 = vadd.f32 %v3070_v34, %v2971_v51 }
 0x331   : > { %3764 = vst [vmem:[%s5277_s18 + $0x60] sm:$0xff] %v3736_v9   ;;  %v3147_v27 = vmul.f32 %v5255_v53, %v3111_v52 }
 0x333   : > { %v2932_v15 = vpop.f32.mrf.mxu3  ;;  %v3183_v24 = vadd.f32 %v5261_v17, %v3147_v27 }
 0x334   : > { %v2972_v44 = vadd.f32 %v2932_v15, %v2816_v5 }
 0x335   : > { %v2781_v61 = vpop.f32.mrf.mxu2  ;;  %v3215_v22 = vmax.f32 %v3183_v24, 0.0  ;;  %v2652_v10 = vpop.f32.mrf.mxu1 }
 0x336   : > { %v3072_v20 = vpop.f32.mrf.mxu0  ;;  %v2818_v14 = vadd.f32 %v2781_v61, %v2684_v45  ;;  %v2686_v43 = vadd.f32 %v2652_v10, %v5637_v8 }
 0x337   : > { %v3112_v40 = vadd.f32 %v3072_v20, %v2972_v44 }
 0x339   : > { %v3148_v25 = vmul.f32 %v5255_v53, %v3112_v40 }
 0x33b   : > { %v2935_v57 = vpop.f32.mrf.mxu3  ;;  %v3184_v33 = vadd.f32 %v5261_v17, %v3148_v25 }
 0x33c   : > { %v2973_v4 = vadd.f32 %v2935_v57, %v2817_v18 }
 0x33d   : > { %v3216_v19 = vmax.f32 %v3184_v33, 0.0  ;;  %v2784_v29 = vpop.f32.mrf.mxu2 }
 0x33e   : > { %v3075_v32 = vpop.f32.mrf.mxu0  ;;  %v2819_v31 = vadd.f32 %v2784_v29, %v2685_v54 }
 0x33f   : > { %v3741_v56 = vpack.c.bf16 %v3216_v19, %v3215_v22  ;;  %v3113_v11 = vadd.f32 %v3075_v32, %v2973_v4 }
 0x341   : > { %3765 = vst [vmem:[%s5277_s18 + $0x68] sm:$0xff] %v3741_v56   ;;  %v3149_v26 = vmul.f32 %v5255_v53, %v3113_v11 }
 0x343   : > { %v2937_v47 = vpop.f32.mrf.mxu3  ;;  %v3185_v39 = vadd.f32 %v5261_v17, %v3149_v26 }
 0x344   : > { %v2974_v41 = vadd.f32 %v2937_v47, %v2818_v14 }
 0x345   : > { %v2786_v49 = vpop.f32.mrf.mxu2  ;;  %v3217_v58 = vmax.f32 %v3185_v39, 0.0 }
 0x346   : > { %v3077_v42 = vpop.f32.mrf.mxu0  ;;  %v2820_v6 = vadd.f32 %v2786_v49, %v2686_v43 }
 0x347   : > { %v3114_v38 = vadd.f32 %v3077_v42, %v2974_v41 }
 0x349   : > { %v3150_v28 = vmul.f32 %v5255_v53, %v3114_v38 }
 0x34b   : > { %v2940_v62 = vpop.f32.mrf.mxu3  ;;  %v3186_v13 = vadd.f32 %v5261_v17, %v3150_v28 }
 0x34c   : > { %v2975_v0 = vadd.f32 %v2940_v62, %v2819_v31 }
 0x34d   : > { %v3218_v2 = vmax.f32 %v3186_v13, 0.0 }
 0x34e   : > { %v3080_v36 = vpop.f32.mrf.mxu0 }
 0x34f   : > { %v3746_v12 = vpack.c.bf16 %v3218_v2, %v3217_v58  ;;  %v3115_v55 = vadd.f32 %v3080_v36, %v2975_v0 }
 0x351   : > { %3766 = vst [vmem:[%s5277_s18 + $0x70] sm:$0xff] %v3746_v12   ;;  %v3151_v7 = vmul.f32 %v5255_v53, %v3115_v55 }
 0x353   : > { %v2942_v50 = vpop.f32.mrf.mxu3  ;;  %v3187_v46 = vadd.f32 %v5261_v17, %v3151_v7 }
 0x354   : > { %v2976_v59 = vadd.f32 %v2942_v50, %v2820_v6 }
 0x355   : > { %v3219_v30 = vmax.f32 %v3187_v46, 0.0 }
 0x356   : > { %v3082_v63 = vpop.f32.mrf.mxu0 }
 0x357   : > { %v3116_v35 = vadd.f32 %v3082_v63, %v2976_v59 }
 0x359   : > { %v3152_v3 = vmul.f32 %v5255_v53, %v3116_v35 }
 0x35b   : > { %v3188_v51 = vadd.f32 %v5261_v17, %v3152_v3 }
 0x35d   : > { %v3220_v34 = vmax.f32 %v3188_v51, 0.0 }
 0x35f   : > { %v3751_v23 = vpack.c.bf16 %v3220_v34, %v3219_v30 }
 0x361   : > { %3767 = vst [vmem:[%s5277_s18 + $0x78] sm:$0xff] %v3751_v23  }
 0x362   : > { %3876 = shalt.err (!%p3873_p3)
}
 0x363   : > { %s3914_s16 = smov 64   ;;  %s3915_s18 = smov 4  }
 0x364   : > { %3771 = dma.vmem_to_hbm [thread:$0]  (%p3994_p5), %s3304_s29, 2048, %s3306_s8, %s3286_s28, %s3914_s16, %s3914_s16, %s3915_s18  }
 0x365 PF: > { %p3777_p4 = scmp.ge.s32.totalorder %s3911_s27, 2  ;;  %s3323_s20 = sand.u32 1, %s3899_s24  }
 0x366   : > { %s3324_s22 = scalar_lea.sflag [#allocation4], %s3323_s20 }
 0x367   : > { %p3774_p7 = pnand %p3777_p4, %p3998_p6 }
 0x369   : > { %p3775_p8 = pneg %p3774_p7 }
 0x36b   : > { %3894 = dma.done.wait (%p3775_p8), %s3324_s22, 2048  }
 0x36c   : > { %3896 = vsyncadd (%p3775_p8), %s3324_s22, 4294965248  ;;  %p18_p9 = scmp.ge.s32.totalorder %s3981_s30, 4   ;;  %s5638_s24 = smov %s3903_s25 }
 0x36d   : > { %s5639_s25 = smov %s3907_s26  ;;  %s5640_s26 = smov %s3992_s10 }
 0x36e   : > { %s5641_s27 = smov %s3981_s30  ;;  %20 = sbr.rel (!%p18_p9) target bundleno = 3 (0x3), region = 101 }
 0x373   :  { %3338 = vsyncpa [#allocation4], 1 }
 0x374   :  { %3340 = vsyncpa [#allocation4 + $0x1], 1 }

</bundles_post_ra>
